<compile_context>
chip_gen: v6e
topology: v6e:2x2x1
jax: 0.10.0
libtpu: 0.0.40
codegen_flags: <defaults>
</compile_context>

<pallas_src>
import functools

import jax
import jax.numpy as jnp
from jax.experimental import pallas as pl
from jax.experimental.pallas import tpu as pltpu

EPS = 1e-5          # torch.nn.LayerNorm default
NEG_INF = -1e30     # additive mask for padded key columns


def _round_up(x, m):
    return (x + m - 1) // m * m


def _layernorm(x, gamma, beta):
    # x: (..., C) float32; statistics kept in f32.
    mean = jnp.mean(x, axis=-1, keepdims=True)
    var = jnp.mean(jnp.square(x - mean), axis=-1, keepdims=True)
    return (x - mean) * jax.lax.rsqrt(var + EPS) * gamma + beta


def _device_vmem_capacity():
    try:
        info = pltpu.get_tpu_info()
        cap = getattr(info, "vmem_capacity_bytes", None)
        if cap:
            return int(cap)
    except Exception:
        pass
    return 64 * 1024 * 1024   # conservative (v7x-sized) fallback


def _estimate_vmem_bytes(b_blk, S_pad, P_pad, C, Ch, K_pad):
    """Rough upper bound of the kernel's live VMEM set (bytes)."""
    bf, f4 = 2, 4
    N = b_blk * S_pad
    # per-layer weights (wq/wk/wv/wo + w1/w2 + ln/bias), double-buffered
    layer_w = (4 * C * C + 2 * C * Ch) * bf + (6 * C + Ch) * f4
    weights = 2 * layer_w
    # constants (patches block, patch_w, tokbias, head), 2 pipeline buffers
    consts = 2 * ((b_blk * S_pad * P_pad + P_pad * C + C * K_pad) * bf
                  + (S_pad * C + 2 * C + K_pad) * f4)
    tokens = N * C * f4
    # activations: xn/q/k/v/o_cat (bf16-ish), residual temporaries (f32),
    # per-head scores+probs (f32), MLP hidden (f32 + bf16)
    acts = (N * C) * (2 * f4 + 5 * bf) \
        + (b_blk * S_pad * S_pad) * 2 * f4 \
        + (N * Ch) * (f4 + bf)
    return weights + consts + tokens + acts


# ---------------------------------------------------------------------------
# Fused kernel: patch-embed -> L transformer blocks -> final LN -> head
# ---------------------------------------------------------------------------
def fused_vit_kernel(patches_ref, pw_ref, tb_ref,                  # embedding
                     g1_ref, be1_ref, wq_ref, wk_ref, wv_ref,      # per-layer
                     wo_ref, bo_ref, g2_ref, be2_ref,
                     w1_ref, b1_ref, w2_ref, b2_ref,
                     lng_ref, lnb_ref, hw_ref, hb_ref,             # final head
                     o_ref,                                        # output
                     tok_ref,                                      # VMEM scratch
                     *, num_heads, s_real):
    l = pl.program_id(1)
    B_blk, S_pad, C = tok_ref.shape
    H = num_heads
    D = C // H
    N = B_blk * S_pad
    P_pad = patches_ref.shape[-1]

    # ---- layer 0: patch embedding + pos embedding + cls token -> VMEM -----
    @pl.when(l == 0)
    def _():
        emb = jnp.dot(patches_ref[...].reshape(N, P_pad), pw_ref[...],
                      preferred_element_type=jnp.float32)
        # tb rows: 0 = cls token, 1..T = pos_embedding + conv bias, pad = 0.
        tok_ref[...] = emb.reshape(B_blk, S_pad, C) + tb_ref[...]

    x = tok_ref[...]                                    # (B_blk, S_pad, C) f32

    # ---------------- multi-head self-attention -----------------------------
    xn = _layernorm(x, g1_ref[0], be1_ref[0]).astype(jnp.bfloat16).reshape(N, C)

    # Full-width (C x C) projections -> good MXU feed; 1/sqrt(D) folded in wq.
    q = jnp.dot(xn, wq_ref[0], preferred_element_type=jnp.float32)
    k = jnp.dot(xn, wk_ref[0], preferred_element_type=jnp.float32)
    v = jnp.dot(xn, wv_ref[0], preferred_element_type=jnp.float32)
    qb = q.astype(jnp.bfloat16).reshape(B_blk, S_pad, C)
    kb = k.astype(jnp.bfloat16).reshape(B_blk, S_pad, C)
    vb = v.astype(jnp.bfloat16).reshape(B_blk, S_pad, C)

    key_mask = None
    if s_real < S_pad:                                   # static branch
        col = jax.lax.broadcasted_iota(jnp.int32, (1, 1, S_pad), 2)
        key_mask = col < s_real                          # mask padded keys

    # Head splitting only for the score / PV step (static lane slices).  The
    # per-head loop also keeps only one (B_blk, S, S) score/prob pair live at a
    # time instead of the full (H, S, S) tensor.
    head_outs = []
    for h in range(H):
        lo = h * D
        q_h = qb[:, :, lo:lo + D]
        k_h = kb[:, :, lo:lo + D]
        v_h = vb[:, :, lo:lo + D]
        s = jnp.einsum('bqd,bkd->bqk', q_h, k_h,
                       preferred_element_type=jnp.float32)
        if key_mask is not None:
            s = jnp.where(key_mask, s, NEG_INF)
        s = s - jnp.max(s, axis=-1, keepdims=True)
        p = jnp.exp(s)
        p = p * pl.reciprocal(jnp.sum(p, axis=-1, keepdims=True), approx=True)
        head_outs.append(jnp.einsum('bqk,bkd->bqd', p.astype(jnp.bfloat16), v_h,
                                    preferred_element_type=jnp.float32))
    o_cat = head_outs[0] if H == 1 else jnp.concatenate(head_outs, axis=-1)

    # Head-concat output projection: single (N, C) @ (C, C) matmul (K = C).
    proj = jnp.dot(o_cat.astype(jnp.bfloat16).reshape(N, C), wo_ref[0],
                   preferred_element_type=jnp.float32)
    x = x + proj.reshape(B_blk, S_pad, C) + bo_ref[0]

    # ---------------------------- MLP ---------------------------------------
    xn2 = _layernorm(x, g2_ref[0], be2_ref[0]).astype(jnp.bfloat16).reshape(N, C)
    hmid = jnp.dot(xn2, w1_ref[0], preferred_element_type=jnp.float32) + b1_ref[0]
    # TODO(synk): switch to approximate=False (erf) if bit-exact parity with
    # torch.nn.GELU is required; tanh GELU runs on the EUP slot (~1e-3 diff).
    hmid = jax.nn.gelu(hmid, approximate=True)
    hout = jnp.dot(hmid.astype(jnp.bfloat16), w2_ref[0],
                   preferred_element_type=jnp.float32) + b2_ref[0]
    x = x + hout.reshape(B_blk, S_pad, C)
    tok_ref[...] = x

    # -------- last layer: final LayerNorm + classification head (cls) -------
    @pl.when(l == pl.num_programs(1) - 1)
    def _():
        cls = x[:, 0:1, :].reshape(B_blk, C)             # cls token rows
        cls = _layernorm(cls, lng_ref[...], lnb_ref[...])
        logits = jnp.dot(cls.astype(jnp.bfloat16), hw_ref[...],
                         preferred_element_type=jnp.float32) + hb_ref[...]
        o_ref[...] = logits.reshape(B_blk, 1, o_ref.shape[-1])


# ---------------------------------------------------------------------------
# pallas_call wrapper
# ---------------------------------------------------------------------------
def _fused_forward(patches, patch_w, tokbias, packed, ln_g, ln_b,
                   head_w, head_b, *, num_heads, s_real, b_blk, vmem_limit):
    B_pad, S_pad, P_pad = patches.shape
    C = patch_w.shape[1]
    L = packed["wq"].shape[0]
    Ch = packed["w1"].shape[2]
    K_pad = head_w.shape[1]

    args_and_specs = [
        (patches, pl.BlockSpec((b_blk, S_pad, P_pad), lambda b, l: (b, 0, 0))),
        (patch_w, pl.BlockSpec((P_pad, C), lambda b, l: (0, 0))),
        (tokbias, pl.BlockSpec((S_pad, C), lambda b, l: (0, 0))),
        (packed["g1"],  pl.BlockSpec((1, 1, C), lambda b, l: (l, 0, 0))),
        (packed["be1"], pl.BlockSpec((1, 1, C), lambda b, l: (l, 0, 0))),
        (packed["wq"],  pl.BlockSpec((1, C, C), lambda b, l: (l, 0, 0))),
        (packed["wk"],  pl.BlockSpec((1, C, C), lambda b, l: (l, 0, 0))),
        (packed["wv"],  pl.BlockSpec((1, C, C), lambda b, l: (l, 0, 0))),
        (packed["wo"],  pl.BlockSpec((1, C, C), lambda b, l: (l, 0, 0))),
        (packed["bo"],  pl.BlockSpec((1, 1, C), lambda b, l: (l, 0, 0))),
        (packed["g2"],  pl.BlockSpec((1, 1, C), lambda b, l: (l, 0, 0))),
        (packed["be2"], pl.BlockSpec((1, 1, C), lambda b, l: (l, 0, 0))),
        (packed["w1"],  pl.BlockSpec((1, C, Ch), lambda b, l: (l, 0, 0))),
        (packed["b1"],  pl.BlockSpec((1, 1, Ch), lambda b, l: (l, 0, 0))),
        (packed["w2"],  pl.BlockSpec((1, Ch, C), lambda b, l: (l, 0, 0))),
        (packed["b2"],  pl.BlockSpec((1, 1, C), lambda b, l: (l, 0, 0))),
        (ln_g,   pl.BlockSpec((1, C), lambda b, l: (0, 0))),
        (ln_b,   pl.BlockSpec((1, C), lambda b, l: (0, 0))),
        (head_w, pl.BlockSpec((C, K_pad), lambda b, l: (0, 0))),
        (head_b, pl.BlockSpec((1, K_pad), lambda b, l: (0, 0))),
    ]
    arrays = [a for a, _ in args_and_specs]
    in_specs = [spec for _, spec in args_and_specs]

    out = pl.pallas_call(
        functools.partial(fused_vit_kernel, num_heads=num_heads, s_real=s_real),
        grid=(B_pad // b_blk, L),
        out_shape=jax.ShapeDtypeStruct((B_pad, 1, K_pad), jnp.float32),
        in_specs=in_specs,
        out_specs=pl.BlockSpec((b_blk, 1, K_pad), lambda b, l: (b, 0, 0)),
        scratch_shapes=[pltpu.VMEM((b_blk, S_pad, C), jnp.float32)],
        compiler_params=pltpu.CompilerParams(
            dimension_semantics=("parallel", "arbitrary"),
            vmem_limit_bytes=vmem_limit),
    )(*arrays)
    return out[:, 0, :]


# ---------------------------------------------------------------------------
# Parameter packing (plain JAX, outside the kernel)
# ---------------------------------------------------------------------------
def _pack_layers(layers, num_heads):
    C = layers[0]["wq"].shape[0]
    D = C // num_heads
    scale = float(D) ** -0.5

    def stack(name):
        return jnp.stack([lp[name] for lp in layers], axis=0)

    return {
        "g1": stack("g1"), "be1": stack("be1"),
        "wq": (stack("wq") * scale).astype(jnp.bfloat16),    # scale folded in
        "wk": stack("wk").astype(jnp.bfloat16),
        "wv": stack("wv").astype(jnp.bfloat16),
        "wo": stack("wo").astype(jnp.bfloat16),
        "bo": stack("bo"),
        "g2": stack("g2"), "be2": stack("be2"),
        "w1": stack("w1").astype(jnp.bfloat16), "b1": stack("b1"),
        "w2": stack("w2").astype(jnp.bfloat16), "b2": stack("b2"),
    }


def vit_classifier_forward(img, params, *, patch_size, num_heads):
    """Forward pass matching ViT_Classifier.forward (no shuffle/masking)."""
    B, Cin, Hi, Wi = img.shape
    p = patch_size
    Hp, Wp = Hi // p, Wi // p
    T = Hp * Wp
    C = params["cls_token"].shape[-1]
    S = T + 1                                   # +1 cls token
    S_pad = _round_up(S, 16)                    # sublane-aligned token rows
    pdim = Cin * p * p
    P_pad = _round_up(pdim, 128)                # lane-dense contraction dim
    K = params["head_w"].shape[1]
    K_pad = _round_up(K, 128)                   # lane-dense head output slab
    Ch = params["layers"][0]["w1"].shape[1]

    # Batch blocking: larger blocks amortize the per-layer weight stream.
    cap = _device_vmem_capacity()
    b_cap = 8 if cap <= 64 * 1024 * 1024 else 16
    b_blk = max(1, min(B, b_cap))
    B_pad = _round_up(B, b_blk)

    est = _estimate_vmem_bytes(b_blk, S_pad, P_pad, C, Ch, K_pad)
    vmem_limit = int(min(0.85 * cap, max(32 * 1024 * 1024, 2 * est)))

    # Conv2d(3, C, p, stride=p) == matmul over flattened (cin, i, j) patches.
    x = img.reshape(B, Cin, Hp, p, Wp, p).transpose(0, 2, 4, 1, 3, 5)
    x = x.reshape(B, T, pdim)

    patches = jnp.zeros((B_pad, S_pad, P_pad), jnp.float32)
    patches = patches.at[:B, 1:S, :pdim].set(x).astype(jnp.bfloat16)

    patch_w = jnp.zeros((P_pad, C), jnp.float32)
    patch_w = patch_w.at[:pdim, :].set(params["patch_w"]).astype(jnp.bfloat16)

    # Token bias: row 0 = cls token, rows 1..T = pos_embedding + conv bias.
    tokbias = jnp.zeros((S_pad, C), jnp.float32)
    tokbias = tokbias.at[0, :].set(params["cls_token"].reshape(C))
    tokbias = tokbias.at[1:S, :].set(params["pos_embedding"].reshape(T, C)
                                     + params["patch_b"].reshape(1, C))

    head_w = jnp.zeros((C, K_pad), jnp.float32)
    head_w = head_w.at[:, :K].set(params["head_w"]).astype(jnp.bfloat16)
    head_b = jnp.zeros((1, K_pad), jnp.float32).at[:, :K].set(params["head_b"])

    packed = _pack_layers(params["layers"], num_heads)

    logits = _fused_forward(patches, patch_w, tokbias, packed,
                            params["ln_g"], params["ln_b"], head_w, head_b,
                            num_heads=num_heads, s_real=S,
                            b_blk=b_blk, vmem_limit=vmem_limit)
    return logits[:B, :K]


# ---------------------------------------------------------------------------
# Deterministic synthetic parameter init (matches module shapes)
# ---------------------------------------------------------------------------
def init_params(key, *, emb_dim, num_layers, num_patches, patch_size,
                num_classes, in_chans=3):
    hidden = 4 * emb_dim                     # timm Mlp mlp_ratio=4
    pdim = in_chans * patch_size * patch_size
    keys = iter(jax.random.split(key, 8 + 8 * num_layers))

    def nrm(shape, std=0.02):
        return (std * jax.random.normal(next(keys), shape)).astype(jnp.float32)

    params = {
        "cls_token": nrm((1, 1, emb_dim)),
        "pos_embedding": nrm((num_patches, 1, emb_dim)),
        "patch_w": nrm((pdim, emb_dim)),            # Conv2d weight flattened
        "patch_b": jnp.zeros((1, emb_dim), jnp.float32),
        "ln_g": jnp.ones((1, emb_dim), jnp.float32),
        "ln_b": jnp.zeros((1, emb_dim), jnp.float32),
        "head_w": nrm((emb_dim, num_classes)),
        "head_b": jnp.zeros((1, num_classes), jnp.float32),
        "layers": [],
    }
    for _ in range(num_layers):
        params["layers"].append({
            "g1": jnp.ones((1, emb_dim), jnp.float32),
            "be1": jnp.zeros((1, emb_dim), jnp.float32),
            "wq": nrm((emb_dim, emb_dim)),          # timm Attention qkv_bias=False
            "wk": nrm((emb_dim, emb_dim)),
            "wv": nrm((emb_dim, emb_dim)),
            "wo": nrm((emb_dim, emb_dim)),
            "bo": jnp.zeros((1, emb_dim), jnp.float32),
            "g2": jnp.ones((1, emb_dim), jnp.float32),
            "be2": jnp.zeros((1, emb_dim), jnp.float32),
            "w1": nrm((emb_dim, hidden)),
            "b1": jnp.zeros((1, hidden), jnp.float32),
            "w2": nrm((hidden, emb_dim)),
            "b2": jnp.zeros((1, emb_dim), jnp.float32),
        })
    return params


# ---------------------------------------------------------------------------
if __name__ == "__main__":
    # Small, forward-consistent shapes: image 16x16, patch 2 -> 64 patches.
    image_size, patch_size = 16, 2
    emb_dim, num_layer, num_head = 32, 2, 2
    num_classes = 10
    batch = 2
    num_patches = (image_size // patch_size) ** 2

    key = jax.random.PRNGKey(0)
    k_img, k_par = jax.random.split(key)
    img = jax.random.normal(k_img, (batch, 3, image_size, image_size),
                            dtype=jnp.float32)
    params = init_params(k_par, emb_dim=emb_dim, num_layers=num_layer,
                         num_patches=num_patches, patch_size=patch_size,
                         num_classes=num_classes)

    fwd = jax.jit(functools.partial(vit_classifier_forward,
                                    patch_size=patch_size, num_heads=num_head))
    logits = jax.block_until_ready(fwd(img, params))
    assert logits.shape == (batch, num_classes)
    assert bool(jnp.all(jnp.isfinite(logits)))
    print("KERNEL_OK")
</pallas_src>

<mosaic_0001>
module attributes {stable_mosaic.version = 11 : i64} {
  func.func @fused_vit_kernel(%arg0: i32, %arg1: i32, %arg2: memref<2x80x128xbf16, #tpu.memory_space<vmem>>, %arg3: memref<128x32xbf16, #tpu.memory_space<vmem>>, %arg4: memref<80x32xf32, #tpu.memory_space<vmem>>, %arg5: memref<1x1x32xf32, #tpu.memory_space<vmem>>, %arg6: memref<1x1x32xf32, #tpu.memory_space<vmem>>, %arg7: memref<1x32x32xbf16, #tpu.memory_space<vmem>>, %arg8: memref<1x32x32xbf16, #tpu.memory_space<vmem>>, %arg9: memref<1x32x32xbf16, #tpu.memory_space<vmem>>, %arg10: memref<1x32x32xbf16, #tpu.memory_space<vmem>>, %arg11: memref<1x1x32xf32, #tpu.memory_space<vmem>>, %arg12: memref<1x1x32xf32, #tpu.memory_space<vmem>>, %arg13: memref<1x1x32xf32, #tpu.memory_space<vmem>>, %arg14: memref<1x32x128xbf16, #tpu.memory_space<vmem>>, %arg15: memref<1x1x128xf32, #tpu.memory_space<vmem>>, %arg16: memref<1x128x32xbf16, #tpu.memory_space<vmem>>, %arg17: memref<1x1x32xf32, #tpu.memory_space<vmem>>, %arg18: memref<1x32xf32, #tpu.memory_space<vmem>>, %arg19: memref<1x32xf32, #tpu.memory_space<vmem>>, %arg20: memref<32x128xbf16, #tpu.memory_space<vmem>>, %arg21: memref<1x128xf32, #tpu.memory_space<vmem>>, %arg22: memref<2x1x128xf32, #tpu.memory_space<vmem>>, %arg23: memref<2x80x32xf32, #tpu.memory_space<vmem>>) attributes {dimension_semantics = [#tpu.dimension_semantics<parallel>, #tpu.dimension_semantics<arbitrary>], iteration_bounds = array<i64: 1, 2>, scalar_prefetch = 0 : i64, scratch_operands = 1 : i64, tpu.core_type = #tpu.core_type<tc>, window_params = [{transform_indices = @transform_0, window_bounds = array<i64: 2, 80, 128>}, {pipeline_mode = #tpu.pipeline_mode<synchronous>, transform_indices = @transform_1, window_bounds = array<i64: 128, 32>}, {pipeline_mode = #tpu.pipeline_mode<synchronous>, transform_indices = @transform_2, window_bounds = array<i64: 80, 32>}, {transform_indices = @transform_3, window_bounds = array<i64: 1, 1, 32>}, {transform_indices = @transform_4, window_bounds = array<i64: 1, 1, 32>}, {transform_indices = @transform_5, window_bounds = array<i64: 1, 32, 32>}, {transform_indices = @transform_6, window_bounds = array<i64: 1, 32, 32>}, {transform_indices = @transform_7, window_bounds = array<i64: 1, 32, 32>}, {transform_indices = @transform_8, window_bounds = array<i64: 1, 32, 32>}, {transform_indices = @transform_9, window_bounds = array<i64: 1, 1, 32>}, {transform_indices = @transform_10, window_bounds = array<i64: 1, 1, 32>}, {transform_indices = @transform_11, window_bounds = array<i64: 1, 1, 32>}, {transform_indices = @transform_12, window_bounds = array<i64: 1, 32, 128>}, {transform_indices = @transform_13, window_bounds = array<i64: 1, 1, 128>}, {transform_indices = @transform_14, window_bounds = array<i64: 1, 128, 32>}, {transform_indices = @transform_15, window_bounds = array<i64: 1, 1, 32>}, {pipeline_mode = #tpu.pipeline_mode<synchronous>, transform_indices = @transform_16, window_bounds = array<i64: 1, 32>}, {pipeline_mode = #tpu.pipeline_mode<synchronous>, transform_indices = @transform_17, window_bounds = array<i64: 1, 32>}, {pipeline_mode = #tpu.pipeline_mode<synchronous>, transform_indices = @transform_18, window_bounds = array<i64: 32, 128>}, {pipeline_mode = #tpu.pipeline_mode<synchronous>, transform_indices = @transform_19, window_bounds = array<i64: 1, 128>}, {transform_indices = @transform_20, window_bounds = array<i64: 2, 1, 128>}]} {
    %c0_i32 = arith.constant 0 : i32
    %0 = arith.cmpi eq, %arg1, %c0_i32 : i32
    %1 = arith.extui %0 : i1 to i32
    %c0_i32_0 = arith.constant 0 : i32
    %2 = arith.cmpi ne, %1, %c0_i32_0 : i32
    scf.if %2 {
      %c0_75 = arith.constant 0 : index
      %c0_76 = arith.constant 0 : index
      %c0_77 = arith.constant 0 : index
      %169 = vector.load %arg2[%c0_75, %c0_76, %c0_77] : memref<2x80x128xbf16, #tpu.memory_space<vmem>>, vector<2x80x128xbf16>
      %170 = vector.shape_cast %169 : vector<2x80x128xbf16> to vector<160x128xbf16>
      %c0_78 = arith.constant 0 : index
      %c0_79 = arith.constant 0 : index
      %171 = vector.load %arg3[%c0_78, %c0_79] : memref<128x32xbf16, #tpu.memory_space<vmem>>, vector<128x32xbf16>
      %cst_80 = arith.constant dense<0.000000e+00> : vector<160x32xf32>
      %172 = tpu.matmul %170, %171, %cst_80 {dimension_numbers = #tpu.dot_dimension_numbers<[1], [0], [0], [1], [0, 0, 1, 1], [], []>} : vector<160x128xbf16>, vector<128x32xbf16>, vector<160x32xf32> -> vector<160x32xf32>
      %173 = vector.shape_cast %172 : vector<160x32xf32> to vector<2x80x32xf32>
      %c0_81 = arith.constant 0 : index
      %c0_82 = arith.constant 0 : index
      %174 = vector.load %arg4[%c0_81, %c0_82] : memref<80x32xf32, #tpu.memory_space<vmem>>, vector<80x32xf32>
      %175 = vector.shape_cast %174 : vector<80x32xf32> to vector<1x80x32xf32>
      %176 = vector.broadcast %175 : vector<1x80x32xf32> to vector<2x80x32xf32>
      %177 = arith.addf %173, %176 : vector<2x80x32xf32>
      %c0_83 = arith.constant 0 : index
      %c0_84 = arith.constant 0 : index
      %c0_85 = arith.constant 0 : index
      %178 = vector.load %arg23[%c0_83, %c0_84, %c0_85] : memref<2x80x32xf32, #tpu.memory_space<vmem>>, vector<2x80x32xf32>
      tpu.vector_store %arg23[%c0_83, %c0_84, %c0_85], %177 {strides = array<i32>} : memref<2x80x32xf32, #tpu.memory_space<vmem>>, vector<2x80x32xf32>,
    } else {
    }
    %c0 = arith.constant 0 : index
    %c0_1 = arith.constant 0 : index
    %c0_2 = arith.constant 0 : index
    %3 = vector.load %arg23[%c0, %c0_1, %c0_2] : memref<2x80x32xf32, #tpu.memory_space<vmem>>, vector<2x80x32xf32>
    %c0_3 = arith.constant 0 : index
    %c0_4 = arith.constant 0 : index
    %c0_5 = arith.constant 0 : index
    %4 = vector.load %arg5[%c0_3, %c0_4, %c0_5] : memref<1x1x32xf32, #tpu.memory_space<vmem>>, vector<1x1x32xf32>
    %5 = vector.shape_cast %4 : vector<1x1x32xf32> to vector<1x32xf32>
    %c0_6 = arith.constant 0 : index
    %c0_7 = arith.constant 0 : index
    %c0_8 = arith.constant 0 : index
    %6 = vector.load %arg6[%c0_6, %c0_7, %c0_8] : memref<1x1x32xf32, #tpu.memory_space<vmem>>, vector<1x1x32xf32>
    %7 = vector.shape_cast %6 : vector<1x1x32xf32> to vector<1x32xf32>
    %cst = arith.constant dense<0.000000e+00> : vector<2x80xf32>
    %8 = vector.multi_reduction <add>, %3, %cst [2] : vector<2x80x32xf32> to vector<2x80xf32>
    %9 = vector.shape_cast %8 : vector<2x80xf32> to vector<2x80x1xf32>
    %cst_9 = arith.constant 3.200000e+01 : f32
    %10 = vector.broadcast %cst_9 : f32 to vector<2x80x1xf32>
    %11 = arith.divf %9, %10 : vector<2x80x1xf32>
    %12 = vector.broadcast %11 : vector<2x80x1xf32> to vector<2x80x32xf32>
    %13 = arith.subf %3, %12 : vector<2x80x32xf32>
    %14 = arith.mulf %13, %13 : vector<2x80x32xf32>
    %cst_10 = arith.constant dense<0.000000e+00> : vector<2x80xf32>
    %15 = vector.multi_reduction <add>, %14, %cst_10 [2] : vector<2x80x32xf32> to vector<2x80xf32>
    %16 = vector.shape_cast %15 : vector<2x80xf32> to vector<2x80x1xf32>
    %cst_11 = arith.constant 3.200000e+01 : f32
    %17 = vector.broadcast %cst_11 : f32 to vector<2x80x1xf32>
    %18 = arith.divf %16, %17 : vector<2x80x1xf32>
    %19 = vector.broadcast %11 : vector<2x80x1xf32> to vector<2x80x32xf32>
    %20 = arith.subf %3, %19 : vector<2x80x32xf32>
    %cst_12 = arith.constant 9.99999974E-6 : f32
    %21 = vector.broadcast %cst_12 : f32 to vector<2x80x1xf32>
    %22 = arith.addf %18, %21 : vector<2x80x1xf32>
    %23 = math.rsqrt %22 : vector<2x80x1xf32>
    %24 = vector.broadcast %23 : vector<2x80x1xf32> to vector<2x80x32xf32>
    %25 = arith.mulf %20, %24 : vector<2x80x32xf32>
    %26 = vector.shape_cast %5 : vector<1x32xf32> to vector<1x1x32xf32>
    %27 = vector.broadcast %26 : vector<1x1x32xf32> to vector<2x80x32xf32>
    %28 = arith.mulf %25, %27 : vector<2x80x32xf32>
    %29 = vector.shape_cast %7 : vector<1x32xf32> to vector<1x1x32xf32>
    %30 = vector.broadcast %29 : vector<1x1x32xf32> to vector<2x80x32xf32>
    %31 = arith.addf %28, %30 : vector<2x80x32xf32>
    %32 = arith.truncf %31 : vector<2x80x32xf32> to vector<2x80x32xbf16>
    %33 = vector.shape_cast %32 : vector<2x80x32xbf16> to vector<160x32xbf16>
    %c0_13 = arith.constant 0 : index
    %c0_14 = arith.constant 0 : index
    %c0_15 = arith.constant 0 : index
    %34 = vector.load %arg7[%c0_13, %c0_14, %c0_15] : memref<1x32x32xbf16, #tpu.memory_space<vmem>>, vector<1x32x32xbf16>
    %35 = vector.shape_cast %34 : vector<1x32x32xbf16> to vector<32x32xbf16>
    %cst_16 = arith.constant dense<0.000000e+00> : vector<160x32xf32>
    %36 = tpu.matmul %33, %35, %cst_16 {dimension_numbers = #tpu.dot_dimension_numbers<[1], [0], [0], [1], [0, 0, 1, 1], [], []>} : vector<160x32xbf16>, vector<32x32xbf16>, vector<160x32xf32> -> vector<160x32xf32>
    %c0_17 = arith.constant 0 : index
    %c0_18 = arith.constant 0 : index
    %c0_19 = arith.constant 0 : index
    %37 = vector.load %arg8[%c0_17, %c0_18, %c0_19] : memref<1x32x32xbf16, #tpu.memory_space<vmem>>, vector<1x32x32xbf16>
    %38 = vector.shape_cast %37 : vector<1x32x32xbf16> to vector<32x32xbf16>
    %cst_20 = arith.constant dense<0.000000e+00> : vector<160x32xf32>
    %39 = tpu.matmul %33, %38, %cst_20 {dimension_numbers = #tpu.dot_dimension_numbers<[1], [0], [0], [1], [0, 0, 1, 1], [], []>} : vector<160x32xbf16>, vector<32x32xbf16>, vector<160x32xf32> -> vector<160x32xf32>
    %c0_21 = arith.constant 0 : index
    %c0_22 = arith.constant 0 : index
    %c0_23 = arith.constant 0 : index
    %40 = vector.load %arg9[%c0_21, %c0_22, %c0_23] : memref<1x32x32xbf16, #tpu.memory_space<vmem>>, vector<1x32x32xbf16>
    %41 = vector.shape_cast %40 : vector<1x32x32xbf16> to vector<32x32xbf16>
    %cst_24 = arith.constant dense<0.000000e+00> : vector<160x32xf32>
    %42 = tpu.matmul %33, %41, %cst_24 {dimension_numbers = #tpu.dot_dimension_numbers<[1], [0], [0], [1], [0, 0, 1, 1], [], []>} : vector<160x32xbf16>, vector<32x32xbf16>, vector<160x32xf32> -> vector<160x32xf32>
    %43 = arith.truncf %36 : vector<160x32xf32> to vector<160x32xbf16>
    %44 = vector.shape_cast %43 : vector<160x32xbf16> to vector<2x80x32xbf16>
    %45 = arith.truncf %39 : vector<160x32xf32> to vector<160x32xbf16>
    %46 = vector.shape_cast %45 : vector<160x32xbf16> to vector<2x80x32xbf16>
    %47 = arith.truncf %42 : vector<160x32xf32> to vector<160x32xbf16>
    %48 = vector.shape_cast %47 : vector<160x32xbf16> to vector<2x80x32xbf16>
    %49 = tpu.iota {dimensions = array<i32: 2>} : vector<1x1x80xi32>
    %c65_i32 = arith.constant 65 : i32
    %50 = vector.broadcast %c65_i32 : i32 to vector<1x1x80xi32>
    %51 = arith.cmpi slt, %49, %50 : vector<1x1x80xi32>
    %52 = vector.extract_strided_slice %44 {offsets = [0, 0, 0], sizes = [2, 80, 16], strides = [1, 1, 1]} : vector<2x80x32xbf16> to vector<2x80x16xbf16>
    %53 = vector.extract_strided_slice %46 {offsets = [0, 0, 0], sizes = [2, 80, 16], strides = [1, 1, 1]} : vector<2x80x32xbf16> to vector<2x80x16xbf16>
    %54 = vector.extract_strided_slice %48 {offsets = [0, 0, 0], sizes = [2, 80, 16], strides = [1, 1, 1]} : vector<2x80x32xbf16> to vector<2x80x16xbf16>
    "tpu.trace_start"() <{level = 10 : i32, message = "bqd,bkd->bqk"}> : () -> ()
    %cst_25 = arith.constant dense<0.000000e+00> : vector<2x80x80xf32>
    %55 = tpu.matmul %52, %53, %cst_25 {dimension_numbers = #tpu.dot_dimension_numbers<[2], [2], [1], [1], [0, 0, 0, 1, 1, 1], [0], [0]>} : vector<2x80x16xbf16>, vector<2x80x16xbf16>, vector<2x80x80xf32> -> vector<2x80x80xf32>
    %cst_26 = arith.constant -1.000000e+30 : f32
    "tpu.trace_stop"() : () -> ()
    %56 = vector.shape_cast %51 : vector<1x1x80xi1> to vector<1x1x80xi1>
    %57 = vector.broadcast %56 : vector<1x1x80xi1> to vector<2x80x80xi1>
    %58 = vector.broadcast %cst_26 : f32 to vector<2x80x80xf32>
    %59 = arith.select %57, %55, %58 : vector<2x80x80xi1>, vector<2x80x80xf32>
    %cst_27 = arith.constant dense<0xFF800000> : vector<2x80xf32>
    %60 = vector.multi_reduction <maximumf>, %59, %cst_27 [2] : vector<2x80x80xf32> to vector<2x80xf32>
    %61 = vector.shape_cast %60 : vector<2x80xf32> to vector<2x80x1xf32>
    %62 = vector.broadcast %61 : vector<2x80x1xf32> to vector<2x80x80xf32>
    %63 = arith.subf %59, %62 : vector<2x80x80xf32>
    %64 = math.exp %63 : vector<2x80x80xf32>
    %cst_28 = arith.constant dense<0.000000e+00> : vector<2x80xf32>
    %65 = vector.multi_reduction <add>, %64, %cst_28 [2] : vector<2x80x80xf32> to vector<2x80xf32>
    %66 = vector.shape_cast %65 : vector<2x80xf32> to vector<2x80x1xf32>
    %67 = tpu.reciprocal %66 {approx = true} : vector<2x80x1xf32> -> vector<2x80x1xf32>
    %68 = vector.broadcast %67 : vector<2x80x1xf32> to vector<2x80x80xf32>
    %69 = arith.mulf %64, %68 : vector<2x80x80xf32>
    %70 = arith.truncf %69 : vector<2x80x80xf32> to vector<2x80x80xbf16>
    "tpu.trace_start"() <{level = 10 : i32, message = "bqk,bkd->bqd"}> : () -> ()
    %cst_29 = arith.constant dense<0.000000e+00> : vector<2x80x16xf32>
    %71 = tpu.matmul %70, %54, %cst_29 {dimension_numbers = #tpu.dot_dimension_numbers<[2], [1], [1], [2], [0, 0, 0, 1, 1, 2], [0], [0]>} : vector<2x80x80xbf16>, vector<2x80x16xbf16>, vector<2x80x16xf32> -> vector<2x80x16xf32>
    "tpu.trace_stop"() : () -> ()
    %72 = vector.extract_strided_slice %44 {offsets = [0, 0, 16], sizes = [2, 80, 16], strides = [1, 1, 1]} : vector<2x80x32xbf16> to vector<2x80x16xbf16>
    %73 = vector.extract_strided_slice %46 {offsets = [0, 0, 16], sizes = [2, 80, 16], strides = [1, 1, 1]} : vector<2x80x32xbf16> to vector<2x80x16xbf16>
    %74 = vector.extract_strided_slice %48 {offsets = [0, 0, 16], sizes = [2, 80, 16], strides = [1, 1, 1]} : vector<2x80x32xbf16> to vector<2x80x16xbf16>
    "tpu.trace_start"() <{level = 10 : i32, message = "bqd,bkd->bqk"}> : () -> ()
    %cst_30 = arith.constant dense<0.000000e+00> : vector<2x80x80xf32>
    %75 = tpu.matmul %72, %73, %cst_30 {dimension_numbers = #tpu.dot_dimension_numbers<[2], [2], [1], [1], [0, 0, 0, 1, 1, 1], [0], [0]>} : vector<2x80x16xbf16>, vector<2x80x16xbf16>, vector<2x80x80xf32> -> vector<2x80x80xf32>
    %cst_31 = arith.constant -1.000000e+30 : f32
    "tpu.trace_stop"() : () -> ()
    %76 = vector.shape_cast %51 : vector<1x1x80xi1> to vector<1x1x80xi1>
    %77 = vector.broadcast %76 : vector<1x1x80xi1> to vector<2x80x80xi1>
    %78 = vector.broadcast %cst_31 : f32 to vector<2x80x80xf32>
    %79 = arith.select %77, %75, %78 : vector<2x80x80xi1>, vector<2x80x80xf32>
    %cst_32 = arith.constant dense<0xFF800000> : vector<2x80xf32>
    %80 = vector.multi_reduction <maximumf>, %79, %cst_32 [2] : vector<2x80x80xf32> to vector<2x80xf32>
    %81 = vector.shape_cast %80 : vector<2x80xf32> to vector<2x80x1xf32>
    %82 = vector.broadcast %81 : vector<2x80x1xf32> to vector<2x80x80xf32>
    %83 = arith.subf %79, %82 : vector<2x80x80xf32>
    %84 = math.exp %83 : vector<2x80x80xf32>
    %cst_33 = arith.constant dense<0.000000e+00> : vector<2x80xf32>
    %85 = vector.multi_reduction <add>, %84, %cst_33 [2] : vector<2x80x80xf32> to vector<2x80xf32>
    %86 = vector.shape_cast %85 : vector<2x80xf32> to vector<2x80x1xf32>
    %87 = tpu.reciprocal %86 {approx = true} : vector<2x80x1xf32> -> vector<2x80x1xf32>
    %88 = vector.broadcast %87 : vector<2x80x1xf32> to vector<2x80x80xf32>
    %89 = arith.mulf %84, %88 : vector<2x80x80xf32>
    %90 = arith.truncf %89 : vector<2x80x80xf32> to vector<2x80x80xbf16>
    "tpu.trace_start"() <{level = 10 : i32, message = "bqk,bkd->bqd"}> : () -> ()
    %cst_34 = arith.constant dense<0.000000e+00> : vector<2x80x16xf32>
    %91 = tpu.matmul %90, %74, %cst_34 {dimension_numbers = #tpu.dot_dimension_numbers<[2], [1], [1], [2], [0, 0, 0, 1, 1, 2], [0], [0]>} : vector<2x80x80xbf16>, vector<2x80x16xbf16>, vector<2x80x16xf32> -> vector<2x80x16xf32>
    "tpu.trace_stop"() : () -> ()
    %92 = tpu.concatenate %71, %91 in 2 : vector<2x80x16xf32>, vector<2x80x16xf32> -> vector<2x80x32xf32>
    %93 = arith.truncf %92 : vector<2x80x32xf32> to vector<2x80x32xbf16>
    %94 = vector.shape_cast %93 : vector<2x80x32xbf16> to vector<160x32xbf16>
    %c0_35 = arith.constant 0 : index
    %c0_36 = arith.constant 0 : index
    %c0_37 = arith.constant 0 : index
    %95 = vector.load %arg10[%c0_35, %c0_36, %c0_37] : memref<1x32x32xbf16, #tpu.memory_space<vmem>>, vector<1x32x32xbf16>
    %96 = vector.shape_cast %95 : vector<1x32x32xbf16> to vector<32x32xbf16>
    %cst_38 = arith.constant dense<0.000000e+00> : vector<160x32xf32>
    %97 = tpu.matmul %94, %96, %cst_38 {dimension_numbers = #tpu.dot_dimension_numbers<[1], [0], [0], [1], [0, 0, 1, 1], [], []>} : vector<160x32xbf16>, vector<32x32xbf16>, vector<160x32xf32> -> vector<160x32xf32>
    %98 = vector.shape_cast %97 : vector<160x32xf32> to vector<2x80x32xf32>
    %99 = arith.addf %3, %98 : vector<2x80x32xf32>
    %c0_39 = arith.constant 0 : index
    %c0_40 = arith.constant 0 : index
    %c0_41 = arith.constant 0 : index
    %100 = vector.load %arg11[%c0_39, %c0_40, %c0_41] : memref<1x1x32xf32, #tpu.memory_space<vmem>>, vector<1x1x32xf32>
    %101 = vector.shape_cast %100 : vector<1x1x32xf32> to vector<1x32xf32>
    %102 = vector.shape_cast %101 : vector<1x32xf32> to vector<1x1x32xf32>
    %103 = vector.broadcast %102 : vector<1x1x32xf32> to vector<2x80x32xf32>
    %104 = arith.addf %99, %103 : vector<2x80x32xf32>
    %c0_42 = arith.constant 0 : index
    %c0_43 = arith.constant 0 : index
    %c0_44 = arith.constant 0 : index
    %105 = vector.load %arg12[%c0_42, %c0_43, %c0_44] : memref<1x1x32xf32, #tpu.memory_space<vmem>>, vector<1x1x32xf32>
    %106 = vector.shape_cast %105 : vector<1x1x32xf32> to vector<1x32xf32>
    %c0_45 = arith.constant 0 : index
    %c0_46 = arith.constant 0 : index
    %c0_47 = arith.constant 0 : index
    %107 = vector.load %arg13[%c0_45, %c0_46, %c0_47] : memref<1x1x32xf32, #tpu.memory_space<vmem>>, vector<1x1x32xf32>
    %108 = vector.shape_cast %107 : vector<1x1x32xf32> to vector<1x32xf32>
    %cst_48 = arith.constant dense<0.000000e+00> : vector<2x80xf32>
    %109 = vector.multi_reduction <add>, %104, %cst_48 [2] : vector<2x80x32xf32> to vector<2x80xf32>
    %110 = vector.shape_cast %109 : vector<2x80xf32> to vector<2x80x1xf32>
    %cst_49 = arith.constant 3.200000e+01 : f32
    %111 = vector.broadcast %cst_49 : f32 to vector<2x80x1xf32>
    %112 = arith.divf %110, %111 : vector<2x80x1xf32>
    %113 = vector.broadcast %112 : vector<2x80x1xf32> to vector<2x80x32xf32>
    %114 = arith.subf %104, %113 : vector<2x80x32xf32>
    %115 = arith.mulf %114, %114 : vector<2x80x32xf32>
    %cst_50 = arith.constant dense<0.000000e+00> : vector<2x80xf32>
    %116 = vector.multi_reduction <add>, %115, %cst_50 [2] : vector<2x80x32xf32> to vector<2x80xf32>
    %117 = vector.shape_cast %116 : vector<2x80xf32> to vector<2x80x1xf32>
    %cst_51 = arith.constant 3.200000e+01 : f32
    %118 = vector.broadcast %cst_51 : f32 to vector<2x80x1xf32>
    %119 = arith.divf %117, %118 : vector<2x80x1xf32>
    %120 = vector.broadcast %112 : vector<2x80x1xf32> to vector<2x80x32xf32>
    %121 = arith.subf %104, %120 : vector<2x80x32xf32>
    %cst_52 = arith.constant 9.99999974E-6 : f32
    %122 = vector.broadcast %cst_52 : f32 to vector<2x80x1xf32>
    %123 = arith.addf %119, %122 : vector<2x80x1xf32>
    %124 = math.rsqrt %123 : vector<2x80x1xf32>
    %125 = vector.broadcast %124 : vector<2x80x1xf32> to vector<2x80x32xf32>
    %126 = arith.mulf %121, %125 : vector<2x80x32xf32>
    %127 = vector.shape_cast %106 : vector<1x32xf32> to vector<1x1x32xf32>
    %128 = vector.broadcast %127 : vector<1x1x32xf32> to vector<2x80x32xf32>
    %129 = arith.mulf %126, %128 : vector<2x80x32xf32>
    %130 = vector.shape_cast %108 : vector<1x32xf32> to vector<1x1x32xf32>
    %131 = vector.broadcast %130 : vector<1x1x32xf32> to vector<2x80x32xf32>
    %132 = arith.addf %129, %131 : vector<2x80x32xf32>
    %133 = arith.truncf %132 : vector<2x80x32xf32> to vector<2x80x32xbf16>
    %134 = vector.shape_cast %133 : vector<2x80x32xbf16> to vector<160x32xbf16>
    %c0_53 = arith.constant 0 : index
    %c0_54 = arith.constant 0 : index
    %c0_55 = arith.constant 0 : index
    %135 = vector.load %arg14[%c0_53, %c0_54, %c0_55] : memref<1x32x128xbf16, #tpu.memory_space<vmem>>, vector<1x32x128xbf16>
    %136 = vector.shape_cast %135 : vector<1x32x128xbf16> to vector<32x128xbf16>
    %cst_56 = arith.constant dense<0.000000e+00> : vector<160x128xf32>
    %137 = tpu.matmul %134, %136, %cst_56 {dimension_numbers = #tpu.dot_dimension_numbers<[1], [0], [0], [1], [0, 0, 1, 1], [], []>} : vector<160x32xbf16>, vector<32x128xbf16>, vector<160x128xf32> -> vector<160x128xf32>
    %c0_57 = arith.constant 0 : index
    %c0_58 = arith.constant 0 : index
    %c0_59 = arith.constant 0 : index
    %138 = vector.load %arg15[%c0_57, %c0_58, %c0_59] : memref<1x1x128xf32, #tpu.memory_space<vmem>>, vector<1x1x128xf32>
    %139 = vector.shape_cast %138 : vector<1x1x128xf32> to vector<1x128xf32>
    %140 = vector.broadcast %139 : vector<1x128xf32> to vector<160x128xf32>
    %141 = arith.addf %137, %140 : vector<160x128xf32>
    %142 = arith.mulf %141, %141 : vector<160x128xf32>
    %143 = arith.mulf %141, %142 : vector<160x128xf32>
    %cst_60 = arith.constant 4.471500e-02 : f32
    %144 = vector.broadcast %cst_60 : f32 to vector<160x128xf32>
    %145 = arith.mulf %144, %143 : vector<160x128xf32>
    %146 = arith.addf %141, %145 : vector<160x128xf32>
    %cst_61 = arith.constant 0.797884583 : f32
    %147 = vector.broadcast %cst_61 : f32 to vector<160x128xf32>
    %148 = arith.mulf %147, %146 : vector<160x128xf32>
    %149 = math.tanh %148 : vector<160x128xf32>
    %cst_62 = arith.constant 1.000000e+00 : f32
    %150 = vector.broadcast %cst_62 : f32 to vector<160x128xf32>
    %151 = arith.addf %150, %149 : vector<160x128xf32>
    %cst_63 = arith.constant 5.000000e-01 : f32
    %152 = vector.broadcast %cst_63 : f32 to vector<160x128xf32>
    %153 = arith.mulf %152, %151 : vector<160x128xf32>
    %154 = arith.mulf %141, %153 : vector<160x128xf32>
    %155 = arith.truncf %154 : vector<160x128xf32> to vector<160x128xbf16>
    %c0_64 = arith.constant 0 : index
    %c0_65 = arith.constant 0 : index
    %c0_66 = arith.constant 0 : index
    %156 = vector.load %arg16[%c0_64, %c0_65, %c0_66] : memref<1x128x32xbf16, #tpu.memory_space<vmem>>, vector<1x128x32xbf16>
    %157 = vector.shape_cast %156 : vector<1x128x32xbf16> to vector<128x32xbf16>
    %cst_67 = arith.constant dense<0.000000e+00> : vector<160x32xf32>
    %158 = tpu.matmul %155, %157, %cst_67 {dimension_numbers = #tpu.dot_dimension_numbers<[1], [0], [0], [1], [0, 0, 1, 1], [], []>} : vector<160x128xbf16>, vector<128x32xbf16>, vector<160x32xf32> -> vector<160x32xf32>
    %c0_68 = arith.constant 0 : index
    %c0_69 = arith.constant 0 : index
    %c0_70 = arith.constant 0 : index
    %159 = vector.load %arg17[%c0_68, %c0_69, %c0_70] : memref<1x1x32xf32, #tpu.memory_space<vmem>>, vector<1x1x32xf32>
    %160 = vector.shape_cast %159 : vector<1x1x32xf32> to vector<1x32xf32>
    %161 = vector.broadcast %160 : vector<1x32xf32> to vector<160x32xf32>
    %162 = arith.addf %158, %161 : vector<160x32xf32>
    %163 = vector.shape_cast %162 : vector<160x32xf32> to vector<2x80x32xf32>
    %164 = arith.addf %104, %163 : vector<2x80x32xf32>
    %c0_71 = arith.constant 0 : index
    %c0_72 = arith.constant 0 : index
    %c0_73 = arith.constant 0 : index
    %165 = vector.load %arg23[%c0_71, %c0_72, %c0_73] : memref<2x80x32xf32, #tpu.memory_space<vmem>>, vector<2x80x32xf32>
    tpu.vector_store %arg23[%c0_71, %c0_72, %c0_73], %164 {strides = array<i32>} : memref<2x80x32xf32, #tpu.memory_space<vmem>>, vector<2x80x32xf32>,
    %c1_i32 = arith.constant 1 : i32
    %166 = arith.cmpi eq, %arg1, %c1_i32 : i32
    %167 = arith.extui %166 : i1 to i32
    %c0_i32_74 = arith.constant 0 : i32
    %168 = arith.cmpi ne, %167, %c0_i32_74 : i32
    scf.if %168 {
      %169 = vector.extract_strided_slice %164 {offsets = [0, 0, 0], sizes = [2, 1, 32], strides = [1, 1, 1]} : vector<2x80x32xf32> to vector<2x1x32xf32>
      %170 = vector.shape_cast %169 : vector<2x1x32xf32> to vector<2x32xf32>
      %c0_75 = arith.constant 0 : index
      %c0_76 = arith.constant 0 : index
      %171 = vector.load %arg18[%c0_75, %c0_76] : memref<1x32xf32, #tpu.memory_space<vmem>>, vector<1x32xf32>
      %c0_77 = arith.constant 0 : index
      %c0_78 = arith.constant 0 : index
      %172 = vector.load %arg19[%c0_77, %c0_78] : memref<1x32xf32, #tpu.memory_space<vmem>>, vector<1x32xf32>
      %cst_79 = arith.constant dense<0.000000e+00> : vector<2xf32>
      %173 = vector.multi_reduction <add>, %170, %cst_79 [1] : vector<2x32xf32> to vector<2xf32>
      %174 = vector.shape_cast %173 : vector<2xf32> to vector<2x1xf32>
      %cst_80 = arith.constant 3.200000e+01 : f32
      %175 = vector.broadcast %cst_80 : f32 to vector<2x1xf32>
      %176 = arith.divf %174, %175 : vector<2x1xf32>
      %177 = vector.broadcast %176 : vector<2x1xf32> to vector<2x32xf32>
      %178 = arith.subf %170, %177 : vector<2x32xf32>
      %179 = arith.mulf %178, %178 : vector<2x32xf32>
      %cst_81 = arith.constant dense<0.000000e+00> : vector<2xf32>
      %180 = vector.multi_reduction <add>, %179, %cst_81 [1] : vector<2x32xf32> to vector<2xf32>
      %181 = vector.shape_cast %180 : vector<2xf32> to vector<2x1xf32>
      %cst_82 = arith.constant 3.200000e+01 : f32
      %182 = vector.broadcast %cst_82 : f32 to vector<2x1xf32>
      %183 = arith.divf %181, %182 : vector<2x1xf32>
      %184 = vector.broadcast %176 : vector<2x1xf32> to vector<2x32xf32>
      %185 = arith.subf %170, %184 : vector<2x32xf32>
      %cst_83 = arith.constant 9.99999974E-6 : f32
      %186 = vector.broadcast %cst_83 : f32 to vector<2x1xf32>
      %187 = arith.addf %183, %186 : vector<2x1xf32>
      %188 = math.rsqrt %187 : vector<2x1xf32>
      %189 = vector.broadcast %188 : vector<2x1xf32> to vector<2x32xf32>
      %190 = arith.mulf %185, %189 : vector<2x32xf32>
      %191 = vector.broadcast %171 : vector<1x32xf32> to vector<2x32xf32>
      %192 = arith.mulf %190, %191 : vector<2x32xf32>
      %193 = vector.broadcast %172 : vector<1x32xf32> to vector<2x32xf32>
      %194 = arith.addf %192, %193 : vector<2x32xf32>
      %195 = arith.truncf %194 : vector<2x32xf32> to vector<2x32xbf16>
      %c0_84 = arith.constant 0 : index
      %c0_85 = arith.constant 0 : index
      %196 = vector.load %arg20[%c0_84, %c0_85] : memref<32x128xbf16, #tpu.memory_space<vmem>>, vector<32x128xbf16>
      %cst_86 = arith.constant dense<0.000000e+00> : vector<2x128xf32>
      %197 = tpu.matmul %195, %196, %cst_86 {dimension_numbers = #tpu.dot_dimension_numbers<[1], [0], [0], [1], [0, 0, 1, 1], [], []>} : vector<2x32xbf16>, vector<32x128xbf16>, vector<2x128xf32> -> vector<2x128xf32>
      %c0_87 = arith.constant 0 : index
      %c0_88 = arith.constant 0 : index
      %198 = vector.load %arg21[%c0_87, %c0_88] : memref<1x128xf32, #tpu.memory_space<vmem>>, vector<1x128xf32>
      %199 = vector.broadcast %198 : vector<1x128xf32> to vector<2x128xf32>
      %200 = arith.addf %197, %199 : vector<2x128xf32>
      %201 = vector.shape_cast %200 : vector<2x128xf32> to vector<2x1x128xf32>
      %c0_89 = arith.constant 0 : index
      %c0_90 = arith.constant 0 : index
      %c0_91 = arith.constant 0 : index
      %202 = vector.load %arg22[%c0_89, %c0_90, %c0_91] : memref<2x1x128xf32, #tpu.memory_space<vmem>>, vector<2x1x128xf32>
      tpu.vector_store %arg22[%c0_89, %c0_90, %c0_91], %201 {strides = array<i32>} : memref<2x1x128xf32, #tpu.memory_space<vmem>>, vector<2x1x128xf32>,
    } else {
    }
    return
  }
  func.func @transform_0(%arg0: i32, %arg1: i32) -> (i32, i32, i32) {
    %c0_i32 = arith.constant 0 : i32
    %c0_i32_0 = arith.constant 0 : i32
    %c0_i32_1 = arith.constant 0 : i32
    return %arg0, %c0_i32, %c0_i32_0 : i32, i32, i32
  }
  func.func @transform_1(%arg0: i32, %arg1: i32) -> (i32, i32) {
    %c0_i32 = arith.constant 0 : i32
    %c0_i32_0 = arith.constant 0 : i32
    %c0_i32_1 = arith.constant 0 : i32
    return %c0_i32, %c0_i32_0 : i32, i32
  }
  func.func @transform_2(%arg0: i32, %arg1: i32) -> (i32, i32) {
    %c0_i32 = arith.constant 0 : i32
    %c0_i32_0 = arith.constant 0 : i32
    %c0_i32_1 = arith.constant 0 : i32
    return %c0_i32, %c0_i32_0 : i32, i32
  }
  func.func @transform_3(%arg0: i32, %arg1: i32) -> (i32, i32, i32) {
    %c0_i32 = arith.constant 0 : i32
    %c0_i32_0 = arith.constant 0 : i32
    %c0_i32_1 = arith.constant 0 : i32
    return %arg1, %c0_i32, %c0_i32_0 : i32, i32, i32
  }
  func.func @transform_4(%arg0: i32, %arg1: i32) -> (i32, i32, i32) {
    %c0_i32 = arith.constant 0 : i32
    %c0_i32_0 = arith.constant 0 : i32
    %c0_i32_1 = arith.constant 0 : i32
    return %arg1, %c0_i32, %c0_i32_0 : i32, i32, i32
  }
  func.func @transform_5(%arg0: i32, %arg1: i32) -> (i32, i32, i32) {
    %c0_i32 = arith.constant 0 : i32
    %c0_i32_0 = arith.constant 0 : i32
    %c0_i32_1 = arith.constant 0 : i32
    return %arg1, %c0_i32, %c0_i32_0 : i32, i32, i32
  }
  func.func @transform_6(%arg0: i32, %arg1: i32) -> (i32, i32, i32) {
    %c0_i32 = arith.constant 0 : i32
    %c0_i32_0 = arith.constant 0 : i32
    %c0_i32_1 = arith.constant 0 : i32
    return %arg1, %c0_i32, %c0_i32_0 : i32, i32, i32
  }
  func.func @transform_7(%arg0: i32, %arg1: i32) -> (i32, i32, i32) {
    %c0_i32 = arith.constant 0 : i32
    %c0_i32_0 = arith.constant 0 : i32
    %c0_i32_1 = arith.constant 0 : i32
    return %arg1, %c0_i32, %c0_i32_0 : i32, i32, i32
  }
  func.func @transform_8(%arg0: i32, %arg1: i32) -> (i32, i32, i32) {
    %c0_i32 = arith.constant 0 : i32
    %c0_i32_0 = arith.constant 0 : i32
    %c0_i32_1 = arith.constant 0 : i32
    return %arg1, %c0_i32, %c0_i32_0 : i32, i32, i32
  }
  func.func @transform_9(%arg0: i32, %arg1: i32) -> (i32, i32, i32) {
    %c0_i32 = arith.constant 0 : i32
    %c0_i32_0 = arith.constant 0 : i32
    %c0_i32_1 = arith.constant 0 : i32
    return %arg1, %c0_i32, %c0_i32_0 : i32, i32, i32
  }
  func.func @transform_10(%arg0: i32, %arg1: i32) -> (i32, i32, i32) {
    %c0_i32 = arith.constant 0 : i32
    %c0_i32_0 = arith.constant 0 : i32
    %c0_i32_1 = arith.constant 0 : i32
    return %arg1, %c0_i32, %c0_i32_0 : i32, i32, i32
  }
  func.func @transform_11(%arg0: i32, %arg1: i32) -> (i32, i32, i32) {
    %c0_i32 = arith.constant 0 : i32
    %c0_i32_0 = arith.constant 0 : i32
    %c0_i32_1 = arith.constant 0 : i32
    return %arg1, %c0_i32, %c0_i32_0 : i32, i32, i32
  }
  func.func @transform_12(%arg0: i32, %arg1: i32) -> (i32, i32, i32) {
    %c0_i32 = arith.constant 0 : i32
    %c0_i32_0 = arith.constant 0 : i32
    %c0_i32_1 = arith.constant 0 : i32
    return %arg1, %c0_i32, %c0_i32_0 : i32, i32, i32
  }
  func.func @transform_13(%arg0: i32, %arg1: i32) -> (i32, i32, i32) {
    %c0_i32 = arith.constant 0 : i32
    %c0_i32_0 = arith.constant 0 : i32
    %c0_i32_1 = arith.constant 0 : i32
    return %arg1, %c0_i32, %c0_i32_0 : i32, i32, i32
  }
  func.func @transform_14(%arg0: i32, %arg1: i32) -> (i32, i32, i32) {
    %c0_i32 = arith.constant 0 : i32
    %c0_i32_0 = arith.constant 0 : i32
    %c0_i32_1 = arith.constant 0 : i32
    return %arg1, %c0_i32, %c0_i32_0 : i32, i32, i32
  }
  func.func @transform_15(%arg0: i32, %arg1: i32) -> (i32, i32, i32) {
    %c0_i32 = arith.constant 0 : i32
    %c0_i32_0 = arith.constant 0 : i32
    %c0_i32_1 = arith.constant 0 : i32
    return %arg1, %c0_i32, %c0_i32_0 : i32, i32, i32
  }
  func.func @transform_16(%arg0: i32, %arg1: i32) -> (i32, i32) {
    %c0_i32 = arith.constant 0 : i32
    %c0_i32_0 = arith.constant 0 : i32
    %c0_i32_1 = arith.constant 0 : i32
    return %c0_i32, %c0_i32_0 : i32, i32
  }
  func.func @transform_17(%arg0: i32, %arg1: i32) -> (i32, i32) {
    %c0_i32 = arith.constant 0 : i32
    %c0_i32_0 = arith.constant 0 : i32
    %c0_i32_1 = arith.constant 0 : i32
    return %c0_i32, %c0_i32_0 : i32, i32
  }
  func.func @transform_18(%arg0: i32, %arg1: i32) -> (i32, i32) {
    %c0_i32 = arith.constant 0 : i32
    %c0_i32_0 = arith.constant 0 : i32
    %c0_i32_1 = arith.constant 0 : i32
    return %c0_i32, %c0_i32_0 : i32, i32
  }
  func.func @transform_19(%arg0: i32, %arg1: i32) -> (i32, i32) {
    %c0_i32 = arith.constant 0 : i32
    %c0_i32_0 = arith.constant 0 : i32
    %c0_i32_1 = arith.constant 0 : i32
    return %c0_i32, %c0_i32_0 : i32, i32
  }
  func.func @transform_20(%arg0: i32, %arg1: i32) -> (i32, i32, i32) {
    %c0_i32 = arith.constant 0 : i32
    %c0_i32_0 = arith.constant 0 : i32
    %c0_i32_1 = arith.constant 0 : i32
    return %arg0, %c0_i32, %c0_i32_0 : i32, i32, i32
  }
}

</mosaic_0001>

<bundles_post_ra>
// kernel: vit_classifier_forward.1
= control target key start
LH: loop header
LB: loop body
LE: loop exit
PB: predicated region body
PF: predicated region fallthrough
CT: control target
= control target key end

     0   :  { %s8365_s0 = inlined_call_operand.vmem [shape: bf16[2,80,128], index: 0, kind: input, shape index: {}]   ;;  %s8366_s1 = inlined_call_operand.vmem [shape: bf16[128,32], index: 1, kind: input, shape index: {}]   ;;  %s8367_s2 = inlined_call_operand.vmem [shape: f32[80,32], index: 2, kind: input, shape index: {}]   ;;  %s8368_s3 = inlined_call_operand.vmem [shape: f32[2,1,32], index: 3, kind: input, shape index: {}]   ;;  %s8369_s4 = inlined_call_operand.vmem [shape: f32[2,1,32], index: 4, kind: input, shape index: {}]   ;;  %s8370_s5 = inlined_call_operand.vmem [shape: bf16[2,32,32], index: 5, kind: input, shape index: {}]   ;;  %s8371_s6 = inlined_call_operand.vmem [shape: bf16[2,32,32], index: 6, kind: input, shape index: {}]   ;;  %s8372_s7 = inlined_call_operand.vmem [shape: bf16[2,32,32], index: 7, kind: input, shape index: {}]   ;;  %s8373_s8 = inlined_call_operand.vmem [shape: bf16[2,32,32], index: 8, kind: input, shape index: {}]   ;;  %s8374_s9 = inlined_call_operand.vmem [shape: f32[2,1,32], index: 9, kind: input, shape index: {}]   ;;  %s8375_s10 = inlined_call_operand.vmem [shape: f32[2,1,32], index: 10, kind: input, shape index: {}]   ;;  %s8376_s11 = inlined_call_operand.vmem [shape: f32[2,1,32], index: 11, kind: input, shape index: {}]   ;;  %s8377_s12 = inlined_call_operand.vmem [shape: bf16[2,32,128], index: 12, kind: input, shape index: {}]   ;;  %s8378_s13 = inlined_call_operand.vmem [shape: f32[2,1,128], index: 13, kind: input, shape index: {}]   ;;  %s8379_s14 = inlined_call_operand.vmem [shape: bf16[2,128,32], index: 14, kind: input, shape index: {}]   ;;  %s8380_s15 = inlined_call_operand.vmem [shape: f32[2,1,32], index: 15, kind: input, shape index: {}]   ;;  %s8381_s16 = inlined_call_operand.vmem [shape: f32[1,32], index: 16, kind: input, shape index: {}]   ;;  %s8382_s17 = inlined_call_operand.vmem [shape: f32[1,32], index: 17, kind: input, shape index: {}]   ;;  %s8383_s18 = inlined_call_operand.vmem [shape: bf16[32,128], index: 18, kind: input, shape index: {}]   ;;  %s8384_s19 = inlined_call_operand.vmem [shape: f32[1,128], index: 19, kind: input, shape index: {}]   ;;  %s8385_s20 = inlined_call_operand.hbm [shape: f32[2,1,128], index: 20, kind: output, shape index: {}]  }
   0x1   :  { %8394 = sst [smem:[#allocation9_spill]] %s8365_s0 }
   0x2   :  { %8395 = sst [smem:[#allocation10_spill]] %s8366_s1 }
   0x3   :  { %8396 = sst [smem:[#allocation11_spill]] %s8367_s2 }
   0x4   :  { %8397 = sst [smem:[#allocation12_spill]] %s8368_s3 }
   0x5   :  { %8398 = sst [smem:[#allocation13_spill]] %s8369_s4 }
   0x6   :  { %8399 = sst [smem:[#allocation14_spill]] %s8370_s5 }
   0x7   :  { %8400 = sst [smem:[#allocation15_spill]] %s8371_s6 }
   0x8   :  { %8401 = sst [smem:[#allocation16_spill]] %s8372_s7 }
   0x9   :  { %8402 = sst [smem:[#allocation17_spill]] %s8373_s8 }
   0xa   :  { %8403 = sst [smem:[#allocation18_spill]] %s8381_s16 }
   0xb   :  { %8404 = sst [smem:[#allocation19_spill]] %s8382_s17 }
   0xc   :  { %8405 = sst [smem:[#allocation20_spill]] %s8384_s19 }
   0xd   :  { %8406 = sst [smem:[#allocation21_spill]] %s8385_s20 }
   0xe   :  { %25 = vsyncpa [#allocation4], 0  ;;  %s6314_s1 = smov 0   ;;  %s6316_s22 = smov 0  }
   0xf   :  { %s6318_s23 = smov 0  }
  0x10 LB: > { %8407 = sst [smem:[#allocation6_spill]] %s6194_s22  ;;  %s40_s2 = sadd.s32 1, %s6194_s22  ;;  %s6198_s23 = sphi %s6318_s23, %s31_s23   ;;  %s6194_s22 = sphi %s6316_s22, %s8437_s22   ;;  %s6190_s1 = sphi %s6314_s1, %s8436_s1  }
  0x11   : > { %8408 = sst [smem:[#allocation7_spill]] %s6198_s23  ;;  %p41_p0 = scmp.ge.s32.totalorder %s40_s2, 2 }
  0x12   : > { %p4918_p1 = scmp.ge.s32.totalorder %s6198_s23, 1  ;;  %p693_p2 = scmp.lt.s32.totalorder %s6198_s23, 3 }
  0x13   : > { %s8439_s2 = smov (%p41_p0, %s40_s2), 0 }
  0x14   : > { %8409 = sst [smem:[#allocation8_spill]] %s8439_s2  ;;  %p694_p3 = pnand %p4918_p1, %p693_p2 }
  0x15   : > { %p805_p4 = scmp.lt.s32.totalorder (!%p694_p3), %s6190_s1, 1  ;;  %s8412_s5 = sld [smem:[#allocation14_spill]] (!%p694_p3) }
  0x16   : > { %697 = sbr.rel (%p694_p3) target bundleno = 3923 (0xf53), region = 100  ;;  %s8413_s6 = sld [smem:[#allocation15_spill]] (!%p694_p3) }
  0x17   : > { %s8414_s7 = sld [smem:[#allocation16_spill]] (!%p694_p3)  ;;  %p4931_p5 = scmp.ne.s32.totalorder (!%p694_p3), %s6190_s1, 0 }
  0x18   : > { %s8415_s8 = sld [smem:[#allocation17_spill]] (!%p694_p3) }
  0x1b   : > { %s6337_s25 = scalar_select %p805_p4, %s6190_s1, 1 }
  0x1c   : > { %s8417_s2 = sld [smem:[#allocation9_spill]] (!%p4931_p5) }
  0x1d   : > { %s5078_s21 = sshll.u32 %s6337_s25, 4  ;;  %s839_s19 = scalar_lea.vmem %s8376_s11, %s6337_s25 }
  0x1e   : > { %s6355_s26 = scalar_lea.vmem %s8412_s5, %s5078_s21  ;;  %s6360_s17 = scalar_lea.vmem %s8413_s6, %s5078_s21 }
  0x1f   : > { %s6365_s4 = scalar_lea.vmem %s8414_s7, %s5078_s21  ;;  %s6370_s24 = scalar_lea.vmem %s8415_s8, %s5078_s21 }
  0x20   : > { %s6383_s6 = scalar_lea.vmem %s8377_s12, %s5078_s21  ;;  %s847_s7 = scalar_lea.vmem %s8378_s13, %s6337_s25 }
  0x21   : > { %s5083_s29 = sshll.u32 %s6337_s25, 6  ;;  %861 = sbr.rel (%p4931_p5) target bundleno = 291 (0x123), region = 104 }
  0x22   : > { %s6397_s20 = scalar_lea.vmem %s8379_s14, %s5083_s29  ;;  %s8416_s21 = sld [smem:[#allocation10_spill]] (!%p4931_p5) }
  0x23   : > { %s8418_s30 = sld [smem:[#allocation11_spill]] (!%p4931_p5) }
  0x26   : > { %v5766_v4 = vld [vmem:[%s8417_s2] sm:$0xff]   ;;  %v5768_v5 = vld [vmem:[%s8417_s2 + $0x30] sm:$0xff]   ;;  %v5767_v10 = vld [vmem:[%s8417_s2 + $0x8] sm:$0xff]   ;;  %vm1149_vm0 = vcmask 261120  }
  0x27   : > { %5279 = vmatprep.mubr.bf16.mxu0 %v5766_v4  ;;  %5291 = vmatprep.mubr.bf16.mxu1 %v5768_v5  ;;  %v5769_v11 = vld [vmem:[%s8417_s2 + $0x38] sm:$0xff]   ;;  %v5770_v12 = vld [vmem:[%s8417_s2 + $0x10] sm:$0xff]   ;;  %v5772_v13 = vld [vmem:[%s8417_s2 + $0x40] sm:$0xff]  }
  0x28   : > { %v5758_v0 = vld [vmem:[%s8416_s21 + $0x38] sm:$0xff]   ;;  %v5759_v1 = vld [vmem:[%s8416_s21 + $0x30] sm:$0xff]   ;;  %v5760_v2 = vld [vmem:[%s8416_s21 + $0x28] sm:$0xff]  }
  0x29   : > { %5263 = vmatprep.subr.bf16.mxu0 %v5758_v0  ;;  %5703 = vmatprep.subr.bf16.mxu1 %v5758_v0  ;;  %v5761_v3 = vld [vmem:[%s8416_s21 + $0x20] sm:$0xff]   ;;  %v5762_v6 = vld [vmem:[%s8416_s21 + $0x18] sm:$0xff]   ;;  %v5763_v7 = vld [vmem:[%s8416_s21 + $0x10] sm:$0xff]  }
  0x2a   : > { %5264 = vmatpush3.bf16.msra.mxu0 %v5758_v0  ;;  %5711 = vmatpush3.bf16.msra.mxu1 %v5758_v0  ;;  %v5764_v8 = vld [vmem:[%s8416_s21 + $0x8] sm:$0xff]   ;;  %v5765_v9 = vld [vmem:[%s8416_s21] sm:$0xff]   ;;  %v5771_v14 = vld [vmem:[%s8417_s2 + $0x18] sm:$0xff]  }
  0x2b   : > { %5265 = vmatprep.subr.bf16.mxu0 %v5759_v1  ;;  %5704 = vmatprep.subr.bf16.mxu1 %v5759_v1  ;;  %v5773_v15 = vld [vmem:[%s8417_s2 + $0x48] sm:$0xff]   ;;  %v5774_v16 = vld [vmem:[%s8417_s2 + $0x20] sm:$0xff]   ;;  %v1121_v18 = vld [vmem:[%s8418_s30 + $0x10] sm:$0xff] }
  0x2c   : > { %v5775_v17 = vld [vmem:[%s8417_s2 + $0x28] sm:$0xff]   ;;  %v1123_v19 = vld [vmem:[%s8418_s30 + $0x20] sm:$0xff]  ;;  %v1122_v26 = vld [vmem:[%s8418_s30 + $0x18] sm:$0xff] }
  0x2d   : > { %v1119_v21 = vld [vmem:[%s8418_s30] sm:$0xff]  ;;  %v1124_v28 = vld [vmem:[%s8418_s30 + $0x28] sm:$0xff]  ;;  %v1125_v37 = vld [vmem:[%s8418_s30 + $0x30] sm:$0xff] }
  0x2e   : > { %5266 = vmatpush3.bf16.msra.mxu0 %v5759_v1  ;;  %5712 = vmatpush3.bf16.msra.mxu1 %v5759_v1  ;;  %v1120_v32 = vld [vmem:[%s8418_s30 + $0x8] sm:$0xff]  ;;  %v1127_v39 = vld [vmem:[%s8418_s30 + $0x40] sm:$0xff]  ;;  %v1126_v47 = vld [vmem:[%s8418_s30 + $0x38] sm:$0xff] }
  0x2f   : > { %5267 = vmatprep.subr.bf16.mxu0 %v5760_v2  ;;  %5705 = vmatprep.subr.bf16.mxu1 %v5760_v2  ;;  %v1128_v49 = vld [vmem:[%s8418_s30 + $0x48] sm:$0xff] }
  0x32   : > { %5268 = vmatpush3.bf16.msra.mxu0 %v5760_v2  ;;  %5713 = vmatpush3.bf16.msra.mxu1 %v5760_v2 }
  0x33   : > { %5269 = vmatprep.subr.bf16.mxu0 %v5761_v3  ;;  %5706 = vmatprep.subr.bf16.mxu1 %v5761_v3 }
  0x36   : > { %5270 = vmatpush3.bf16.msra.mxu0 %v5761_v3  ;;  %5714 = vmatpush3.bf16.msra.mxu1 %v5761_v3 }
  0x37   : > { %5271 = vmatprep.subr.bf16.mxu0 %v5762_v6  ;;  %5707 = vmatprep.subr.bf16.mxu1 %v5762_v6 }
  0x3a   : > { %5272 = vmatpush3.bf16.msra.mxu0 %v5762_v6  ;;  %5715 = vmatpush3.bf16.msra.mxu1 %v5762_v6 }
  0x3b   : > { %5273 = vmatprep.subr.bf16.mxu0 %v5763_v7  ;;  %5708 = vmatprep.subr.bf16.mxu1 %v5763_v7 }
  0x3e   : > { %5274 = vmatpush3.bf16.msra.mxu0 %v5763_v7  ;;  %5716 = vmatpush3.bf16.msra.mxu1 %v5763_v7 }
  0x3f   : > { %5275 = vmatprep.subr.bf16.mxu0 %v5764_v8  ;;  %5709 = vmatprep.subr.bf16.mxu1 %v5764_v8 }
  0x42   : > { %5276 = vmatpush3.bf16.msra.mxu0 %v5764_v8  ;;  %5717 = vmatpush3.bf16.msra.mxu1 %v5764_v8 }
  0x43   : > { %5277 = vmatprep.subr.bf16.mxu0 %v5765_v9  ;;  %5710 = vmatprep.subr.bf16.mxu1 %v5765_v9 }
  0x46   : > { %5278 = vmatpush3.bf16.msra.mxu0 %v5765_v9  ;;  %5718 = vmatpush3.bf16.msra.mxu1 %v5765_v9 }
  0x49   : > { %5280 = vmatmul.mubr.bf16.vlgmr.msra.gmra.mxu0 %v5767_v10  ;;  %5292 = vmatmul.mubr.bf16.vlgmr.msra.gmra.mxu1 %v5769_v11 }
  0x4a   : > { %5283 = vmatprep.mubr.bf16.mxu0 %v5770_v12  ;;  %5295 = vmatprep.mubr.bf16.mxu1 %v5772_v13 }
  0x51   : > { %5284 = vmatmul.mubr.bf16.gmra.mxu0 %v5771_v14  ;;  %5296 = vmatmul.mubr.bf16.gmra.mxu1 %v5773_v15 }
  0x52   : > { %5287 = vmatprep.mubr.bf16.mxu0 %v5774_v16 }
  0x59   : > { %5288 = vmatmul.mubr.bf16.gmra.mxu0 %v5775_v17 }
 0x109   : > { %v5281_v20 = vpop.f32.mrf.mxu0  ;;  %v5293_v22 = vpop.f32.mrf.mxu1 }
 0x10a   : > { %v1131_v23 = vadd.f32 %v5281_v20, %v1121_v18  ;;  %v1143_v24 = vadd.f32 %v5293_v22, %v1123_v19 }
 0x10b   : > { %v1040_v25 = vpop.f32.mrf.mxu0  ;;  %v1088_v27 = vpop.f32.mrf.mxu1 }
 0x10c   : > { %1152 = vst.msk [vmem:[#allocation2 + $0x10] sm:$0xff] %vm1149_vm0, %v1131_v23  ;;  %v1129_v29 = vadd.f32 %v1119_v21, %v1040_v25  ;;  %1164 = vst.msk [vmem:[#allocation2 + $0x70] sm:$0xff] %vm1149_vm0, %v1143_v24  ;;  %v1141_v30 = vadd.f32 %v1121_v18, %v1088_v27 }
 0x10d   : > { %v5282_v31 = vpop.f32.mrf.mxu0  ;;  %v5294_v33 = vpop.f32.mrf.mxu1 }
 0x10e   : > { %1150 = vst.msk [vmem:[#allocation2] sm:$0xff] %vm1149_vm0, %v1129_v29  ;;  %v1132_v34 = vadd.f32 %v5282_v31, %v1122_v26  ;;  %1162 = vst.msk [vmem:[#allocation2 + $0x60] sm:$0xff] %vm1149_vm0, %v1141_v30  ;;  %v1144_v35 = vadd.f32 %v5294_v33, %v1124_v28 }
 0x10f   : > { %v1043_v36 = vpop.f32.mrf.mxu0  ;;  %v1091_v38 = vpop.f32.mrf.mxu1 }
 0x110   : > { %1153 = vst.msk [vmem:[#allocation2 + $0x18] sm:$0xff] %vm1149_vm0, %v1132_v34  ;;  %v1130_v40 = vadd.f32 %v1120_v32, %v1043_v36  ;;  %1165 = vst.msk [vmem:[#allocation2 + $0x78] sm:$0xff] %vm1149_vm0, %v1144_v35  ;;  %v1142_v41 = vadd.f32 %v1122_v26, %v1091_v38 }
 0x111   : > { %v5285_v42 = vpop.f32.mrf.mxu0  ;;  %v5297_v43 = vpop.f32.mrf.mxu1 }
 0x112   : > { %1151 = vst.msk [vmem:[#allocation2 + $0x8] sm:$0xff] %vm1149_vm0, %v1130_v40  ;;  %v1135_v44 = vadd.f32 %v5285_v42, %v1125_v37  ;;  %1163 = vst.msk [vmem:[#allocation2 + $0x68] sm:$0xff] %vm1149_vm0, %v1142_v41  ;;  %v1147_v45 = vadd.f32 %v5297_v43, %v1127_v39 }
 0x113   : > { %v1056_v46 = vpop.f32.mrf.mxu0  ;;  %v1104_v48 = vpop.f32.mrf.mxu1 }
 0x114   : > { %1156 = vst.msk [vmem:[#allocation2 + $0x30] sm:$0xff] %vm1149_vm0, %v1135_v44  ;;  %v1133_v50 = vadd.f32 %v1123_v19, %v1056_v46  ;;  %1168 = vst.msk [vmem:[#allocation2 + $0x90] sm:$0xff] %vm1149_vm0, %v1147_v45  ;;  %v1145_v51 = vadd.f32 %v1125_v37, %v1104_v48 }
 0x115   : > { %v5286_v52 = vpop.f32.mrf.mxu0  ;;  %v5298_v53 = vpop.f32.mrf.mxu1 }
 0x116   : > { %1154 = vst.msk [vmem:[#allocation2 + $0x20] sm:$0xff] %vm1149_vm0, %v1133_v50  ;;  %v1136_v54 = vadd.f32 %v5286_v52, %v1126_v47  ;;  %1166 = vst.msk [vmem:[#allocation2 + $0x80] sm:$0xff] %vm1149_vm0, %v1145_v51  ;;  %v1148_v55 = vadd.f32 %v5298_v53, %v1128_v49 }
 0x117   : > { %v1059_v56 = vpop.f32.mrf.mxu0  ;;  %v1107_v57 = vpop.f32.mrf.mxu1 }
 0x118   : > { %1157 = vst.msk [vmem:[#allocation2 + $0x38] sm:$0xff] %vm1149_vm0, %v1136_v54  ;;  %v1134_v58 = vadd.f32 %v1124_v28, %v1059_v56  ;;  %1169 = vst.msk [vmem:[#allocation2 + $0x98] sm:$0xff] %vm1149_vm0, %v1148_v55  ;;  %v1146_v59 = vadd.f32 %v1126_v47, %v1107_v57 }
 0x119   : > { %v5289_v60 = vpop.f32.mrf.mxu0 }
 0x11a   : > { %1155 = vst.msk [vmem:[#allocation2 + $0x28] sm:$0xff] %vm1149_vm0, %v1134_v58  ;;  %v1139_v61 = vadd.f32 %v5289_v60, %v1119_v21  ;;  %1167 = vst.msk [vmem:[#allocation2 + $0x88] sm:$0xff] %vm1149_vm0, %v1146_v59 }
 0x11b   : > { %v1072_v62 = vpop.f32.mrf.mxu0 }
 0x11c   : > { %1160 = vst.msk [vmem:[#allocation2 + $0x50] sm:$0xff] %vm1149_vm0, %v1139_v61  ;;  %v1137_v63 = vadd.f32 %v1127_v39, %v1072_v62 }
 0x11d   : > { %v5290_v0 = vpop.f32.mrf.mxu0 }
 0x11e   : > { %1158 = vst.msk [vmem:[#allocation2 + $0x40] sm:$0xff] %vm1149_vm0, %v1137_v63  ;;  %v1140_v1 = vadd.f32 %v5290_v0, %v1120_v32 }
 0x11f   : > { %v1075_v2 = vpop.f32.mrf.mxu0 }
 0x120   : > { %1161 = vst.msk [vmem:[#allocation2 + $0x58] sm:$0xff] %vm1149_vm0, %v1140_v1  ;;  %v1138_v3 = vadd.f32 %v1128_v49, %v1075_v2 }
 0x122   : > { %1159 = vst.msk [vmem:[#allocation2 + $0x48] sm:$0xff] %vm1149_vm0, %v1138_v3 }
 0x123 PF: > { %v6504_v4 = vld [vmem:[#allocation2] sm:$0xff]  ;;  %vm1192_vm1 = vcmask 261120   ;;  %v6506_v5 = vld [vmem:[#allocation2 + $0x10] sm:$0xff]  ;;  %v6508_v6 = vld [vmem:[#allocation2 + $0x8] sm:$0xff]  ;;  %s8419_s16 = sld [smem:[#allocation12_spill]]  ;;  %vm6201_vm2 = vmmov 0   ;;  %s8424_s8 = scalar_lea.vmem %s8374_s9, %s6337_s25 }
 0x124   : > { %v1193_v7 = vsel %vm1192_vm1, %v6504_v4, 0.0  ;;  %v1199_v8 = vsel %vm1192_vm1, %v6506_v5, 0.0  ;;  %v6514_v9 = vld [vmem:[#allocation2 + $0x18] sm:$0xff]  ;;  %v6516_v10 = vld [vmem:[#allocation2 + $0x20] sm:$0xff]  ;;  %v1196_v11 = vsel %vm1192_vm1, %v6508_v6, 0.0  ;;  %v6522_v13 = vld [vmem:[#allocation2 + $0x28] sm:$0xff]  ;;  %s8426_s29 = scalar_lea.vmem %s8380_s15, %s6337_s25 }
 0x125   : > { %1194 = vadd.xlane.f32.xlu0 %v1193_v7  ;;  %1200 = vadd.xlane.f32.xlu1 %v1199_v8  ;;  %v1202_v12 = vsel %vm1192_vm1, %v6514_v9, 0.0  ;;  %v6524_v14 = vld [vmem:[#allocation2 + $0x30] sm:$0xff]  ;;  %v6526_v15 = vld [vmem:[#allocation2 + $0x38] sm:$0xff]  ;;  %v6528_v16 = vld [vmem:[#allocation2 + $0x40] sm:$0xff]  ;;  %v1205_v18 = vsel %vm1192_vm1, %v6516_v10, 0.0  ;;  %v1208_v19 = vsel %vm1192_vm1, %v6522_v13, 0.0 }
 0x126   : > { %v1211_v20 = vsel %vm1192_vm1, %v6524_v14, 0.0  ;;  %v1214_v21 = vsel %vm1192_vm1, %v6526_v15, 0.0  ;;  %v1217_v22 = vsel %vm1192_vm1, %v6528_v16, 0.0  ;;  %v6544_v24 = vld [vmem:[#allocation2 + $0x50] sm:$0xff]  ;;  %v6552_v28 = vld [vmem:[#allocation2 + $0x60] sm:$0xff]  ;;  %v6554_v29 = vld [vmem:[#allocation2 + $0x68] sm:$0xff] }
 0x127   : > { %v6546_v25 = vld [vmem:[#allocation2 + $0x58] sm:$0xff]  ;;  %v1223_v26 = vsel %vm1192_vm1, %v6544_v24, 0.0  ;;  %v1229_v30 = vsel %vm1192_vm1, %v6552_v28, 0.0  ;;  %v1232_v31 = vsel %vm1192_vm1, %v6554_v29, 0.0  ;;  %v6560_v32 = vld [vmem:[#allocation2 + $0x70] sm:$0xff]  ;;  %v6568_v36 = vld [vmem:[#allocation2 + $0x80] sm:$0xff] }
 0x128   : > { %v1226_v27 = vsel %vm1192_vm1, %v6546_v25, 0.0  ;;  %v6562_v33 = vld [vmem:[#allocation2 + $0x78] sm:$0xff]  ;;  %v1235_v34 = vsel %vm1192_vm1, %v6560_v32, 0.0  ;;  %v6570_v37 = vld [vmem:[#allocation2 + $0x88] sm:$0xff]  ;;  %v1241_v38 = vsel %vm1192_vm1, %v6568_v36, 0.0  ;;  %v6576_v40 = vld [vmem:[#allocation2 + $0x90] sm:$0xff] }
 0x129   : > { %v6530_v17 = vld [vmem:[#allocation2 + $0x48] sm:$0xff]  ;;  %1197 = vadd.xlane.f32.xlu0 %v1196_v11  ;;  %1203 = vadd.xlane.f32.xlu1 %v1202_v12  ;;  %v1238_v35 = vsel %vm1192_vm1, %v6562_v33, 0.0  ;;  %v1244_v39 = vsel %vm1192_vm1, %v6570_v37, 0.0  ;;  %v6578_v41 = vld [vmem:[#allocation2 + $0x98] sm:$0xff]  ;;  %v1247_v42 = vsel %vm1192_vm1, %v6576_v40, 0.0  ;;  %s8420_s27 = scalar_lea.vmem %s8419_s16, %s6337_s25  ;;  %s8421_s5 = sld [smem:[#allocation13_spill]] }
 0x12a   : > { %v1220_v23 = vsel %vm1192_vm1, %v6530_v17, 0.0  ;;  %v1250_v43 = vsel %vm1192_vm1, %v6578_v41, 0.0  ;;  %vm1966_vm3 = vcmask 130048   ;;  %vm2195_vm5 = vcmask 654336   ;;  %s6203_s3 = smov 16   ;;  %p5065_p6 = scmp.ne.s32.totalorder %s6190_s1, 1 }
 0x12d   : > { %1206 = vadd.xlane.f32.xlu0 %v1205_v18  ;;  %1209 = vadd.xlane.f32.xlu1 %v1208_v19 }
 0x12f   : > { %s8422_s0 = scalar_lea.vmem %s8421_s5, %s6337_s25 }
 0x131   : > { %1212 = vadd.xlane.f32.xlu0 %v1211_v20  ;;  %1215 = vadd.xlane.f32.xlu1 %v1214_v21 }
 0x135   : > { %1218 = vadd.xlane.f32.xlu0 %v1217_v22  ;;  %1221 = vadd.xlane.f32.xlu1 %v1220_v23 }
 0x139   : > { %1224 = vadd.xlane.f32.xlu0 %v1223_v26  ;;  %1227 = vadd.xlane.f32.xlu1 %v1226_v27 }
 0x13d   : > { %1230 = vadd.xlane.f32.xlu0 %v1229_v30  ;;  %1233 = vadd.xlane.f32.xlu1 %v1232_v31 }
 0x141   : > { %1236 = vadd.xlane.f32.xlu0 %v1235_v34  ;;  %1239 = vadd.xlane.f32.xlu1 %v1238_v35 }
 0x145   : > { %1242 = vadd.xlane.f32.xlu0 %v1241_v38  ;;  %1245 = vadd.xlane.f32.xlu1 %v1244_v39 }
 0x149   : > { %1248 = vadd.xlane.f32.xlu0 %v1247_v42  ;;  %1251 = vadd.xlane.f32.xlu1 %v1250_v43 }
 0x1ae   : > { %v1195_v44 = vpop.xlane.xlu0 %1194  ;;  %v1201_v45 = vpop.xlane.xlu1 %1200 }
 0x1af   : > { %v1254_v46 = vmul.f32 0.03125, %v1195_v44  ;;  %v1256_v47 = vmul.f32 0.03125, %v1201_v45 }
 0x1b1   : > { %v6585_v48 = vsub.f32 %v6504_v4, %v1254_v46  ;;  %v6588_v49 = vsub.f32 %v6506_v5, %v1256_v47 }
 0x1b2   : > { %v1198_v50 = vpop.xlane.xlu0 %1197  ;;  %v1204_v51 = vpop.xlane.xlu1 %1203 }
 0x1b3   : > { %v1255_v52 = vmul.f32 0.03125, %v1198_v50  ;;  %v1257_v53 = vmul.f32 0.03125, %v1204_v51  ;;  %v1294_v54 = vmul.f32 %v6585_v48, %v6585_v48  ;;  %v1296_v55 = vmul.f32 %v6588_v49, %v6588_v49 }
 0x1b5   : > { %v6595_v56 = vsub.f32 %v6508_v6, %v1255_v52  ;;  %v6598_v57 = vsub.f32 %v6514_v9, %v1257_v53  ;;  %v1314_v58 = vsel %vm1192_vm1, %v1294_v54, 0.0  ;;  %v1320_v61 = vsel %vm1192_vm1, %v1296_v55, 0.0 }
 0x1b6   : > { %1315 = vadd.xlane.f32.xlu0 %v1314_v58  ;;  %v1207_v59 = vpop.xlane.xlu0 %1206  ;;  %v1210_v60 = vpop.xlane.xlu1 %1209 }
 0x1b7   : > { %v1258_v62 = vmul.f32 0.03125, %v1207_v59  ;;  %v1259_v63 = vmul.f32 0.03125, %v1210_v60  ;;  %v1295_v0 = vmul.f32 %v6595_v56, %v6595_v56  ;;  %v1297_v1 = vmul.f32 %v6598_v57, %v6598_v57 }
 0x1b9   : > { %v6607_v2 = vsub.f32 %v6516_v10, %v1258_v62  ;;  %v6610_v3 = vsub.f32 %v6522_v13, %v1259_v63  ;;  %v1317_v4 = vsel %vm1192_vm1, %v1295_v0, 0.0  ;;  %v1323_v7 = vsel %vm1192_vm1, %v1297_v1, 0.0 }
 0x1ba   : > { %1321 = vadd.xlane.f32.xlu0 %v1320_v61  ;;  %1318 = vadd.xlane.f32.xlu1 %v1317_v4  ;;  %v1213_v5 = vpop.xlane.xlu0 %1212  ;;  %v1216_v6 = vpop.xlane.xlu1 %1215 }
 0x1bb   : > { %v1260_v8 = vmul.f32 0.03125, %v1213_v5  ;;  %v1261_v9 = vmul.f32 0.03125, %v1216_v6  ;;  %v1298_v11 = vmul.f32 %v6607_v2, %v6607_v2  ;;  %v1299_v10 = vmul.f32 %v6610_v3, %v6610_v3 }
 0x1bd   : > { %v6619_v12 = vsub.f32 %v6524_v14, %v1260_v8  ;;  %v6622_v13 = vsub.f32 %v6526_v15, %v1261_v9  ;;  %v1326_v18 = vsel %vm1192_vm1, %v1298_v11, 0.0  ;;  %v1329_v21 = vsel %vm1192_vm1, %v1299_v10, 0.0 }
 0x1be   : > { %1324 = vadd.xlane.f32.xlu1 %v1323_v7  ;;  %1327 = vadd.xlane.f32.xlu0 %v1326_v18  ;;  %v1219_v19 = vpop.xlane.xlu0 %1218  ;;  %v1222_v20 = vpop.xlane.xlu1 %1221 }
 0x1bf   : > { %v1262_v22 = vmul.f32 0.03125, %v1219_v19  ;;  %v1263_v23 = vmul.f32 0.03125, %v1222_v20  ;;  %v1300_v26 = vmul.f32 %v6619_v12, %v6619_v12  ;;  %v1301_v14 = vmul.f32 %v6622_v13, %v6622_v13 }
 0x1c1   : > { %v6631_v27 = vsub.f32 %v6528_v16, %v1262_v22  ;;  %v6634_v15 = vsub.f32 %v6530_v17, %v1263_v23  ;;  %v1332_v30 = vsel %vm1192_vm1, %v1300_v26, 0.0  ;;  %v1335_v35 = vsel %vm1192_vm1, %v1301_v14, 0.0 }
 0x1c2   : > { %1330 = vadd.xlane.f32.xlu1 %v1329_v21  ;;  %1333 = vadd.xlane.f32.xlu0 %v1332_v30  ;;  %v1225_v31 = vpop.xlane.xlu0 %1224  ;;  %v1228_v34 = vpop.xlane.xlu1 %1227 }
 0x1c3   : > { %v1264_v38 = vmul.f32 0.03125, %v1225_v31  ;;  %v1265_v39 = vmul.f32 0.03125, %v1228_v34  ;;  %v1302_v42 = vmul.f32 %v6631_v27, %v6631_v27  ;;  %v1303_v16 = vmul.f32 %v6634_v15, %v6634_v15  ;;  %v5826_v34 = vld [vmem:[%s6355_s26 + $0x8] sm:$0xff]  }
 0x1c4   : > { %5299 = vmatprep.subr.bf16.mxu0 %v5826_v34 }
 0x1c5   : > { %v6643_v43 = vsub.f32 %v6544_v24, %v1264_v38  ;;  %v6646_v17 = vsub.f32 %v6546_v25, %v1265_v39  ;;  %v1338_v44 = vsel %vm1192_vm1, %v1302_v42, 0.0  ;;  %v1341_v47 = vsel %vm1192_vm1, %v1303_v16, 0.0  ;;  %5300 = vmatpush3.bf16.msra.mxu0 %v5826_v34  ;;  %v5828_v38 = vld [vmem:[%s6355_s26] sm:$0xff]   ;;  %v6709_v42 = vld [vmem:[%s6365_s4 + $0x8] sm:$0xff]   ;;  %s8430_s26 = sld [smem:[#allocation20_spill]] (!%p5065_p6) }
 0x1c6   : > { %1336 = vadd.xlane.f32.xlu1 %v1335_v35  ;;  %1339 = vadd.xlane.f32.xlu0 %v1338_v44  ;;  %v1231_v45 = vpop.xlane.xlu0 %1230  ;;  %v1234_v46 = vpop.xlane.xlu1 %1233  ;;  %v5829_v39 = vld [vmem:[%s6360_s17] sm:$0xff]  }
 0x1c7   : > { %v1266_v50 = vmul.f32 0.03125, %v1231_v45  ;;  %v1267_v51 = vmul.f32 0.03125, %v1234_v46  ;;  %v1304_v52 = vmul.f32 %v6643_v43, %v6643_v43  ;;  %v1305_v24 = vmul.f32 %v6646_v17, %v6646_v17  ;;  %5301 = vmatprep.subr.bf16.mxu0 %v5828_v38 }
 0x1c9   : > { %v6655_v53 = vsub.f32 %v6552_v28, %v1266_v50  ;;  %v6658_v25 = vsub.f32 %v6554_v29, %v1267_v51  ;;  %v1344_v54 = vsel %vm1192_vm1, %v1304_v52, 0.0  ;;  %v1347_v59 = vsel %vm1192_vm1, %v1305_v24, 0.0  ;;  %5302 = vmatpush3.bf16.msra.mxu0 %v5828_v38 }
 0x1ca   : > { %1342 = vadd.xlane.f32.xlu1 %v1341_v47  ;;  %1345 = vadd.xlane.f32.xlu0 %v1344_v54  ;;  %v1237_v55 = vpop.xlane.xlu0 %1236  ;;  %v1240_v58 = vpop.xlane.xlu1 %1239 }
 0x1cb   : > { %v1268_v60 = vmul.f32 0.03125, %v1237_v55  ;;  %v1269_v61 = vmul.f32 0.03125, %v1240_v58  ;;  %v1306_v62 = vmul.f32 %v6655_v53, %v6655_v53  ;;  %v1307_v28 = vmul.f32 %v6658_v25, %v6658_v25  ;;  %5347 = vmatprep.subr.bf16.mxu0 %v6709_v42 }
 0x1cd   : > { %v6667_v63 = vsub.f32 %v6560_v32, %v1268_v60  ;;  %v6670_v29 = vsub.f32 %v6562_v33, %v1269_v61  ;;  %v1350_v0 = vsel %vm1192_vm1, %v1306_v62, 0.0  ;;  %v1353_v5 = vsel %vm1192_vm1, %v1307_v28, 0.0 }
 0x1ce   : > { %1348 = vadd.xlane.f32.xlu1 %v1347_v59  ;;  %1351 = vadd.xlane.f32.xlu0 %v1350_v0  ;;  %v1243_v1 = vpop.xlane.xlu0 %1242  ;;  %v1246_v4 = vpop.xlane.xlu1 %1245 }
 0x1cf   : > { %v1270_v6 = vmul.f32 0.03125, %v1243_v1  ;;  %v1271_v7 = vmul.f32 0.03125, %v1246_v4  ;;  %v1308_v8 = vmul.f32 %v6667_v63, %v6667_v63  ;;  %v1309_v32 = vmul.f32 %v6670_v29, %v6670_v29 }
 0x1d1   : > { %v6679_v9 = vsub.f32 %v6568_v36, %v1270_v6  ;;  %v6682_v33 = vsub.f32 %v6570_v37, %v1271_v7  ;;  %v1356_v11 = vsel %vm1192_vm1, %v1308_v8, 0.0  ;;  %v1359_v19 = vsel %vm1192_vm1, %v1309_v32, 0.0 }
 0x1d2   : > { %1354 = vadd.xlane.f32.xlu1 %v1353_v5  ;;  %1357 = vadd.xlane.f32.xlu0 %v1356_v11  ;;  %v1249_v10 = vpop.xlane.xlu0 %1248  ;;  %v1252_v18 = vpop.xlane.xlu1 %1251 }
 0x1d3   : > { %v1272_v20 = vmul.f32 0.03125, %v1249_v10  ;;  %v1273_v21 = vmul.f32 0.03125, %v1252_v18  ;;  %v1310_v22 = vmul.f32 %v6679_v9, %v6679_v9  ;;  %v1311_v36 = vmul.f32 %v6682_v33, %v6682_v33 }
 0x1d5   : > { %v6691_v37 = vsub.f32 %v6576_v40, %v1272_v20  ;;  %v6694_v23 = vsub.f32 %v6578_v41, %v1273_v21  ;;  %v1362_v26 = vsel %vm1192_vm1, %v1310_v22, 0.0  ;;  %v1365_v14 = vsel %vm1192_vm1, %v1311_v36, 0.0  ;;  %v5827_v41 = vld [vmem:[%s6360_s17 + $0x8] sm:$0xff]   ;;  %s8425_s17 = scalar_lea.vmem %s8375_s10, %s6337_s25 }
 0x1d6   : > { %1360 = vadd.xlane.f32.xlu1 %v1359_v19  ;;  %1363 = vadd.xlane.f32.xlu0 %v1362_v26  ;;  %v6717_v19 = vld [vmem:[%s8420_s27] ss:$0 sm:$0xff] }
 0x1d7   : > { %v1312_v30 = vmul.f32 %v6691_v37, %v6691_v37  ;;  %v1313_v31 = vmul.f32 %v6694_v23, %v6694_v23  ;;  %5323 = vmatprep.subr.bf16.mxu1 %v5827_v41 }
 0x1d8   : > { %5324 = vmatpush3.bf16.msra.mxu1 %v5827_v41  ;;  %v6726_v41 = vld [vmem:[%s8422_s0] ss:$0 sm:$0xff] }
 0x1d9   : > { %v1368_v40 = vsel %vm1192_vm1, %v1312_v30, 0.0  ;;  %v1371_v35 = vsel %vm1192_vm1, %v1313_v31, 0.0  ;;  %5325 = vmatprep.subr.bf16.mxu1 %v5829_v39 }
 0x1da   : > { %1366 = vadd.xlane.f32.xlu1 %v1365_v14  ;;  %1369 = vadd.xlane.f32.xlu0 %v1368_v40 }
 0x1dc   : > { %5326 = vmatpush3.bf16.msra.mxu1 %v5829_v39 }
 0x1de   : > { %1372 = vadd.xlane.f32.xlu1 %v1371_v35 }
 0x23f   : > { %v1316_v16 = vpop.xlane.xlu0 %1315 }
 0x240   : > { %v1374_v44 = vmul.f32 0.03125, %v1316_v16 }
 0x242   : > { %v1394_v45 = vadd.f32 1e-05, %v1374_v44 }
 0x243   : > { %v1319_v46 = vpop.xlane.xlu1 %1318  ;;  %v1322_v47 = vpop.xlane.xlu0 %1321 }
 0x244   : > { %5844 = vrsqrt.f32 %v1394_v45  ;;  %v1375_v50 = vmul.f32 0.03125, %v1319_v46  ;;  %v1376_v51 = vmul.f32 0.03125, %v1322_v47 }
 0x246   : > { %v1395_v52 = vadd.f32 1e-05, %v1375_v50  ;;  %v1396_v24 = vadd.f32 1e-05, %v1376_v51 }
 0x247   : > { %v1325_v54 = vpop.xlane.xlu1 %1324  ;;  %v1328_v55 = vpop.xlane.xlu0 %1327 }
 0x248   : > { %5846 = vrsqrt.f32 %v1395_v52  ;;  %v1377_v58 = vmul.f32 0.03125, %v1325_v54  ;;  %v1378_v59 = vmul.f32 0.03125, %v1328_v55 }
 0x249   : > { %5848 = vrsqrt.f32 %v1396_v24 }
 0x24a   : > { %v1397_v60 = vadd.f32 1e-05, %v1377_v58  ;;  %v1398_v61 = vadd.f32 1e-05, %v1378_v59 }
 0x24b   : > { %v1331_v62 = vpop.xlane.xlu1 %1330  ;;  %v1334_v28 = vpop.xlane.xlu0 %1333 }
 0x24c   : > { %5850 = vrsqrt.f32 %v1397_v60  ;;  %v1379_v0 = vmul.f32 0.03125, %v1331_v62  ;;  %v1380_v1 = vmul.f32 0.03125, %v1334_v28 }
 0x24d   : > { %5852 = vrsqrt.f32 %v1398_v61 }
 0x24e   : > { %v1399_v4 = vadd.f32 1e-05, %v1379_v0  ;;  %v1400_v5 = vadd.f32 1e-05, %v1380_v1 }
 0x24f   : > { %v1337_v6 = vpop.xlane.xlu1 %1336  ;;  %v1340_v7 = vpop.xlane.xlu0 %1339 }
 0x250   : > { %5854 = vrsqrt.f32 %v1399_v4  ;;  %v1381_v8 = vmul.f32 0.03125, %v1337_v6  ;;  %v1382_v32 = vmul.f32 0.03125, %v1340_v7 }
 0x251   : > { %v5845_v11 = vpop.eup %5844  ;;  %5856 = vrsqrt.f32 %v1400_v5 }
 0x252   : > { %v1401_v10 = vadd.f32 1e-05, %v1381_v8  ;;  %v1402_v18 = vadd.f32 1e-05, %v1382_v32  ;;  %v1434_v20 = vmul.f32 %v5845_v11, %v6585_v48 }
 0x253   : > { %v1343_v21 = vpop.xlane.xlu1 %1342  ;;  %v1346_v22 = vpop.xlane.xlu0 %1345 }
 0x254   : > { %5858 = vrsqrt.f32 %v1401_v10  ;;  %v1383_v36 = vmul.f32 0.03125, %v1343_v21  ;;  %v1384_v26 = vmul.f32 0.03125, %v1346_v22  ;;  %v1460_v30 = vmul.f32 %v6717_v19, %v1434_v20 }
 0x255   : > { %v5847_v14 = vpop.eup %5846  ;;  %5860 = vrsqrt.f32 %v1402_v18 }
 0x256   : > { %v5849_v31 = vpop.eup %5848  ;;  %v1403_v40 = vadd.f32 1e-05, %v1383_v36  ;;  %v1404_v34 = vadd.f32 1e-05, %v1384_v26  ;;  %v1435_v48 = vmul.f32 %v5847_v14, %v6595_v56  ;;  %v1486_v47 = vadd.f32 %v6726_v41, %v1460_v30 }
 0x257   : > { %v1349_v35 = vpop.xlane.xlu1 %1348  ;;  %v1352_v38 = vpop.xlane.xlu0 %1351  ;;  %v1436_v39 = vmul.f32 %v5849_v31, %v6588_v49 }
 0x258   : > { %5862 = vrsqrt.f32 %v1403_v40  ;;  %v1385_v16 = vmul.f32 0.03125, %v1349_v35  ;;  %v1386_v44 = vmul.f32 0.03125, %v1352_v38  ;;  %v1461_v45 = vmul.f32 %v6717_v19, %v1435_v48 }
 0x259   : > { %v5851_v46 = vpop.eup %5850  ;;  %5864 = vrsqrt.f32 %v1404_v34  ;;  %v1462_v49 = vmul.f32 %v6717_v19, %v1436_v39 }
 0x25a   : > { %v5853_v50 = vpop.eup %5852  ;;  %v1405_v51 = vadd.f32 1e-05, %v1385_v16  ;;  %v1406_v52 = vadd.f32 1e-05, %v1386_v44  ;;  %v1487_v24 = vadd.f32 %v6726_v41, %v1461_v45  ;;  %v1437_v56 = vmul.f32 %v5851_v46, %v6598_v57 }
 0x25b   : > { %v1355_v54 = vpop.xlane.xlu1 %1354  ;;  %v1358_v55 = vpop.xlane.xlu0 %1357  ;;  %v1438_v58 = vmul.f32 %v5853_v50, %v6607_v2  ;;  %v1488_v7 = vadd.f32 %v6726_v41, %v1462_v49 }
 0x25c   : > { %5866 = vrsqrt.f32 %v1405_v51  ;;  %v1387_v59 = vmul.f32 0.03125, %v1355_v54  ;;  %v1388_v60 = vmul.f32 0.03125, %v1358_v55  ;;  %v6736_v61 = vpack.c.bf16 %v1487_v24, %v1486_v47 }
 0x25d   : > { %v5855_v62 = vpop.eup %5854  ;;  %5868 = vrsqrt.f32 %v1406_v52  ;;  %v1463_v28 = vmul.f32 %v6717_v19, %v1437_v56  ;;  %v1464_v0 = vmul.f32 %v6717_v19, %v1438_v58 }
 0x25e   : > { %v5857_v1 = vpop.eup %5856  ;;  %v1407_v4 = vadd.f32 1e-05, %v1387_v59  ;;  %v1408_v57 = vadd.f32 1e-05, %v1388_v60  ;;  %5303 = vmatprep.mubr.msk.bf16.mxu0 %vm1192_vm1, %v6736_v61  ;;  %5327 = vmatprep.mubr.msk.bf16.mxu1 %vm1192_vm1, %v6736_v61  ;;  %v1439_v2 = vmul.f32 %v5855_v62, %v6610_v3  ;;  %v5831_v3 = vld [vmem:[%s6365_s4] sm:$0xff]   ;;  %s6202_s4 = smov 112  }
 0x25f   : > { %v1361_v5 = vpop.xlane.xlu1 %1360  ;;  %v1364_v6 = vpop.xlane.xlu0 %1363  ;;  %v1489_v8 = vadd.f32 %v6726_v41, %v1463_v28  ;;  %v1440_v32 = vmul.f32 %v5857_v1, %v6619_v12  ;;  %v1490_v22 = vadd.f32 %v6726_v41, %v1464_v0 }
 0x260   : > { %5870 = vrsqrt.f32 %v1407_v4  ;;  %v1389_v11 = vmul.f32 0.03125, %v1361_v5  ;;  %v1390_v10 = vmul.f32 0.03125, %v1364_v6  ;;  %v1465_v18 = vmul.f32 %v6717_v19, %v1439_v2 }
 0x261   : > { %v5859_v20 = vpop.eup %5858  ;;  %5872 = vrsqrt.f32 %v1408_v57  ;;  %v6749_v21 = vpack.c.bf16 %v1489_v8, %v1488_v7  ;;  %v1466_v34 = vmul.f32 %v6717_v19, %v1440_v32 }
 0x262   : > { %v5861_v36 = vpop.eup %5860  ;;  %v1409_v26 = vadd.f32 1e-05, %v1389_v11  ;;  %v1410_v14 = vadd.f32 1e-05, %v1390_v10  ;;  %v1491_v30 = vadd.f32 %v6726_v41, %v1465_v18  ;;  %v1441_v31 = vmul.f32 %v5859_v20, %v6622_v13 }
 0x263   : > { %5304 = vmatmul.mubr.msk.bf16.vlgmr.msra.gmra.mxu0 %vm1192_vm1, %v6749_v21  ;;  %5328 = vmatmul.mubr.msk.bf16.vlgmr.msra.gmra.mxu1 %vm1192_vm1, %v6749_v21  ;;  %v1367_v12 = vpop.xlane.xlu1 %1366  ;;  %v1370_v40 = vpop.xlane.xlu0 %1369  ;;  %v1442_v48 = vmul.f32 %v5861_v36, %v6631_v27 }
 0x264   : > { %5874 = vrsqrt.f32 %v1409_v26  ;;  %v1391_v35 = vmul.f32 0.03125, %v1367_v12  ;;  %v1392_v38 = vmul.f32 0.03125, %v1370_v40  ;;  %v6761_v39 = vpack.c.bf16 %v1491_v30, %v1490_v22  ;;  %5348 = vmatpush3.bf16.msra.mxu0 %v6709_v42 }
 0x265   : > { %v5863_v13 = vpop.eup %5862  ;;  %5876 = vrsqrt.f32 %v1410_v14  ;;  %v1467_v16 = vmul.f32 %v6717_v19, %v1441_v31  ;;  %5349 = vmatprep.subr.bf16.mxu0 %v5831_v3  ;;  %v1468_v47 = vmul.f32 %v6717_v19, %v1442_v48  ;;  %v1492_v42 = vadd.f32 %v6726_v41, %v1466_v34 }
 0x266   : > { %v5865_v44 = vpop.eup %5864  ;;  %v1411_v45 = vadd.f32 1e-05, %v1391_v35  ;;  %v1412_v46 = vadd.f32 1e-05, %v1392_v38  ;;  %5307 = vmatprep.mubr.msk.bf16.mxu0 %vm1192_vm1, %v6761_v39  ;;  %5331 = vmatprep.mubr.msk.bf16.mxu1 %vm1192_vm1, %v6761_v39  ;;  %v1443_v27 = vmul.f32 %v5863_v13, %v6634_v15 }
 0x267   : > { %v1373_v50 = vpop.xlane.xlu1 %1372  ;;  %v1493_v51 = vadd.f32 %v6726_v41, %v1467_v16  ;;  %v1444_v52 = vmul.f32 %v5865_v44, %v6643_v43  ;;  %v1494_v59 = vadd.f32 %v6726_v41, %v1468_v47 }
 0x268   : > { %5878 = vrsqrt.f32 %v1411_v45  ;;  %v1393_v24 = vmul.f32 0.03125, %v1373_v50  ;;  %v1469_v56 = vmul.f32 %v6717_v19, %v1443_v27  ;;  %5350 = vmatpush3.bf16.msra.mxu0 %v5831_v3 }
 0x269   : > { %v5867_v54 = vpop.eup %5866  ;;  %5880 = vrsqrt.f32 %v1412_v46  ;;  %v6775_v55 = vpack.c.bf16 %v1493_v51, %v1492_v42  ;;  %v1470_v15 = vmul.f32 %v6717_v19, %v1444_v52 }
 0x26a   : > { %v5869_v49 = vpop.eup %5868  ;;  %v1413_v58 = vadd.f32 1e-05, %v1393_v24  ;;  %v1495_v60 = vadd.f32 %v6726_v41, %v1469_v56  ;;  %v1445_v62 = vmul.f32 %v5867_v54, %v6646_v17 }
 0x26b   : > { %5308 = vmatmul.mubr.msk.bf16.gmra.mxu0 %vm1192_vm1, %v6775_v55  ;;  %5332 = vmatmul.mubr.msk.bf16.gmra.mxu1 %vm1192_vm1, %v6775_v55  ;;  %v1446_v43 = vmul.f32 %v5869_v49, %v6655_v53  ;;  %v1496_v4 = vadd.f32 %v6726_v41, %v1470_v15 }
 0x26c   : > { %5882 = vrsqrt.f32 %v1413_v58  ;;  %v1510_v28 = vpack.c.bf16 %v1495_v60, %v1494_v59  ;;  %v1471_v0 = vmul.f32 %v6717_v19, %v1445_v62 }
 0x26d   : > { %v5871_v1 = vpop.eup %5870  ;;  %v1472_v5 = vmul.f32 %v6717_v19, %v1446_v43 }
 0x26e   : > { %v5873_v57 = vpop.eup %5872  ;;  %5311 = vmatprep.mubr.msk.bf16.mxu0 %vm1192_vm1, %v1510_v28  ;;  %5335 = vmatprep.mubr.msk.bf16.mxu1 %vm1192_vm1, %v1510_v28  ;;  %v1497_v17 = vadd.f32 %v6726_v41, %v1471_v0  ;;  %v1447_v2 = vmul.f32 %v5871_v1, %v6658_v25 }
 0x26f   : > { %v1448_v53 = vmul.f32 %v5873_v57, %v6667_v63  ;;  %v1498_v10 = vadd.f32 %v6726_v41, %v1472_v5 }
 0x270   : > { %v1511_v6 = vpack.c.bf16 %v1497_v17, %v1496_v4  ;;  %v1473_v7 = vmul.f32 %v6717_v19, %v1447_v2 }
 0x271   : > { %v5875_v8 = vpop.eup %5874  ;;  %v1474_v32 = vmul.f32 %v6717_v19, %v1448_v53 }
 0x272   : > { %v5877_v11 = vpop.eup %5876  ;;  %v1499_v18 = vadd.f32 %v6726_v41, %v1473_v7  ;;  %v1449_v20 = vmul.f32 %v5875_v8, %v6670_v29 }
 0x273   : > { %5312 = vmatmul.mubr.msk.bf16.gmra.mxu0 %vm1192_vm1, %v1511_v6  ;;  %5336 = vmatmul.mubr.msk.bf16.gmra.mxu1 %vm1192_vm1, %v1511_v6  ;;  %v1450_v25 = vmul.f32 %v5877_v11, %v6679_v9  ;;  %v1500_v36 = vadd.f32 %v6726_v41, %v1474_v32 }
 0x274   : > { %v1512_v63 = vpack.c.bf16 %v1499_v18, %v1498_v10  ;;  %v1475_v22 = vmul.f32 %v6717_v19, %v1449_v20 }
 0x275   : > { %v5879_v3 = vpop.eup %5878  ;;  %v1476_v30 = vmul.f32 %v6717_v19, %v1450_v25 }
 0x276   : > { %v5881_v26 = vpop.eup %5880  ;;  %5315 = vmatprep.mubr.msk.bf16.mxu0 %vm1192_vm1, %v1512_v63  ;;  %5339 = vmatprep.mubr.msk.bf16.mxu1 %vm1192_vm1, %v1512_v63  ;;  %v1501_v14 = vadd.f32 %v6726_v41, %v1475_v22  ;;  %v1451_v29 = vmul.f32 %v5879_v3, %v6682_v33 }
 0x277   : > { %v1452_v31 = vmul.f32 %v5881_v26, %v6691_v37  ;;  %v1502_v34 = vadd.f32 %v6726_v41, %v1476_v30 }
 0x278   : > { %v1513_v9 = vpack.c.bf16 %v1501_v14, %v1500_v36  ;;  %v1477_v12 = vmul.f32 %v6717_v19, %v1451_v29 }
 0x279   : > { %v5883_v40 = vpop.eup %5882  ;;  %v1478_v38 = vmul.f32 %v6717_v19, %v1452_v31 }
 0x27a   : > { %v1503_v48 = vadd.f32 %v6726_v41, %v1477_v12  ;;  %v1453_v35 = vmul.f32 %v5883_v40, %v6694_v23  ;;  %v8392_v23 = vmov 0.0  }
 0x27b   : > { %5316 = vmatmul.mubr.msk.bf16.gmra.mxu0 %vm1192_vm1, %v1513_v9  ;;  %5340 = vmatmul.mubr.msk.bf16.gmra.mxu1 %vm1192_vm1, %v1513_v9  ;;  %v1504_v37 = vadd.f32 %v6726_v41, %v1478_v38 }
 0x27c   : > { %v1514_v33 = vpack.c.bf16 %v1503_v48, %v1502_v34  ;;  %v1479_v13 = vmul.f32 %v6717_v19, %v1453_v35  ;;  %5371 = vmatprep.subr.bf16.mxu1 %v8392_v23  ;;  %5401 = vmatprep.subr.bf16.mxu0 %v8392_v23 }
 0x27e   : > { %5319 = vmatprep.mubr.msk.bf16.mxu0 %vm1192_vm1, %v1514_v33  ;;  %5343 = vmatprep.mubr.msk.bf16.mxu1 %vm1192_vm1, %v1514_v33  ;;  %v1505_v16 = vadd.f32 %v6726_v41, %v1479_v13 }
 0x280   : > { %v1515_v44 = vpack.c.bf16 %v1505_v16, %v1504_v37 }
 0x283   : > { %5320 = vmatmul.mubr.msk.bf16.gmra.mxu0 %vm1192_vm1, %v1515_v44  ;;  %5344 = vmatmul.mubr.msk.bf16.gmra.mxu1 %vm1192_vm1, %v1515_v44 }
 0x284   : > { %5351 = vmatprep.mubr.msk.bf16.mxu0 %vm1192_vm1, %v6736_v61  ;;  %5381 = vmatprep.mubr.msk.bf16.mxu1 %vm6201_vm2, %v8392_v23 }
 0x28b   : > { %5352 = vmatmul.mubr.msk.bf16.vlgmr.msra.gmra.mxu0 %vm1192_vm1, %v6749_v21 }
 0x28c   : > { %5355 = vmatprep.mubr.msk.bf16.mxu0 %vm1192_vm1, %v6761_v39 }
 0x293   : > { %5356 = vmatmul.mubr.msk.bf16.gmra.mxu0 %vm1192_vm1, %v6775_v55 }
 0x294   : > { %5359 = vmatprep.mubr.msk.bf16.mxu0 %vm1192_vm1, %v1510_v28 }
 0x29b   : > { %5360 = vmatmul.mubr.msk.bf16.gmra.mxu0 %vm1192_vm1, %v1511_v6 }
 0x29c   : > { %5363 = vmatprep.mubr.msk.bf16.mxu0 %vm1192_vm1, %v1512_v63 }
 0x2a3   : > { %5364 = vmatmul.mubr.msk.bf16.gmra.mxu0 %vm1192_vm1, %v1513_v9 }
 0x2a4   : > { %5367 = vmatprep.mubr.msk.bf16.mxu0 %vm1192_vm1, %v1514_v33 }
 0x2ab   : > { %5368 = vmatmul.mubr.msk.bf16.gmra.mxu0 %vm1192_vm1, %v1515_v44 }
 0x2ac   : > { %5411 = vmatprep.mubr.msk.bf16.mxu0 %vm6201_vm2, %v8392_v23 }
 0x323   : > { %v5305_v19 = vpop.f32.mrf.mxu0  ;;  %v5329_v41 = vpop.f32.mrf.mxu1 }
 0x325   : > { %v6844_v61 = vpop.f32.mrf.mxu0  ;;  %v1725_v21 = vpop.f32.mrf.mxu1 }
 0x327   : > { %v5306_v39 = vpop.f32.mrf.mxu0  ;;  %v5330_v45 = vpop.f32.mrf.mxu1 }
 0x328   : > { %v6846_v46 = vpack.c.bf16 %v5306_v39, %v5305_v19  ;;  %v6848_v27 = vpack.c.bf16 %v5330_v45, %v5329_v41 }
 0x329   : > { %v6850_v47 = vpop.f32.mrf.mxu0  ;;  %v1728_v50 = vpop.f32.mrf.mxu1 }
 0x32a   : > { %2624 = vrot.lane.b32.xlu0 %v6848_v27, %s6202_s4  ;;  %v6854_v52 = vpack.c.bf16 %v1728_v50, %v1725_v21  ;;  %v1986_v37 = vsel %vm1966_vm3, %v6848_v27, 0 }
 0x32b   : > { %v5309_v42 = vpop.f32.mrf.mxu0  ;;  %v5333_v51 = vpop.f32.mrf.mxu1 }
 0x32c   : > { %v1983_v45 = vsel %vm1966_vm3, %v6854_v52, 0 }
 0x32d   : > { %v6856_v24 = vpop.f32.mrf.mxu0  ;;  %v1741_v56 = vpop.f32.mrf.mxu1 }
 0x32e   : > { %2622 = vrot.lane.b32.xlu0 %v6854_v52, %s6202_s4 }
 0x32f   : > { %v5310_v54 = vpop.f32.mrf.mxu0  ;;  %v5334_v55 = vpop.f32.mrf.mxu1 }
 0x330   : > { %v6860_v15 = vpack.c.bf16 %v5310_v54, %v5309_v42  ;;  %v1946_v49 = vpack.c.bf16 %v5334_v55, %v5333_v51 }
 0x331   : > { %v6862_v58 = vpop.f32.mrf.mxu0  ;;  %v1744_v59 = vpop.f32.mrf.mxu1 }
 0x332   : > { %v1945_v60 = vpack.c.bf16 %v1744_v59, %v1741_v56  ;;  %2628 = vrot.lane.b32.xlu1 %v1946_v49, %s6202_s4  ;;  %v1992_v63 = vsel %vm1966_vm3, %v1946_v49, 0  ;;  %v6924_v56 = vpack.c.bf16 %v6850_v47, %v6844_v61 }
 0x333   : > { %v6865_v62 = vpop.f32.mrf.mxu0  ;;  %v6867_v43 = vpop.f32.mrf.mxu1 }
 0x334   : > { %2626 = vrot.lane.b32.xlu0 %v1945_v60, %s6202_s4  ;;  %v1989_v34 = vsel %vm1966_vm3, %v1945_v60, 0 }
 0x335   : > { %v6870_v28 = vpop.f32.mrf.mxu0  ;;  %v1757_v0 = vpop.f32.mrf.mxu1 }
 0x337   : > { %v6872_v1 = vpop.f32.mrf.mxu0  ;;  %v6874_v4 = vpop.f32.mrf.mxu1 }
 0x338   : > { %v6938_v61 = vpack.c.bf16 %v6874_v4, %v6867_v43 }
 0x339   : > { %v6876_v57 = vpop.f32.mrf.mxu0  ;;  %v1760_v17 = vpop.f32.mrf.mxu1 }
 0x33a   : > { %v1947_v2 = vpack.c.bf16 %v1760_v17, %v1757_v0  ;;  %v2086_v0 = vsel %vm1966_vm3, %v6938_v61, 0 }
 0x33b   : > { %v6878_v5 = vpop.f32.mrf.mxu0  ;;  %v5341_v53 = vpop.f32.mrf.mxu1 }
 0x33c   : > { %2630 = vrot.lane.b32.xlu0 %v1947_v2, %s6202_s4  ;;  %v1995_v6 = vsel %vm1966_vm3, %v1947_v2, 0 }
 0x33d   : > { %v6882_v7 = vpop.f32.mrf.mxu0  ;;  %v1773_v8 = vpop.f32.mrf.mxu1  ;;  %5372 = vmatpush3.bf16.xpose.msra.mxu1 %v1995_v6  ;;  %v6960_v6 = vpack.c.bf16 %v6872_v1, %v6865_v62 }
 0x33e   : > { %5373 = vmatprep.subr.bf16.mxu1 %v8392_v23 }
 0x33f   : > { %v6885_v32 = vpop.f32.mrf.mxu0  ;;  %v5342_v11 = vpop.f32.mrf.mxu1 }
 0x340   : > { %v6909_v44 = vpack.c.bf16 %v5342_v11, %v5341_v53  ;;  %v6967_v11 = vpack.c.bf16 %v6862_v58, %v6856_v24 }
 0x341   : > { %v6887_v10 = vpop.f32.mrf.mxu0  ;;  %v1776_v18 = vpop.f32.mrf.mxu1 }
 0x342   : > { %v2092_v21 = vsel %vm1966_vm3, %v6909_v44, 0  ;;  %v6919_v50 = vpack.c.bf16 %v1776_v18, %v1773_v8  ;;  %v6990_v58 = vpack.c.bf16 %v6887_v10, %v6882_v7  ;;  %v7010_v7 = vpack.c.bf16 %v6885_v32, %v6878_v5 }
 0x343   : > { %v5321_v20 = vpop.f32.mrf.mxu0  ;;  %v5345_v25 = vpop.f32.mrf.mxu1 }
 0x344   : > { %v2089_v55 = vsel %vm1966_vm3, %v6919_v50, 0 }
 0x345   : > { %v6890_v22 = vpop.f32.mrf.mxu0  ;;  %v1789_v3 = vpop.f32.mrf.mxu1  ;;  %5374 = vmatpush3.bf16.xpose.msra.mxu1 %v1992_v63 }
 0x346   : > { %5375 = vmatprep.subr.bf16.mxu1 %v8392_v23 }
 0x347   : > { %v5322_v36 = vpop.f32.mrf.mxu0  ;;  %v5346_v26 = vpop.f32.mrf.mxu1 }
 0x348   : > { %v6893_v14 = vpack.c.bf16 %v5322_v36, %v5321_v20  ;;  %v1952_v29 = vpack.c.bf16 %v5346_v26, %v5345_v25  ;;  %v7018_v25 = vpack.c.bf16 %v6876_v57, %v6870_v28  ;;  %v8391_v57 = vlaneseq }
 0x349   : > { %v6895_v30 = vpop.f32.mrf.mxu0  ;;  %v1792_v31 = vpop.f32.mrf.mxu1 }
 0x34a   : > { %v2098_v9 = vsel %vm1966_vm3, %v1952_v29, 0  ;;  %2763 = vrot.lane.b32.xlu1 %v1952_v29, %s6202_s4  ;;  %v1951_v40 = vpack.c.bf16 %v1792_v31, %v1789_v3  ;;  %v7032_v28 = vpack.c.bf16 %v6895_v30, %v6890_v22  ;;  %v7043_v5 = vand.u32 127, %v8391_v57 }
 0x34b   : > { %v5353_v12 = vpop.f32.mrf.mxu0  ;;  %5402 = vmatpush3.bf16.xpose.msra.mxu0 %v2098_v9 }
 0x34c   : > { %5403 = vmatprep.subr.bf16.mxu0 %v8392_v23  ;;  %v2095_v33 = vsel %vm1966_vm3, %v1951_v40, 0  ;;  %vm1965_vm4 = vcmp.lt.s32.totalorder %v7043_v5, 65 }
 0x34d   : > { %v6901_v48 = vpop.f32.mrf.mxu0  ;;  %5376 = vmatpush3.bf16.xpose.msra.mxu1 %v1989_v34 }
 0x34e   : > { %2761 = vrot.lane.b32.xlu1 %v1951_v40, %s6202_s4  ;;  %5377 = vmatprep.subr.bf16.mxu1 %v8392_v23 }
 0x34f   : > { %v5354_v35 = vpop.f32.mrf.mxu0 }
 0x350   : > { %v6956_v4 = vpack.c.bf16 %v5354_v35, %v5353_v12 }
 0x351   : > { %v1857_v38 = vpop.f32.mrf.mxu0 }
 0x352   : > { %v6973_v20 = vpack.c.bf16 %v1857_v38, %v6901_v48 }
 0x353   : > { %v5357_v13 = vpop.f32.mrf.mxu0  ;;  %5404 = vmatpush3.bf16.xpose.msra.mxu0 %v2095_v33 }
 0x354   : > { %5405 = vmatprep.subr.bf16.mxu0 %v8392_v23 }
 0x355   : > { %v1870_v16 = vpop.f32.mrf.mxu0  ;;  %5378 = vmatpush3.bf16.xpose.msra.mxu1 %v1986_v37 }
 0x356   : > { %5379 = vmatprep.subr.bf16.mxu1 %v8392_v23 }
 0x357   : > { %v5358_v19 = vpop.f32.mrf.mxu0 }
 0x358   : > { %v6941_v47 = vpack.c.bf16 %v5358_v19, %v5357_v13 }
 0x359   : > { %v1873_v41 = vpop.f32.mrf.mxu0 }
 0x35a   : > { %v6947_v17 = vpack.c.bf16 %v1873_v41, %v1870_v16 }
 0x35b   : > { %v6914_v39 = vpop.f32.mrf.mxu0  ;;  %5406 = vmatpush3.bf16.xpose.msra.mxu0 %v2092_v21 }
 0x35c   : > { %5407 = vmatprep.subr.bf16.mxu0 %v8392_v23 }
 0x35d   : > { %v1886_v27 = vpop.f32.mrf.mxu0  ;;  %5380 = vmatpush3.bf16.xpose.msra.mxu1 %v1983_v45 }
 0x35e   : > { %5431 = vmatprep.subr.bf16.mxu1 %v8392_v23 }
 0x35f   : > { %v5362_v42 = vpop.f32.mrf.mxu0 }
 0x360   : > { %v7014_v10 = vpack.c.bf16 %v5362_v42, %v6914_v39 }
 0x361   : > { %v1889_v51 = vpop.f32.mrf.mxu0 }
 0x362   : > { %v6926_v54 = vpack.c.bf16 %v1889_v51, %v1886_v27 }
 0x363   : > { %v5365_v52 = vpop.f32.mrf.mxu0  ;;  %5408 = vmatpush3.bf16.xpose.msra.mxu0 %v2089_v55 }
 0x364   : > { %5382 = vmatmul.mubr.msk.bf16.vlgmr.msra.gmra.mxu1 %vm1966_vm3, %v6924_v56  ;;  %5409 = vmatprep.subr.bf16.mxu0 %v8392_v23 }
 0x365   : > { %v1902_v49 = vpop.f32.mrf.mxu0  ;;  %5432 = vmatpush3.bf16.msra.mxu1 %v6926_v54  ;;  %5385 = vmatprep.mubr.msk.bf16.mxu1 %vm6201_vm2, %v8392_v23 }
 0x366   : > { %5433 = vmatprep.subr.bf16.mxu1 %v8392_v23 }
 0x367   : > { %v5366_v59 = vpop.f32.mrf.mxu0 }
 0x368   : > { %v6993_v62 = vpack.c.bf16 %v5366_v59, %v5365_v52 }
 0x369   : > { %v1905_v60 = vpop.f32.mrf.mxu0  ;;  %5434 = vmatpush3.bf16.msra.mxu1 %v6941_v47 }
 0x36a   : > { %5435 = vmatprep.subr.bf16.mxu1 %v8392_v23  ;;  %v7003_v1 = vpack.c.bf16 %v1905_v60, %v1902_v49 }
 0x36b   : > { %v5369_v2 = vpop.f32.mrf.mxu0  ;;  %5410 = vmatpush3.bf16.xpose.msra.mxu0 %v2086_v0 }
 0x36c   : > { %5386 = vmatmul.mubr.msk.bf16.gmra.mxu1 %vm1966_vm3, %v6846_v46  ;;  %5461 = vmatprep.subr.bf16.mxu0 %v8392_v23 }
 0x36d   : > { %v1918_v43 = vpop.f32.mrf.mxu0  ;;  %5436 = vmatpush3.bf16.msra.mxu1 %v6947_v17  ;;  %5389 = vmatprep.mubr.msk.bf16.mxu1 %vm6201_vm2, %v8392_v23 }
 0x36e   : > { %5437 = vmatprep.subr.bf16.mxu1 %v8392_v23 }
 0x36f   : > { %v5370_v53 = vpop.f32.mrf.mxu0 }
 0x370   : > { %v6962_v8 = vpack.c.bf16 %v5370_v53, %v5369_v2 }
 0x371   : > { %5438 = vmatpush3.bf16.msra.mxu1 %v6956_v4  ;;  %v1921_v18 = vpop.f32.mrf.mxu0 }
 0x372   : > { %5412 = vmatmul.mubr.msk.bf16.vlgmr.msra.gmra.mxu0 %vm1966_vm3, %v6960_v6  ;;  %5439 = vmatprep.subr.bf16.mxu1 %v8392_v23  ;;  %v6981_v24 = vpack.c.bf16 %v1921_v18, %v1918_v43 }
 0x373   : > { %5462 = vmatpush3.bf16.msra.mxu0 %v6962_v8  ;;  %5415 = vmatprep.mubr.msk.bf16.mxu0 %vm6201_vm2, %v8392_v23 }
 0x374   : > { %5390 = vmatmul.mubr.msk.bf16.gmra.mxu1 %vm1966_vm3, %v6967_v11  ;;  %5463 = vmatprep.subr.bf16.mxu0 %v8392_v23 }
 0x375   : > { %5440 = vmatpush3.bf16.msra.mxu1 %v6973_v20  ;;  %5393 = vmatprep.mubr.msk.bf16.mxu1 %vm6201_vm2, %v8392_v23 }
 0x376   : > { %5491 = vmatprep.subr.bf16.mxu1 %v8392_v23 }
 0x377   : > { %5464 = vmatpush3.bf16.msra.mxu0 %v6981_v24 }
 0x378   : > { %5465 = vmatprep.subr.bf16.mxu0 %v8392_v23 }
 0x37a   : > { %5416 = vmatmul.mubr.msk.bf16.gmra.mxu0 %vm1966_vm3, %v6990_v58 }
 0x37b   : > { %5466 = vmatpush3.bf16.msra.mxu0 %v6993_v62  ;;  %5419 = vmatprep.mubr.msk.bf16.mxu0 %vm6201_vm2, %v8392_v23 }
 0x37c   : > { %5394 = vmatmul.mubr.msk.bf16.gmra.mxu1 %vm1966_vm3, %v6860_v15  ;;  %5467 = vmatprep.subr.bf16.mxu0 %v8392_v23 }
 0x37d   : > { %5397 = vmatprep.mubr.msk.bf16.mxu1 %vm6201_vm2, %v8392_v23 }
 0x37f   : > { %5468 = vmatpush3.bf16.msra.mxu0 %v7003_v1 }
 0x380   : > { %5469 = vmatprep.subr.bf16.mxu0 %v8392_v23 }
 0x382   : > { %5420 = vmatmul.mubr.msk.bf16.gmra.mxu0 %vm1966_vm3, %v7010_v7 }
 0x383   : > { %5470 = vmatpush3.bf16.msra.mxu0 %v7014_v10  ;;  %5423 = vmatprep.mubr.msk.bf16.mxu0 %vm6201_vm2, %v8392_v23 }
 0x384   : > { %5398 = vmatmul.mubr.msk.bf16.gmra.mxu1 %vm1966_vm3, %v7018_v25  ;;  %5521 = vmatprep.subr.bf16.mxu0 %v8392_v23 }
 0x385   : > { %5441 = vmatprep.mubr.msk.bf16.mxu1 %vm6201_vm2, %v8392_v23 }
 0x38a   : > { %5424 = vmatmul.mubr.msk.bf16.gmra.mxu0 %vm1966_vm3, %v7032_v28 }
 0x38b   : > { %5427 = vmatprep.mubr.msk.bf16.mxu0 %vm6201_vm2, %v8392_v23 }
 0x392   : > { %5428 = vmatmul.mubr.msk.bf16.gmra.mxu0 %vm1966_vm3, %v6893_v14 }
 0x393   : > { %5471 = vmatprep.mubr.msk.bf16.mxu0 %vm6201_vm2, %v8392_v23 }
 0x424   : > { %v2031_v32 = vpop.f32.mrf.mxu1 }
 0x425   : > { %v7048_v63 = vsel %vm1965_vm4, %v2031_v32, -1e+30 }
 0x426   : > { %v5383_v22 = vpop.f32.mrf.mxu1  ;;  %v2196_v3 = vsel %vm2195_vm5, %v7048_v63, -inf }
 0x427   : > { %2197 = vmax.xlane.f32.xlu0 %v2196_v3 }
 0x428   : > { %v2034_v36 = vpop.f32.mrf.mxu1 }
 0x429   : > { %v7054_v26 = vsel %vm1965_vm4, %v2034_v36, -1e+30 }
 0x42a   : > { %v5384_v29 = vpop.f32.mrf.mxu1  ;;  %v2199_v30 = vsel %vm2195_vm5, %v7054_v26, -inf }
 0x42b   : > { %2200 = vmax.xlane.f32.xlu1 %v2199_v30 }
 0x42c   : > { %v2039_v31 = vpop.f32.mrf.mxu1 }
 0x42d   : > { %v7060_v9 = vsel %vm1965_vm4, %v2039_v31, -1e+30 }
 0x42e   : > { %v5387_v12 = vpop.f32.mrf.mxu1  ;;  %v2202_v40 = vsel %vm2195_vm5, %v7060_v9, -inf }
 0x42f   : > { %2203 = vmax.xlane.f32.xlu0 %v2202_v40 }
 0x430   : > { %v2042_v34 = vpop.f32.mrf.mxu1 }
 0x431   : > { %v7066_v48 = vsel %vm1965_vm4, %v2042_v34, -1e+30 }
 0x432   : > { %v5388_v35 = vpop.f32.mrf.mxu1  ;;  %v2134_v38 = vpop.f32.mrf.mxu0  ;;  %v2205_v33 = vsel %vm2195_vm5, %v7066_v48, -inf }
 0x433   : > { %v7072_v13 = vsel %vm1965_vm4, %v2134_v38, -1e+30  ;;  %2206 = vmax.xlane.f32.xlu1 %v2205_v33 }
 0x434   : > { %v2047_v37 = vpop.f32.mrf.mxu1  ;;  %v5413_v16 = vpop.f32.mrf.mxu0  ;;  %v2226_v19 = vsel %vm2195_vm5, %v7072_v13, -inf }
 0x435   : > { %v7078_v41 = vsel %vm1965_vm4, %v2047_v37, -1e+30  ;;  %2227 = vmax.xlane.f32.xlu0 %v2226_v19 }
 0x436   : > { %v5391_v21 = vpop.f32.mrf.mxu1  ;;  %v2137_v39 = vpop.f32.mrf.mxu0  ;;  %v2208_v51 = vsel %vm2195_vm5, %v7078_v41, -inf }
 0x437   : > { %v7082_v45 = vsel %vm1965_vm4, %v2137_v39, -1e+30 }
 0x438   : > { %v2050_v27 = vpop.f32.mrf.mxu1  ;;  %v5414_v42 = vpop.f32.mrf.mxu0  ;;  %v2229_v55 = vsel %vm2195_vm5, %v7082_v45, -inf }
 0x439   : > { %v7090_v52 = vsel %vm1965_vm4, %v2050_v27, -1e+30  ;;  %2209 = vmax.xlane.f32.xlu0 %v2208_v51  ;;  %2230 = vmax.xlane.f32.xlu1 %v2229_v55 }
 0x43a   : > { %v5392_v49 = vpop.f32.mrf.mxu1  ;;  %v2142_v59 = vpop.f32.mrf.mxu0  ;;  %v2211_v43 = vsel %vm2195_vm5, %v7090_v52, -inf }
 0x43b   : > { %v7094_v60 = vsel %vm1965_vm4, %v2142_v59, -1e+30 }
 0x43c   : > { %v2055_v0 = vpop.f32.mrf.mxu1  ;;  %v5417_v2 = vpop.f32.mrf.mxu0  ;;  %v2232_v53 = vsel %vm2195_vm5, %v7094_v60, -inf }
 0x43d   : > { %v7102_v18 = vsel %vm1965_vm4, %v2055_v0, -1e+30  ;;  %2212 = vmax.xlane.f32.xlu1 %v2211_v43  ;;  %2233 = vmax.xlane.f32.xlu0 %v2232_v53 }
 0x43e   : > { %v5395_v32 = vpop.f32.mrf.mxu1  ;;  %v2145_v22 = vpop.f32.mrf.mxu0  ;;  %v2214_v30 = vsel %vm2195_vm5, %v7102_v18, -inf }
 0x43f   : > { %v7106_v3 = vsel %vm1965_vm4, %v2145_v22, -1e+30 }
 0x440   : > { %v2058_v36 = vpop.f32.mrf.mxu1  ;;  %v5418_v29 = vpop.f32.mrf.mxu0  ;;  %v2235_v31 = vsel %vm2195_vm5, %v7106_v3, -inf }
 0x441   : > { %v7114_v12 = vsel %vm1965_vm4, %v2058_v36, -1e+30  ;;  %2215 = vmax.xlane.f32.xlu0 %v2214_v30  ;;  %2236 = vmax.xlane.f32.xlu1 %v2235_v31 }
 0x442   : > { %v5396_v40 = vpop.f32.mrf.mxu1  ;;  %v2150_v34 = vpop.f32.mrf.mxu0  ;;  %v2217_v37 = vsel %vm2195_vm5, %v7114_v12, -inf }
 0x443   : > { %v7118_v35 = vsel %vm1965_vm4, %v2150_v34, -1e+30 }
 0x444   : > { %v2063_v38 = vpop.f32.mrf.mxu1  ;;  %v5421_v33 = vpop.f32.mrf.mxu0  ;;  %v2238_v16 = vsel %vm2195_vm5, %v7118_v35, -inf }
 0x445   : > { %v7126_v19 = vsel %vm1965_vm4, %v2063_v38, -1e+30  ;;  %2218 = vmax.xlane.f32.xlu1 %v2217_v37  ;;  %2239 = vmax.xlane.f32.xlu0 %v2238_v16 }
 0x446   : > { %v5399_v21 = vpop.f32.mrf.mxu1  ;;  %v2153_v39 = vpop.f32.mrf.mxu0  ;;  %v2220_v55 = vsel %vm2195_vm5, %v7126_v19, -inf }
 0x447   : > { %v7130_v27 = vsel %vm1965_vm4, %v2153_v39, -1e+30 }
 0x448   : > { %v2066_v42 = vpop.f32.mrf.mxu1  ;;  %v5422_v51 = vpop.f32.mrf.mxu0  ;;  %v2241_v49 = vsel %vm2195_vm5, %v7130_v27, -inf }
 0x449   : > { %v7138_v59 = vsel %vm1965_vm4, %v2066_v42, -1e+30  ;;  %2221 = vmax.xlane.f32.xlu0 %v2220_v55  ;;  %2242 = vmax.xlane.f32.xlu1 %v2241_v49  ;;  %v7168_v42 = vpop.permute.xlu0 %2624  ;;  %v7172_v55 = vpop.permute.xlu1 %2628 }
 0x44a   : > { %v5400_v0 = vpop.f32.mrf.mxu1  ;;  %v2158_v2 = vpop.f32.mrf.mxu0  ;;  %v2223_v32 = vsel %vm2195_vm5, %v7138_v59, -inf }
 0x44b   : > { %v7142_v43 = vsel %vm1965_vm4, %v2158_v2, -1e+30 }
 0x44c   : > { %v5425_v53 = vpop.f32.mrf.mxu0  ;;  %v2244_v22 = vsel %vm2195_vm5, %v7142_v43, -inf }
 0x44d   : > { %2224 = vmax.xlane.f32.xlu1 %v2223_v32  ;;  %2245 = vmax.xlane.f32.xlu0 %v2244_v22  ;;  %v7170_v51 = vpop.permute.xlu0 %2622  ;;  %v7176_v0 = vpop.permute.xlu1 %2763 }
 0x44e   : > { %v2161_v36 = vpop.f32.mrf.mxu0 }
 0x44f   : > { %v7150_v29 = vsel %vm1965_vm4, %v2161_v36, -1e+30 }
 0x450   : > { %v5426_v30 = vpop.f32.mrf.mxu0  ;;  %v2247_v31 = vsel %vm2195_vm5, %v7150_v29, -inf }
 0x451   : > { %2248 = vmax.xlane.f32.xlu1 %v2247_v31  ;;  %v7174_v49 = vpop.permute.xlu0 %2626  ;;  %v7180_v53 = vpop.permute.xlu1 %2761 }
 0x452   : > { %v2166_v40 = vpop.f32.mrf.mxu0 }
 0x453   : > { %v7156_v34 = vsel %vm1965_vm4, %v2166_v40, -1e+30 }
 0x454   : > { %v5429_v38 = vpop.f32.mrf.mxu0  ;;  %v2250_v33 = vsel %vm2195_vm5, %v7156_v34, -inf }
 0x455   : > { %2251 = vmax.xlane.f32.xlu0 %v2250_v33  ;;  %v7178_v2 = vpop.permute.xlu0 %2630 }
 0x456   : > { %v2169_v37 = vpop.f32.mrf.mxu0 }
 0x457   : > { %v7162_v16 = vsel %vm1965_vm4, %v2169_v37, -1e+30 }
 0x458   : > { %v5430_v21 = vpop.f32.mrf.mxu0  ;;  %v2253_v39 = vsel %vm2195_vm5, %v7162_v16, -inf }
 0x459   : > { %2254 = vmax.xlane.f32.xlu1 %v2253_v39 }
 0x46b   : > { %2759 = vrot.lane.b32.xlu0 %v6909_v44, %s6202_s4 }
 0x4b0   : > { %v2198_v32 = vpop.xlane.xlu0 %2197 }
 0x4b1   : > { %v2256_v22 = vsub.f32 %v7048_v63, %v2198_v32 }
 0x4b3   : > { %v2276_v36 = vmul.f32 1.442695, %v2256_v22 }
 0x4b4   : > { %v2201_v30 = vpop.xlane.xlu1 %2200 }
 0x4b5   : > { %5884 = vpow2.f32 %v2276_v36  ;;  %v2257_v44 = vsub.f32 %v7054_v26, %v2201_v30 }
 0x4b7   : > { %v2278_v31 = vmul.f32 1.442695, %v2257_v44 }
 0x4b8   : > { %v2204_v40 = vpop.xlane.xlu0 %2203 }
 0x4b9   : > { %5886 = vpow2.f32 %v2278_v31  ;;  %v2258_v38 = vsub.f32 %v7060_v9, %v2204_v40 }
 0x4bb   : > { %v2280_v33 = vmul.f32 1.442695, %v2258_v38 }
 0x4bc   : > { %v2207_v37 = vpop.xlane.xlu1 %2206 }
 0x4bd   : > { %5888 = vpow2.f32 %v2280_v33  ;;  %v2259_v21 = vsub.f32 %v7066_v48, %v2207_v37 }
 0x4be   : > { %v2228_v39 = vpop.xlane.xlu0 %2227 }
 0x4bf   : > { %v2282_v57 = vmul.f32 1.442695, %v2259_v21  ;;  %v2266_v23 = vsub.f32 %v7072_v13, %v2228_v39 }
 0x4c1   : > { %5890 = vpow2.f32 %v2282_v57  ;;  %v2296_v63 = vmul.f32 1.442695, %v2266_v23 }
 0x4c2   : > { %v7187_v32 = vpop.eup %5884  ;;  %v2231_v22 = vpop.xlane.xlu1 %2230 }
 0x4c3   : > { %v2210_v26 = vpop.xlane.xlu0 %2209  ;;  %5892 = vpow2.f32 %v2296_v63  ;;  %v2267_v36 = vsub.f32 %v7082_v45, %v2231_v22  ;;  %v2316_v30 = vsel %vm2195_vm5, %v7187_v32, 0.0 }
 0x4c4   : > { %v2260_v9 = vsub.f32 %v7078_v41, %v2210_v26  ;;  %2317 = vadd.xlane.f32.xlu0 %v2316_v30 }
 0x4c5   : > { %v2298_v48 = vmul.f32 1.442695, %v2267_v36 }
 0x4c6   : > { %v2284_v44 = vmul.f32 1.442695, %v2260_v9  ;;  %v7193_v31 = vpop.eup %5886  ;;  %v2213_v13 = vpop.xlane.xlu1 %2212 }
 0x4c7   : > { %v2234_v57 = vpop.xlane.xlu0 %2233  ;;  %5894 = vpow2.f32 %v2298_v48  ;;  %v2261_v23 = vsub.f32 %v7090_v52, %v2213_v13  ;;  %v2319_v45 = vsel %vm2195_vm5, %v7193_v31, 0.0 }
 0x4c8   : > { %v2268_v40 = vsub.f32 %v7094_v60, %v2234_v57  ;;  %5896 = vpow2.f32 %v2284_v44  ;;  %2320 = vadd.xlane.f32.xlu1 %v2319_v45 }
 0x4c9   : > { %v2286_v41 = vmul.f32 1.442695, %v2261_v23 }
 0x4ca   : > { %v2300_v38 = vmul.f32 1.442695, %v2268_v40  ;;  %v7199_v33 = vpop.eup %5888  ;;  %v2237_v37 = vpop.xlane.xlu1 %2236 }
 0x4cb   : > { %v2216_v21 = vpop.xlane.xlu0 %2215  ;;  %5898 = vpow2.f32 %v2286_v41  ;;  %v2269_v39 = vsub.f32 %v7106_v3, %v2237_v37  ;;  %v2322_v52 = vsel %vm2195_vm5, %v7199_v33, 0.0 }
 0x4cc   : > { %v2262_v63 = vsub.f32 %v7102_v18, %v2216_v21  ;;  %5900 = vpow2.f32 %v2300_v38  ;;  %2323 = vadd.xlane.f32.xlu0 %v2322_v52 }
 0x4cd   : > { %v2302_v60 = vmul.f32 1.442695, %v2269_v39 }
 0x4ce   : > { %v2288_v22 = vmul.f32 1.442695, %v2262_v63  ;;  %v7205_v26 = vpop.eup %5890  ;;  %v2219_v36 = vpop.xlane.xlu1 %2218 }
 0x4cf   : > { %v2240_v9 = vpop.xlane.xlu0 %2239  ;;  %5902 = vpow2.f32 %v2302_v60  ;;  %v2263_v30 = vsub.f32 %v7114_v12, %v2219_v36  ;;  %v2325_v3 = vsel %vm2195_vm5, %v7205_v26, 0.0 }
 0x4d0   : > { %v2270_v48 = vsub.f32 %v7118_v35, %v2240_v9  ;;  %v7211_v18 = vpop.eup %5892  ;;  %5904 = vpow2.f32 %v2288_v22  ;;  %2326 = vadd.xlane.f32.xlu1 %v2325_v3 }
 0x4d1   : > { %v2290_v44 = vmul.f32 1.442695, %v2263_v30  ;;  %v2346_v57 = vsel %vm2195_vm5, %v7211_v18, 0.0 }
 0x4d2   : > { %v2304_v13 = vmul.f32 1.442695, %v2270_v48  ;;  %v2243_v23 = vpop.xlane.xlu1 %2242  ;;  %2347 = vadd.xlane.f32.xlu0 %v2346_v57 }
 0x4d3   : > { %v2222_v40 = vpop.xlane.xlu0 %2221  ;;  %5906 = vpow2.f32 %v2290_v44  ;;  %v2271_v35 = vsub.f32 %v7130_v27, %v2243_v23 }
 0x4d4   : > { %v2264_v12 = vsub.f32 %v7126_v19, %v2222_v40  ;;  %v7216_v45 = vpop.eup %5894  ;;  %5908 = vpow2.f32 %v2304_v13 }
 0x4d5   : > { %v7219_v41 = vpop.eup %5896  ;;  %v2349_v37 = vsel %vm2195_vm5, %v7216_v45, 0.0  ;;  %v2306_v60 = vmul.f32 1.442695, %v2271_v35 }
 0x4d6   : > { %v2292_v38 = vmul.f32 1.442695, %v2264_v12  ;;  %v2225_v21 = vpop.xlane.xlu1 %2224  ;;  %2350 = vadd.xlane.f32.xlu1 %v2349_v37  ;;  %v2328_v39 = vsel %vm2195_vm5, %v7219_v41, 0.0 }
 0x4d7   : > { %v2246_v63 = vpop.xlane.xlu0 %2245  ;;  %2329 = vadd.xlane.f32.xlu0 %v2328_v39  ;;  %v2265_v22 = vsub.f32 %v7138_v59, %v2225_v21 }
 0x4d8   : > { %v2272_v19 = vsub.f32 %v7142_v43, %v2246_v63  ;;  %v7226_v52 = vpop.eup %5898  ;;  %5910 = vpow2.f32 %v2292_v38 }
 0x4d9   : > { %v7228_v27 = vpop.eup %5900  ;;  %v2331_v9 = vsel %vm2195_vm5, %v7226_v52, 0.0  ;;  %v2294_v3 = vmul.f32 1.442695, %v2265_v22 }
 0x4da   : > { %v2308_v36 = vmul.f32 1.442695, %v2272_v19  ;;  %2332 = vadd.xlane.f32.xlu1 %v2331_v9  ;;  %v2352_v30 = vsel %vm2195_vm5, %v7228_v27, 0.0 }
 0x4db   : > { %2353 = vadd.xlane.f32.xlu0 %v2352_v30 }
 0x4dc   : > { %v7235_v48 = vpop.eup %5902  ;;  %5912 = vpow2.f32 %v2308_v36  ;;  %v2249_v36 = vpop.xlane.xlu1 %2248 }
 0x4dd   : > { %v7237_v43 = vpop.eup %5904  ;;  %5914 = vpow2.f32 %v2306_v60  ;;  %v2355_v44 = vsel %vm2195_vm5, %v7235_v48, 0.0  ;;  %v2273_v30 = vsub.f32 %v7150_v29, %v2249_v36 }
 0x4de   : > { %2356 = vadd.xlane.f32.xlu1 %v2355_v44  ;;  %v2334_v59 = vsel %vm2195_vm5, %v7237_v43, 0.0  ;;  %5916 = vpow2.f32 %v2294_v3  ;;  %v2252_v60 = vpop.xlane.xlu0 %2251 }
 0x4df   : > { %2335 = vadd.xlane.f32.xlu0 %v2334_v59  ;;  %v2274_v22 = vsub.f32 %v7156_v34, %v2252_v60  ;;  %v2310_v44 = vmul.f32 1.442695, %v2273_v30  ;;  %v2657_v30 = vsel %vm1966_vm3, %v7172_v55, 0  ;;  %v2793_v55 = vsel %vm1966_vm3, %v7176_v0, 0 }
 0x4e0   : > { %v7243_v13 = vpop.eup %5906 }
 0x4e1   : > { %v2337_v57 = vsel %vm2195_vm5, %v7243_v13, 0.0  ;;  %v7247_v23 = vpop.eup %5908  ;;  %v2312_v9 = vmul.f32 1.442695, %v2274_v22 }
 0x4e2   : > { %2338 = vadd.xlane.f32.xlu1 %v2337_v57  ;;  %v2358_v40 = vsel %vm2195_vm5, %v7247_v23, 0.0  ;;  %v2255_v3 = vpop.xlane.xlu1 %2254 }
 0x4e3   : > { %5918 = vpow2.f32 %v2312_v9  ;;  %v2275_v59 = vsub.f32 %v7162_v16, %v2255_v3 }
 0x4e4   : > { %5920 = vpow2.f32 %v2310_v44 }
 0x4e5   : > { %v7251_v12 = vpop.eup %5910  ;;  %v2314_v57 = vmul.f32 1.442695, %v2275_v59 }
 0x4e6   : > { %2359 = vadd.xlane.f32.xlu1 %v2358_v40  ;;  %v2340_v38 = vsel %vm2195_vm5, %v7251_v12, 0.0 }
 0x4e7   : > { %5922 = vpow2.f32 %v2314_v57 }
 0x4e9   : > { %v7253_v35 = vpop.eup %5912 }
 0x4ea   : > { %v7257_v37 = vpop.eup %5914  ;;  %2341 = vadd.xlane.f32.xlu1 %v2340_v38  ;;  %v2364_v21 = vsel %vm2195_vm5, %v7253_v35, 0.0 }
 0x4eb   : > { %2365 = vadd.xlane.f32.xlu0 %v2364_v21  ;;  %v2361_v39 = vsel %vm2195_vm5, %v7257_v37, 0.0  ;;  %v7263_v63 = vpop.eup %5916 }
 0x4ec   : > { %v2343_v19 = vsel %vm2195_vm5, %v7263_v63, 0.0 }
 0x4ee   : > { %2362 = vadd.xlane.f32.xlu1 %v2361_v39  ;;  %v8423_v39 = vmov 0.0  }
 0x4f0   : > { %v7274_v40 = vpop.eup %5918 }
 0x4f2   : > { %2344 = vadd.xlane.f32.xlu1 %v2343_v19 }
 0x501   : > { %2607 = vrot.lane.b32.xlu0 %v6924_v56, %s6202_s4  ;;  %v7278_v56 = vpop.eup %5920 }
 0x502   : > { %v2367_v34 = vsel %vm2195_vm5, %v7278_v56, 0.0  ;;  %v7282_v29 = vpop.eup %5922 }
 0x503   : > { %2757 = vrot.lane.b32.xlu1 %v6919_v50, %s6202_s4  ;;  %v2370_v50 = vsel %vm2195_vm5, %v7274_v40, 0.0  ;;  %v2373_v16 = vsel %vm2195_vm5, %v7282_v29, 0.0 }
 0x520   : > { %2371 = vadd.xlane.f32.xlu0 %v2370_v50 }
 0x527   : > { %2368 = vadd.xlane.f32.xlu1 %v2367_v34 }
 0x52b   : > { %2374 = vadd.xlane.f32.xlu1 %v2373_v16 }
 0x536   : > { %2609 = vrot.lane.b32.xlu0 %v6846_v46, %s6202_s4  ;;  %v7304_v46 = vpop.permute.xlu0 %2759 }
 0x53a   : > { %2611 = vrot.lane.b32.xlu0 %v6967_v11, %s6202_s4 }
 0x53c   : > { %2755 = vrot.lane.b32.xlu1 %v6938_v61, %s6202_s4 }
 0x53e   : > { %2613 = vrot.lane.b32.xlu0 %v6860_v15, %s6202_s4 }
 0x540   : > { %2740 = vrot.lane.b32.xlu1 %v6960_v6, %s6202_s4 }
 0x542   : > { %2615 = vrot.lane.b32.xlu0 %v7018_v25, %s6202_s4 }
 0x544   : > { %2742 = vrot.lane.b32.xlu1 %v6990_v58, %s6202_s4 }
 0x546   : > { %2746 = vrot.lane.b32.xlu0 %v7032_v28, %s6202_s4 }
 0x548   : > { %2744 = vrot.lane.b32.xlu1 %v7010_v7, %s6202_s4 }
 0x54a   : > { %3131 = vrot.lane.b32.xlu0 %v6926_v54, %s6202_s4 }
 0x54c   : > { %2748 = vrot.lane.b32.xlu1 %v6893_v14, %s6202_s4 }
 0x54d   : > { %v2318_v15 = vpop.xlane.xlu0 %2317 }
 0x54e   : > { %3127 = vrot.lane.b32.xlu0 %v6947_v17, %s6202_s4  ;;  %5924 = vrcp.f32 %v2318_v15 }
 0x550   : > { %3129 = vrot.lane.b32.xlu1 %v6941_v47, %s6202_s4 }
 0x551   : > { %v2321_v61 = vpop.xlane.xlu1 %2320 }
 0x552   : > { %5926 = vrcp.f32 %v2321_v61  ;;  %3123 = vrot.lane.b32.xlu0 %v6973_v20, %s6202_s4 }
 0x554   : > { %3125 = vrot.lane.b32.xlu1 %v6956_v4, %s6202_s4  ;;  %v2660_v4 = vsel %vm1966_vm3, %v7178_v2, 0 }
 0x555   : > { %v2324_v54 = vpop.xlane.xlu0 %2323 }
 0x556   : > { %5928 = vrcp.f32 %v2324_v54 }
 0x559   : > { %v2327_v6 = vpop.xlane.xlu1 %2326 }
 0x55a   : > { %5930 = vrcp.f32 %v2327_v6 }
 0x55b   : > { %v2348_v14 = vpop.xlane.xlu0 %2347  ;;  %v5925_v11 = vpop.eup %5924 }
 0x55c   : > { %5932 = vrcp.f32 %v2348_v14  ;;  %v2396_v7 = vmul.f32 %v5925_v11, %v7187_v32  ;;  %v2790_v11 = vsel %vm1966_vm3, %v7180_v53, 0  ;;  %v2787_v53 = vsel %vm1966_vm3, %v7304_v46, 0 }
 0x55f   : > { %v5927_v17 = vpop.eup %5926  ;;  %v2351_v58 = vpop.xlane.xlu1 %2350 }
 0x560   : > { %v2397_v47 = vmul.f32 %v5927_v17, %v7193_v31  ;;  %5934 = vrcp.f32 %v2351_v58  ;;  %v2330_v25 = vpop.xlane.xlu0 %2329  ;;  %v2651_v58 = vsel %vm1966_vm3, %v7168_v42, 0  ;;  %v2648_v42 = vsel %vm1966_vm3, %v7170_v51, 0 }
 0x561   : > { %5936 = vrcp.f32 %v2330_v25 }
 0x562   : > { %v2416_v20 = vpack.c.bf16 %v2397_v47, %v2396_v7 }
 0x563   : > { %v2333_v28 = vpop.xlane.xlu1 %2332  ;;  %v5929_v21 = vpop.eup %5928 }
 0x564   : > { %5938 = vrcp.f32 %v2333_v28  ;;  %v2354_v38 = vpop.xlane.xlu0 %2353  ;;  %5442 = vmatmul.mubr.msk.bf16.vlgmr.msra.gmra.mxu1 %vm2195_vm5, %v2416_v20  ;;  %v2398_v60 = vmul.f32 %v5929_v21, %v7199_v33 }
 0x565   : > { %5492 = vmatpush3.bf16.xpose.msra.mxu1 %v2660_v4  ;;  %5445 = vmatprep.mubr.msk.bf16.mxu1 %vm6201_vm2, %v8423_v39  ;;  %5940 = vrcp.f32 %v2354_v38 }
 0x566   : > { %5493 = vmatprep.subr.bf16.mxu1 %v8423_v39 }
 0x567   : > { %v5931_v32 = vpop.eup %5930  ;;  %v2357_v31 = vpop.xlane.xlu1 %2356 }
 0x568   : > { %5942 = vrcp.f32 %v2357_v31  ;;  %v2336_v19 = vpop.xlane.xlu0 %2335  ;;  %v2399_v2 = vmul.f32 %v5931_v32, %v7205_v26 }
 0x569   : > { %5944 = vrcp.f32 %v2336_v19  ;;  %v5933_v36 = vpop.eup %5932 }
 0x56a   : > { %v2417_v22 = vpack.c.bf16 %v2399_v2, %v2398_v60  ;;  %v2406_v44 = vmul.f32 %v5933_v36, %v7211_v18 }
 0x56b   : > { %v2339_v9 = vpop.xlane.xlu1 %2338 }
 0x56c   : > { %5946 = vrcp.f32 %v2339_v9  ;;  %5446 = vmatmul.mubr.msk.bf16.gmra.mxu1 %vm2195_vm5, %v2417_v22 }
 0x56d   : > { %v5935_v3 = vpop.eup %5934  ;;  %5494 = vmatpush3.bf16.xpose.msra.mxu1 %v2657_v30  ;;  %5449 = vmatprep.mubr.msk.bf16.mxu1 %vm6201_vm2, %v8423_v39 }
 0x56e   : > { %v2407_v33 = vmul.f32 %v5935_v3, %v7216_v45  ;;  %5495 = vmatprep.subr.bf16.mxu1 %v8423_v39  ;;  %v5937_v26 = vpop.eup %5936  ;;  %v2654_v45 = vsel %vm1966_vm3, %v7174_v49, 0 }
 0x56f   : > { %v2360_v59 = vpop.xlane.xlu1 %2359  ;;  %v2400_v34 = vmul.f32 %v5937_v26, %v7219_v41 }
 0x570   : > { %v2421_v57 = vpack.c.bf16 %v2407_v33, %v2406_v44  ;;  %5948 = vrcp.f32 %v2360_v59 }
 0x571   : > { %v5939_v50 = vpop.eup %5938 }
 0x572   : > { %5472 = vmatmul.mubr.msk.bf16.vlgmr.msra.gmra.mxu0 %vm2195_vm5, %v2421_v57  ;;  %v2401_v16 = vmul.f32 %v5939_v50, %v7226_v52  ;;  %v5941_v15 = vpop.eup %5940 }
 0x573   : > { %5522 = vmatpush3.bf16.xpose.msra.mxu0 %v2793_v55  ;;  %v2342_v18 = vpop.xlane.xlu1 %2341  ;;  %5475 = vmatprep.mubr.msk.bf16.mxu0 %vm6201_vm2, %v8423_v39  ;;  %v2408_v0 = vmul.f32 %v5941_v15, %v7228_v27 }
 0x574   : > { %v2418_v61 = vpack.c.bf16 %v2401_v16, %v2400_v34  ;;  %5523 = vmatprep.subr.bf16.mxu0 %v8423_v39 }
 0x575   : > { %v5943_v54 = vpop.eup %5942  ;;  %5496 = vmatpush3.bf16.xpose.msra.mxu1 %v2654_v45 }
 0x576   : > { %5450 = vmatmul.mubr.msk.bf16.gmra.mxu1 %vm2195_vm5, %v2418_v61  ;;  %v2409_v41 = vmul.f32 %v5943_v54, %v7235_v48  ;;  %5497 = vmatprep.subr.bf16.mxu1 %v8423_v39  ;;  %v5945_v52 = vpop.eup %5944 }
 0x577   : > { %v2363_v6 = vpop.xlane.xlu1 %2362  ;;  %5453 = vmatprep.mubr.msk.bf16.mxu1 %vm6201_vm2, %v8423_v39  ;;  %v2402_v27 = vmul.f32 %v5945_v52, %v7237_v43 }
 0x578   : > { %5950 = vrcp.f32 %v2363_v6  ;;  %v2422_v49 = vpack.c.bf16 %v2409_v41, %v2408_v0 }
 0x579   : > { %v5947_v14 = vpop.eup %5946  ;;  %5952 = vrcp.f32 %v2342_v18 }
 0x57a   : > { %5476 = vmatmul.mubr.msk.bf16.gmra.mxu0 %vm2195_vm5, %v2422_v49  ;;  %v2403_v48 = vmul.f32 %v5947_v14, %v7243_v13 }
 0x57b   : > { %5524 = vmatpush3.bf16.xpose.msra.mxu0 %v2790_v11  ;;  %v2345_v17 = vpop.xlane.xlu1 %2344  ;;  %5479 = vmatprep.mubr.msk.bf16.mxu0 %vm6201_vm2, %v8423_v39 }
 0x57c   : > { %5954 = vrcp.f32 %v2345_v17  ;;  %v2419_v7 = vpack.c.bf16 %v2403_v48, %v2402_v27  ;;  %5525 = vmatprep.subr.bf16.mxu0 %v8423_v39 }
 0x57d   : > { %5498 = vmatpush3.bf16.xpose.msra.mxu1 %v2651_v58  ;;  %v5949_v43 = vpop.eup %5948 }
 0x57e   : > { %5454 = vmatmul.mubr.msk.bf16.gmra.mxu1 %vm2195_vm5, %v2419_v7  ;;  %5499 = vmatprep.subr.bf16.mxu1 %v8423_v39  ;;  %v2410_v47 = vmul.f32 %v5949_v43, %v7247_v23 }
 0x57f   : > { %5457 = vmatprep.mubr.msk.bf16.mxu1 %vm6201_vm2, %v8423_v39  ;;  %v2758_v28 = vpop.permute.xlu1 %2757 }
 0x580   : > { %v2784_v46 = vsel %vm1966_vm3, %v2758_v28, 0 }
 0x583   : > { %5526 = vmatpush3.bf16.xpose.msra.mxu0 %v2787_v53 }
 0x584   : > { %5527 = vmatprep.subr.bf16.mxu0 %v8423_v39 }
 0x585   : > { %v5951_v13 = vpop.eup %5950  ;;  %5500 = vmatpush3.bf16.xpose.msra.mxu1 %v2648_v42 }
 0x586   : > { %v2411_v25 = vmul.f32 %v5951_v13, %v7257_v37  ;;  %5551 = vmatprep.subr.bf16.mxu1 %v8423_v39  ;;  %v5953_v20 = vpop.eup %5952  ;;  %v2366_v37 = vpop.xlane.xlu0 %2365 }
 0x587   : > { %v2404_v51 = vmul.f32 %v5953_v20, %v7251_v12  ;;  %5956 = vrcp.f32 %v2366_v37 }
 0x588   : > { %v2423_v4 = vpack.c.bf16 %v2411_v25, %v2410_v47 }
 0x589   : > { %v5955_v38 = vpop.eup %5954 }
 0x58a   : > { %5480 = vmatmul.mubr.msk.bf16.gmra.mxu0 %vm2195_vm5, %v2423_v4  ;;  %v2405_v21 = vmul.f32 %v5955_v38, %v7263_v63  ;;  %v2608_v32 = vpop.permute.xlu0 %2607 }
 0x58b   : > { %5528 = vmatpush3.bf16.xpose.msra.mxu0 %v2784_v46  ;;  %5483 = vmatprep.mubr.msk.bf16.mxu0 %vm6201_vm2, %v8423_v39 }
 0x58c   : > { %v2420_v23 = vpack.c.bf16 %v2405_v21, %v2404_v51  ;;  %5529 = vmatprep.subr.bf16.mxu0 %v8423_v39 }
 0x58e   : > { %5458 = vmatmul.mubr.msk.bf16.gmra.mxu1 %vm2195_vm5, %v2420_v23 }
 0x58f   : > { %5501 = vmatprep.mubr.msk.bf16.mxu1 %vm6201_vm2, %v8423_v39 }
 0x594   : > { %v5957_v30 = vpop.eup %5956 }
 0x595   : > { %v2412_v26 = vmul.f32 %v5957_v30, %v7253_v35 }
 0x596   : > { %5502 = vmatmul.mubr.msk.bf16.vlgmr.msra.gmra.mxu1 %vm1966_vm3, %v2608_v32 }
 0x597   : > { %5505 = vmatprep.mubr.msk.bf16.mxu1 %vm6201_vm2, %v8423_v39 }
 0x5a9   : > { %v2372_v12 = vpop.xlane.xlu0 %2371 }
 0x5ad   : > { %v2610_v63 = vpop.permute.xlu0 %2609 }
 0x5ae   : > { %5506 = vmatmul.mubr.msk.bf16.gmra.mxu1 %vm1966_vm3, %v2610_v63 }
 0x5af   : > { %5509 = vmatprep.mubr.msk.bf16.mxu1 %vm6201_vm2, %v8423_v39 }
 0x5b0   : > { %v2369_v31 = vpop.xlane.xlu1 %2368 }
 0x5b1   : > { %5958 = vrcp.f32 %v2369_v31  ;;  %v2612_v19 = vpop.permute.xlu0 %2611 }
 0x5b4   : > { %v2375_v60 = vpop.xlane.xlu1 %2374 }
 0x5b5   : > { %5960 = vrcp.f32 %v2375_v60  ;;  %v2614_v2 = vpop.permute.xlu0 %2613 }
 0x5b6   : > { %5510 = vmatmul.mubr.msk.bf16.gmra.mxu1 %vm1966_vm3, %v2612_v19  ;;  %5962 = vrcp.f32 %v2372_v12 }
 0x5b7   : > { %5513 = vmatprep.mubr.msk.bf16.mxu1 %vm6201_vm2, %v8423_v39 }
 0x5b8   : > { %v2756_v22 = vpop.permute.xlu1 %2755 }
 0x5b9   : > { %v2781_v36 = vsel %vm1966_vm3, %v2756_v22, 0  ;;  %v2616_v9 = vpop.permute.xlu0 %2615 }
 0x5ba   : > { %5530 = vmatpush3.bf16.xpose.msra.mxu0 %v2781_v36 }
 0x5bb   : > { %5581 = vmatprep.subr.bf16.mxu0 %v8423_v39 }
 0x5bc   : > { %v2741_v3 = vpop.permute.xlu1 %2740 }
 0x5bd   : > { %v2747_v44 = vpop.permute.xlu0 %2746 }
 0x5be   : > { %v5959_v33 = vpop.eup %5958  ;;  %5514 = vmatmul.mubr.msk.bf16.gmra.mxu1 %vm1966_vm3, %v2614_v2 }
 0x5bf   : > { %v2413_v59 = vmul.f32 %v5959_v33, %v7278_v56  ;;  %5517 = vmatprep.mubr.msk.bf16.mxu1 %vm6201_vm2, %v8423_v39 }
 0x5c0   : > { %v2743_v57 = vpop.permute.xlu1 %2742 }
 0x5c1   : > { %v3132_v50 = vpop.permute.xlu0 %3131  ;;  %v2424_v55 = vpack.c.bf16 %v2413_v59, %v2412_v26 }
 0x5c2   : > { %v5961_v34 = vpop.eup %5960  ;;  %5552 = vmatpush3.bf16.msra.mxu1 %v3132_v50 }
 0x5c3   : > { %5484 = vmatmul.mubr.msk.bf16.gmra.mxu0 %vm2195_vm5, %v2424_v55  ;;  %5553 = vmatprep.subr.bf16.mxu1 %v8423_v39  ;;  %v5963_v16 = vpop.eup %5962  ;;  %v2415_v35 = vmul.f32 %v5961_v34, %v7282_v29 }
 0x5c4   : > { %v2745_v15 = vpop.permute.xlu1 %2744  ;;  %5487 = vmatprep.mubr.msk.bf16.mxu0 %vm6201_vm2, %v8423_v39  ;;  %v2414_v56 = vmul.f32 %v5963_v16, %v7274_v40 }
 0x5c5   : > { %v3128_v54 = vpop.permute.xlu0 %3127 }
 0x5c6   : > { %5518 = vmatmul.mubr.msk.bf16.gmra.mxu1 %vm1966_vm3, %v2616_v9  ;;  %v2425_v45 = vpack.c.bf16 %v2415_v35, %v2414_v56 }
 0x5c7   : > { %5561 = vmatprep.mubr.msk.bf16.mxu1 %vm6201_vm2, %v8423_v39 }
 0x5c8   : > { %v2749_v18 = vpop.permute.xlu1 %2748 }
 0x5c9   : > { %v3124_v29 = vpop.permute.xlu0 %3123 }
 0x5cb   : > { %5488 = vmatmul.mubr.msk.bf16.gmra.mxu0 %vm2195_vm5, %v2425_v45 }
 0x5cc   : > { %v3130_v61 = vpop.permute.xlu1 %3129  ;;  %5531 = vmatprep.mubr.msk.bf16.mxu0 %vm6201_vm2, %v8423_v39 }
 0x5cd   : > { %5554 = vmatpush3.bf16.msra.mxu1 %v3130_v61 }
 0x5ce   : > { %5555 = vmatprep.subr.bf16.mxu1 %v8423_v39 }
 0x5d0   : > { %v3126_v40 = vpop.permute.xlu1 %3125 }
 0x5d1   : > { %5556 = vmatpush3.bf16.msra.mxu1 %v3128_v54 }
 0x5d2   : > { %5557 = vmatprep.subr.bf16.mxu1 %v8423_v39 }
 0x5d3   : > { %5532 = vmatmul.mubr.msk.bf16.vlgmr.msra.gmra.mxu0 %vm1966_vm3, %v2741_v3 }
 0x5d4   : > { %5535 = vmatprep.mubr.msk.bf16.mxu0 %vm6201_vm2, %v8423_v39 }
 0x5d5   : > { %5558 = vmatpush3.bf16.msra.mxu1 %v3126_v40 }
 0x5d6   : > { %5559 = vmatprep.subr.bf16.mxu1 %v8423_v39 }
 0x5d9   : > { %5560 = vmatpush3.bf16.msra.mxu1 %v3124_v29 }
 0x5db   : > { %5536 = vmatmul.mubr.msk.bf16.gmra.mxu0 %vm1966_vm3, %v2743_v57 }
 0x5dc   : > { %5539 = vmatprep.mubr.msk.bf16.mxu0 %vm6201_vm2, %v8423_v39 }
 0x5e3   : > { %5540 = vmatmul.mubr.msk.bf16.gmra.mxu0 %vm1966_vm3, %v2745_v15 }
 0x5e4   : > { %5543 = vmatprep.mubr.msk.bf16.mxu0 %vm6201_vm2, %v8423_v39 }
 0x5eb   : > { %5544 = vmatmul.mubr.msk.bf16.gmra.mxu0 %vm1966_vm3, %v2747_v44 }
 0x5ec   : > { %5547 = vmatprep.mubr.msk.bf16.mxu0 %vm6201_vm2, %v8423_v39 }
 0x5f3   : > { %5548 = vmatmul.mubr.msk.bf16.gmra.mxu0 %vm1966_vm3, %v2749_v18 }
 0x5f4   : > { %5591 = vmatprep.mubr.msk.bf16.mxu0 %vm6201_vm2, %v8423_v39 }
 0x624   : > { %v7430_v0 = vpop.f32.mrf.mxu1 }
 0x626   : > { %v5443_v41 = vpop.f32.mrf.mxu1 }
 0x628   : > { %v7432_v52 = vpop.f32.mrf.mxu1 }
 0x62a   : > { %v5444_v6 = vpop.f32.mrf.mxu1 }
 0x62c   : > { %v7434_v49 = vpop.f32.mrf.mxu1 }
 0x62e   : > { %v5447_v14 = vpop.f32.mrf.mxu1 }
 0x630   : > { %v7436_v11 = vpop.f32.mrf.mxu1 }
 0x632   : > { %v5448_v27 = vpop.f32.mrf.mxu1  ;;  %v7438_v48 = vpop.f32.mrf.mxu0 }
 0x634   : > { %v5473_v17 = vpop.f32.mrf.mxu0 }
 0x636   : > { %v7440_v58 = vpop.f32.mrf.mxu1  ;;  %v7442_v7 = vpop.f32.mrf.mxu0 }
 0x638   : > { %v5451_v53 = vpop.f32.mrf.mxu1  ;;  %v5474_v43 = vpop.f32.mrf.mxu0 }
 0x63a   : > { %v7444_v42 = vpop.f32.mrf.mxu1  ;;  %v7446_v13 = vpop.f32.mrf.mxu0 }
 0x63c   : > { %v5452_v47 = vpop.f32.mrf.mxu1  ;;  %v5477_v25 = vpop.f32.mrf.mxu0 }
 0x63e   : > { %v7448_v20 = vpop.f32.mrf.mxu1  ;;  %v7450_v28 = vpop.f32.mrf.mxu0 }
 0x640   : > { %v5455_v4 = vpop.f32.mrf.mxu1  ;;  %v5478_v38 = vpop.f32.mrf.mxu0 }
 0x642   : > { %v7452_v46 = vpop.f32.mrf.mxu1 }
 0x644   : > { %v5456_v51 = vpop.f32.mrf.mxu1 }
 0x64a   : > { %v7454_v21 = vpop.f32.mrf.mxu0 }
 0x64c   : > { %v5481_v23 = vpop.f32.mrf.mxu0 }
 0x64e   : > { %v7456_v37 = vpop.f32.mrf.mxu1  ;;  %v7458_v32 = vpop.f32.mrf.mxu0 }
 0x650   : > { %v5459_v12 = vpop.f32.mrf.mxu1  ;;  %v5482_v63 = vpop.f32.mrf.mxu0 }
 0x652   : > { %v7460_v31 = vpop.f32.mrf.mxu1 }
 0x654   : > { %v5460_v19 = vpop.f32.mrf.mxu1 }
 0x656   : > { %v2696_v60 = vpop.f32.mrf.mxu1 }
 0x657   : > { %v7464_v2 = vsel %vm1965_vm4, %v2696_v60, -1e+30 }
 0x658   : > { %v2888_v22 = vsel %vm2195_vm5, %v7464_v2, -inf  ;;  %v5503_v36 = vpop.f32.mrf.mxu1 }
 0x659   : > { %2889 = vmax.xlane.f32.xlu0 %v2888_v22 }
 0x65a   : > { %v2699_v9 = vpop.f32.mrf.mxu1 }
 0x65b   : > { %v7470_v30 = vsel %vm1965_vm4, %v2699_v9, -1e+30 }
 0x65c   : > { %v2891_v3 = vsel %vm2195_vm5, %v7470_v30, -inf  ;;  %v5504_v44 = vpop.f32.mrf.mxu1 }
 0x65d   : > { %2892 = vmax.xlane.f32.xlu1 %v2891_v3 }
 0x66e   : > { %v2704_v33 = vpop.f32.mrf.mxu1 }
 0x66f   : > { %v7476_v26 = vsel %vm1965_vm4, %v2704_v33, -1e+30 }
 0x670   : > { %v2894_v59 = vsel %vm2195_vm5, %v7476_v26, -inf  ;;  %v5507_v57 = vpop.f32.mrf.mxu1 }
 0x671   : > { %2895 = vmax.xlane.f32.xlu0 %v2894_v59 }
 0x672   : > { %v2707_v50 = vpop.f32.mrf.mxu1 }
 0x673   : > { %v7482_v55 = vsel %vm1965_vm4, %v2707_v50, -1e+30 }
 0x674   : > { %v2897_v34 = vsel %vm2195_vm5, %v7482_v55, -inf  ;;  %v5508_v16 = vpop.f32.mrf.mxu1 }
 0x675   : > { %2898 = vmax.xlane.f32.xlu0 %v2897_v34 }
 0x676   : > { %v2712_v15 = vpop.f32.mrf.mxu1 }
 0x677   : > { %v7502_v19 = vsel %vm1965_vm4, %v2712_v15, -1e+30 }
 0x678   : > { %v5511_v35 = vpop.f32.mrf.mxu1  ;;  %v2900_v36 = vsel %vm2195_vm5, %v7502_v19, -inf }
 0x67a   : > { %v2715_v56 = vpop.f32.mrf.mxu1 }
 0x67b   : > { %v7514_v44 = vsel %vm1965_vm4, %v2715_v56, -1e+30 }
 0x67c   : > { %v5512_v18 = vpop.f32.mrf.mxu1  ;;  %v2903_v57 = vsel %vm2195_vm5, %v7514_v44, -inf }
 0x67e   : > { %v2720_v45 = vpop.f32.mrf.mxu1 }
 0x67f   : > { %v7526_v16 = vsel %vm1965_vm4, %v2720_v45, -1e+30 }
 0x680   : > { %v5515_v61 = vpop.f32.mrf.mxu1  ;;  %v2906_v56 = vsel %vm2195_vm5, %v7526_v16, -inf }
 0x682   : > { %v2723_v54 = vpop.f32.mrf.mxu1 }
 0x683   : > { %v7486_v40 = vpop.f32.mrf.mxu0 }
 0x684   : > { %v5516_v29 = vpop.f32.mrf.mxu1 }
 0x685   : > { %v5485_v41 = vpop.f32.mrf.mxu0  ;;  %v7538_v29 = vsel %vm1965_vm4, %v2723_v54, -1e+30 }
 0x686   : > { %v2728_v6 = vpop.f32.mrf.mxu1 }
 0x687   : > { %v7488_v14 = vpop.f32.mrf.mxu0 }
 0x688   : > { %v5519_v27 = vpop.f32.mrf.mxu1 }
 0x689   : > { %v5486_v17 = vpop.f32.mrf.mxu0  ;;  %v2909_v27 = vsel %vm2195_vm5, %v7538_v29, -inf }
 0x68a   : > { %v2731_v53 = vpop.f32.mrf.mxu1 }
 0x68b   : > { %v7490_v43 = vpop.f32.mrf.mxu0 }
 0x68c   : > { %v5520_v47 = vpop.f32.mrf.mxu1 }
 0x68d   : > { %v5489_v25 = vpop.f32.mrf.mxu0 }
 0x68e   : > { %v7550_v25 = vsel %vm1965_vm4, %v2728_v6, -1e+30 }
 0x68f   : > { %v7492_v4 = vpop.f32.mrf.mxu0 }
 0x691   : > { %v5490_v38 = vpop.f32.mrf.mxu0 }
 0x693   : > { %v2829_v51 = vpop.f32.mrf.mxu0 }
 0x694   : > { %v7496_v23 = vsel %vm1965_vm4, %v2829_v51, -1e+30  ;;  %v2912_v51 = vsel %vm2195_vm5, %v7550_v25, -inf }
 0x695   : > { %v2918_v12 = vsel %vm2195_vm5, %v7496_v23, -inf  ;;  %v5533_v63 = vpop.f32.mrf.mxu0 }
 0x696   : > { %2919 = vmax.xlane.f32.xlu0 %v2918_v12 }
 0x697   : > { %v2832_v60 = vpop.f32.mrf.mxu0 }
 0x698   : > { %v7506_v22 = vsel %vm1965_vm4, %v2832_v60, -1e+30  ;;  %v7562_v60 = vsel %vm1965_vm4, %v2731_v53, -1e+30 }
 0x699   : > { %v2921_v9 = vsel %vm2195_vm5, %v7506_v22, -inf  ;;  %v5534_v3 = vpop.f32.mrf.mxu0 }
 0x69a   : > { %2922 = vmax.xlane.f32.xlu1 %v2921_v9  ;;  %2901 = vmax.xlane.f32.xlu0 %v2900_v36  ;;  %v2915_v36 = vsel %vm2195_vm5, %v7562_v60, -inf }
 0x69b   : > { %v2837_v33 = vpop.f32.mrf.mxu0 }
 0x69c   : > { %v7518_v59 = vsel %vm1965_vm4, %v2837_v33, -1e+30 }
 0x69d   : > { %v2924_v50 = vsel %vm2195_vm5, %v7518_v59, -inf  ;;  %v5537_v34 = vpop.f32.mrf.mxu0 }
 0x69e   : > { %2925 = vmax.xlane.f32.xlu0 %v2924_v50  ;;  %2904 = vmax.xlane.f32.xlu1 %v2903_v57 }
 0x69f   : > { %v2840_v15 = vpop.f32.mrf.mxu0 }
 0x6a0   : > { %v7530_v35 = vsel %vm1965_vm4, %v2840_v15, -1e+30 }
 0x6a1   : > { %v2927_v18 = vsel %vm2195_vm5, %v7530_v35, -inf  ;;  %v5538_v61 = vpop.f32.mrf.mxu0 }
 0x6a2   : > { %2928 = vmax.xlane.f32.xlu1 %v2927_v18  ;;  %2907 = vmax.xlane.f32.xlu0 %v2906_v56 }
 0x6a3   : > { %v2845_v45 = vpop.f32.mrf.mxu0 }
 0x6a4   : > { %v7542_v41 = vsel %vm1965_vm4, %v2845_v45, -1e+30 }
 0x6a5   : > { %v2930_v17 = vsel %vm2195_vm5, %v7542_v41, -inf  ;;  %v5541_v47 = vpop.f32.mrf.mxu0 }
 0x6a6   : > { %2931 = vmax.xlane.f32.xlu0 %v2930_v17  ;;  %2910 = vmax.xlane.f32.xlu1 %v2909_v27 }
 0x6a7   : > { %v2848_v54 = vpop.f32.mrf.mxu0 }
 0x6a8   : > { %v7554_v38 = vsel %vm1965_vm4, %v2848_v54, -1e+30 }
 0x6a9   : > { %v2933_v12 = vsel %vm2195_vm5, %v7554_v38, -inf  ;;  %v5542_v63 = vpop.f32.mrf.mxu0 }
 0x6aa   : > { %2934 = vmax.xlane.f32.xlu1 %v2933_v12  ;;  %2913 = vmax.xlane.f32.xlu0 %v2912_v51 }
 0x6ab   : > { %v2853_v6 = vpop.f32.mrf.mxu0 }
 0x6ac   : > { %v7572_v53 = vsel %vm1965_vm4, %v2853_v6, -1e+30 }
 0x6ad   : > { %v5545_v9 = vpop.f32.mrf.mxu0  ;;  %v2936_v56 = vsel %vm2195_vm5, %v7572_v53, -inf }
 0x6ae   : > { %2916 = vmax.xlane.f32.xlu1 %v2915_v36 }
 0x6af   : > { %v2856_v3 = vpop.f32.mrf.mxu0 }
 0x6b0   : > { %v7578_v18 = vsel %vm1965_vm4, %v2856_v3, -1e+30 }
 0x6b1   : > { %v5546_v33 = vpop.f32.mrf.mxu0 }
 0x6b3   : > { %v2861_v57 = vpop.f32.mrf.mxu0 }
 0x6b4   : > { %v7582_v61 = vsel %vm1965_vm4, %v2861_v57, -1e+30 }
 0x6b5   : > { %v5549_v50 = vpop.f32.mrf.mxu0 }
 0x6b7   : > { %v2864_v34 = vpop.f32.mrf.mxu0 }
 0x6b8   : > { %v7590_v27 = vsel %vm1965_vm4, %v2864_v34, -1e+30 }
 0x6b9   : > { %v5550_v15 = vpop.f32.mrf.mxu0  ;;  %v2945_v54 = vsel %vm2195_vm5, %v7590_v27, -inf }
 0x6bf   : > { %3239 = vrot.lane.b32.xlu1 %v6962_v8, %s6202_s4  ;;  %v2939_v8 = vsel %vm2195_vm5, %v7578_v18, -inf }
 0x6c0   : > { %3237 = vrot.lane.b32.xlu0 %v6981_v24, %s6202_s4  ;;  %v2942_v24 = vsel %vm2195_vm5, %v7582_v61, -inf }
 0x6df   : > { %2937 = vmax.xlane.f32.xlu0 %v2936_v56 }
 0x6e2   : > { %v2890_v45 = vpop.xlane.xlu0 %2889 }
 0x6e3   : > { %v2948_v17 = vsub.f32 %v7464_v2, %v2890_v45  ;;  %2940 = vmax.xlane.f32.xlu1 %v2939_v8  ;;  %2943 = vmax.xlane.f32.xlu0 %v2942_v24 }
 0x6e5   : > { %v2968_v47 = vmul.f32 1.442695, %v2948_v17 }
 0x6e6   : > { %v2893_v51 = vpop.xlane.xlu1 %2892 }
 0x6e7   : > { %5964 = vpow2.f32 %v2968_v47  ;;  %v2949_v12 = vsub.f32 %v7470_v30, %v2893_v51  ;;  %2946 = vmax.xlane.f32.xlu1 %v2945_v54 }
 0x6e9   : > { %v2970_v63 = vmul.f32 1.442695, %v2949_v12 }
 0x6eb   : > { %5966 = vpow2.f32 %v2970_v63 }
 0x6f4   : > { %v7596_v6 = vpop.eup %5964 }
 0x6f5   : > { %v3008_v5 = vsel %vm2195_vm5, %v7596_v6, 0.0 }
 0x6f6   : > { %3009 = vadd.xlane.f32.xlu0 %v3008_v5 }
 0x6f8   : > { %v7600_v2 = vpop.eup %5966 }
 0x6f9   : > { %v3011_v36 = vsel %vm2195_vm5, %v7600_v2, 0.0 }
 0x6fa   : > { %v2896_v9 = vpop.xlane.xlu0 %2895  ;;  %3012 = vadd.xlane.f32.xlu1 %v3011_v36 }
 0x6fb   : > { %v2950_v3 = vsub.f32 %v7476_v26, %v2896_v9 }
 0x6fd   : > { %v2972_v33 = vmul.f32 1.442695, %v2950_v3 }
 0x6fe   : > { %v2899_v30 = vpop.xlane.xlu0 %2898 }
 0x6ff   : > { %5968 = vpow2.f32 %v2972_v33  ;;  %v2951_v57 = vsub.f32 %v7482_v55, %v2899_v30 }
 0x701   : > { %v2974_v50 = vmul.f32 1.442695, %v2951_v57 }
 0x703   : > { %5970 = vpow2.f32 %v2974_v50 }
 0x70c   : > { %v7606_v34 = vpop.eup %5968 }
 0x70d   : > { %v3014_v15 = vsel %vm2195_vm5, %v7606_v34, 0.0 }
 0x70e   : > { %3015 = vadd.xlane.f32.xlu0 %v3014_v15 }
 0x710   : > { %v7610_v56 = vpop.eup %5970 }
 0x711   : > { %v3017_v8 = vsel %vm2195_vm5, %v7610_v56, 0.0 }
 0x712   : > { %3018 = vadd.xlane.f32.xlu1 %v3017_v8 }
 0x71f   : > { %v2920_v26 = vpop.xlane.xlu0 %2919 }
 0x720   : > { %v2958_v24 = vsub.f32 %v7496_v23, %v2920_v26 }
 0x722   : > { %v2988_v45 = vmul.f32 1.442695, %v2958_v24 }
 0x723   : > { %v2923_v17 = vpop.xlane.xlu1 %2922  ;;  %v2902_v55 = vpop.xlane.xlu0 %2901 }
 0x724   : > { %5972 = vpow2.f32 %v2988_v45  ;;  %v2959_v47 = vsub.f32 %v7506_v22, %v2923_v17  ;;  %v2952_v54 = vsub.f32 %v7502_v19, %v2902_v55 }
 0x726   : > { %v2976_v51 = vmul.f32 1.442695, %v2952_v54  ;;  %v2990_v12 = vmul.f32 1.442695, %v2959_v47 }
 0x727   : > { %v2905_v63 = vpop.xlane.xlu1 %2904  ;;  %v2926_v5 = vpop.xlane.xlu0 %2925 }
 0x728   : > { %v2953_v36 = vsub.f32 %v7514_v44, %v2905_v63  ;;  %v2960_v9 = vsub.f32 %v7518_v59, %v2926_v5  ;;  %5974 = vpow2.f32 %v2976_v51 }
 0x729   : > { %5976 = vpow2.f32 %v2990_v12 }
 0x72a   : > { %v2978_v3 = vmul.f32 1.442695, %v2953_v36  ;;  %v2992_v33 = vmul.f32 1.442695, %v2960_v9 }
 0x72b   : > { %v2929_v23 = vpop.xlane.xlu1 %2928  ;;  %v2908_v30 = vpop.xlane.xlu0 %2907 }
 0x72c   : > { %5978 = vpow2.f32 %v2978_v3  ;;  %v2961_v57 = vsub.f32 %v7530_v35, %v2929_v23  ;;  %v2954_v22 = vsub.f32 %v7526_v16, %v2908_v30 }
 0x72d   : > { %5980 = vpow2.f32 %v2992_v33 }
 0x72e   : > { %v2980_v19 = vmul.f32 1.442695, %v2954_v22  ;;  %v2994_v50 = vmul.f32 1.442695, %v2961_v57 }
 0x72f   : > { %v2911_v15 = vpop.xlane.xlu1 %2910  ;;  %v2932_v8 = vpop.xlane.xlu0 %2931 }
 0x730   : > { %v2955_v44 = vsub.f32 %v7538_v29, %v2911_v15  ;;  %v2962_v59 = vsub.f32 %v7542_v41, %v2932_v8  ;;  %5982 = vpow2.f32 %v2980_v19 }
 0x731   : > { %v7623_v26 = vpop.eup %5972  ;;  %5984 = vpow2.f32 %v2994_v50 }
 0x732   : > { %v2982_v24 = vmul.f32 1.442695, %v2955_v44  ;;  %v3038_v45 = vsel %vm2195_vm5, %v7623_v26, 0.0  ;;  %v2996_v35 = vmul.f32 1.442695, %v2962_v59 }
 0x733   : > { %v2935_v17 = vpop.xlane.xlu1 %2934  ;;  %3039 = vadd.xlane.f32.xlu0 %v3038_v45  ;;  %v2914_v16 = vpop.xlane.xlu0 %2913 }
 0x734   : > { %5986 = vpow2.f32 %v2982_v24  ;;  %v2956_v55 = vsub.f32 %v7550_v25, %v2914_v16  ;;  %v2963_v29 = vsub.f32 %v7554_v38, %v2935_v17 }
 0x735   : > { %v7628_v47 = vpop.eup %5974  ;;  %5988 = vpow2.f32 %v2996_v35 }
 0x736   : > { %v2984_v41 = vmul.f32 1.442695, %v2956_v55  ;;  %v3020_v51 = vsel %vm2195_vm5, %v7628_v47, 0.0  ;;  %v7633_v12 = vpop.eup %5976  ;;  %v2998_v25 = vmul.f32 1.442695, %v2963_v29 }
 0x737   : > { %v2917_v54 = vpop.xlane.xlu1 %2916  ;;  %3021 = vadd.xlane.f32.xlu1 %v3020_v51  ;;  %v3041_v38 = vsel %vm2195_vm5, %v7633_v12, 0.0  ;;  %v3238_v23 = vpop.permute.xlu0 %3237 }
 0x738   : > { %5990 = vpow2.f32 %v2984_v41  ;;  %v2957_v35 = vsub.f32 %v7562_v60, %v2917_v54 }
 0x739   : > { %v7635_v63 = vpop.eup %5978  ;;  %5992 = vpow2.f32 %v2998_v25 }
 0x73a   : > { %v3023_v5 = vsel %vm2195_vm5, %v7635_v63, 0.0  ;;  %v7639_v36 = vpop.eup %5980  ;;  %v2986_v17 = vmul.f32 1.442695, %v2957_v35 }
 0x73b   : > { %v3240_v9 = vpop.permute.xlu1 %3239  ;;  %3024 = vadd.xlane.f32.xlu0 %v3023_v5  ;;  %3042 = vadd.xlane.f32.xlu1 %v3041_v38  ;;  %v3044_v33 = vsel %vm2195_vm5, %v7639_v36, 0.0 }
 0x73c   : > { %5582 = vmatpush3.bf16.msra.mxu0 %v3240_v9  ;;  %5994 = vpow2.f32 %v2986_v17 }
 0x73d   : > { %5583 = vmatprep.subr.bf16.mxu0 %v8423_v39  ;;  %v7644_v3 = vpop.eup %5982 }
 0x73e   : > { %v3026_v30 = vsel %vm2195_vm5, %v7644_v3, 0.0  ;;  %v7650_v57 = vpop.eup %5984 }
 0x73f   : > { %3045 = vadd.xlane.f32.xlu0 %v3044_v33  ;;  %3027 = vadd.xlane.f32.xlu1 %v3026_v30  ;;  %v3047_v50 = vsel %vm2195_vm5, %v7650_v57, 0.0 }
 0x740   : > { %5584 = vmatpush3.bf16.msra.mxu0 %v3238_v23 }
 0x741   : > { %v7652_v22 = vpop.eup %5986  ;;  %5585 = vmatprep.subr.bf16.mxu0 %v8423_v39 }
 0x742   : > { %v3029_v19 = vsel %vm2195_vm5, %v7652_v22, 0.0  ;;  %v7659_v15 = vpop.eup %5988 }
 0x743   : > { %3030 = vadd.xlane.f32.xlu0 %v3029_v19  ;;  %3048 = vadd.xlane.f32.xlu1 %v3047_v50  ;;  %v3050_v8 = vsel %vm2195_vm5, %v7659_v15, 0.0 }
 0x745   : > { %v7663_v44 = vpop.eup %5990 }
 0x746   : > { %v3032_v59 = vsel %vm2195_vm5, %v7663_v44, 0.0  ;;  %v7667_v24 = vpop.eup %5992 }
 0x747   : > { %3051 = vadd.xlane.f32.xlu1 %v3050_v8  ;;  %v3053_v45 = vsel %vm2195_vm5, %v7667_v24, 0.0 }
 0x749   : > { %v7679_v38 = vpop.eup %5994 }
 0x74a   : > { %v3035_v54 = vsel %vm2195_vm5, %v7679_v38, 0.0 }
 0x74b   : > { %3033 = vadd.xlane.f32.xlu1 %v3032_v59 }
 0x74f   : > { %3054 = vadd.xlane.f32.xlu1 %v3053_v45 }
 0x759   : > { %3233 = vrot.lane.b32.xlu0 %v7003_v1, %s6202_s4 }
 0x760   : > { %3235 = vrot.lane.b32.xlu1 %v6993_v62, %s6202_s4 }
 0x768   : > { %v2938_v16 = vpop.xlane.xlu0 %2937 }
 0x769   : > { %v2964_v55 = vsub.f32 %v7572_v53, %v2938_v16 }
 0x76b   : > { %v3000_v25 = vmul.f32 1.442695, %v2964_v55 }
 0x76c   : > { %v2941_v29 = vpop.xlane.xlu1 %2940  ;;  %v2944_v51 = vpop.xlane.xlu0 %2943 }
 0x76d   : > { %v2965_v41 = vsub.f32 %v7578_v18, %v2941_v29  ;;  %v2966_v9 = vsub.f32 %v7582_v61, %v2944_v51 }
 0x76f   : > { %v3002_v5 = vmul.f32 1.442695, %v2965_v41  ;;  %v3004_v60 = vmul.f32 1.442695, %v2966_v9 }
 0x770   : > { %v2947_v1 = vpop.xlane.xlu1 %2946 }
 0x771   : > { %5996 = vpow2.f32 %v3002_v5  ;;  %v2967_v62 = vsub.f32 %v7590_v27, %v2947_v1 }
 0x772   : > { %5998 = vpow2.f32 %v3000_v25 }
 0x773   : > { %6000 = vpow2.f32 %v3004_v60  ;;  %v3006_v53 = vmul.f32 1.442695, %v2967_v62 }
 0x775   : > { %6002 = vpow2.f32 %v3006_v53 }
 0x778   : > { %3036 = vadd.xlane.f32.xlu0 %v3035_v54 }
 0x77e   : > { %v7684_v18 = vpop.eup %5996 }
 0x77f   : > { %v3010_v33 = vpop.xlane.xlu0 %3009  ;;  %v3059_v61 = vsel %vm2195_vm5, %v7684_v18, 0.0  ;;  %v7688_v23 = vpop.eup %5998 }
 0x780   : > { %3060 = vadd.xlane.f32.xlu0 %v3059_v61  ;;  %6004 = vrcp.f32 %v3010_v33  ;;  %v3056_v27 = vsel %vm2195_vm5, %v7688_v23, 0.0  ;;  %v7692_v19 = vpop.eup %6000 }
 0x781   : > { %v3062_v50 = vsel %vm2195_vm5, %v7692_v19, 0.0 }
 0x782   : > { %v7696_v8 = vpop.eup %6002 }
 0x783   : > { %v3013_v30 = vpop.xlane.xlu1 %3012  ;;  %v3065_v59 = vsel %vm2195_vm5, %v7696_v8, 0.0 }
 0x784   : > { %6006 = vrcp.f32 %v3013_v30  ;;  %3057 = vadd.xlane.f32.xlu1 %v3056_v27 }
 0x788   : > { %3063 = vadd.xlane.f32.xlu1 %v3062_v50 }
 0x78c   : > { %3066 = vadd.xlane.f32.xlu1 %v3065_v59 }
 0x78d   : > { %v6005_v45 = vpop.eup %6004 }
 0x78e   : > { %v3088_v17 = vmul.f32 %v6005_v45, %v7596_v6 }
 0x791   : > { %v6007_v35 = vpop.eup %6006 }
 0x792   : > { %v3089_v16 = vmul.f32 %v6007_v35, %v7600_v2 }
 0x794   : > { %v3108_v55 = vpack.c.bf16 %v3089_v16, %v3088_v17 }
 0x796   : > { %3231 = vrot.lane.b32.xlu0 %v7014_v10, %s6202_s4  ;;  %5562 = vmatmul.mubr.msk.bf16.vlgmr.msra.gmra.mxu1 %vm2195_vm5, %v3108_v55 }
 0x797   : > { %v3016_v29 = vpop.xlane.xlu0 %3015  ;;  %5565 = vmatprep.mubr.msk.bf16.mxu1 %vm6201_vm2, %v8423_v39 }
 0x798   : > { %6008 = vrcp.f32 %v3016_v29 }
 0x79b   : > { %v3019_v41 = vpop.xlane.xlu1 %3018 }
 0x79c   : > { %6010 = vrcp.f32 %v3019_v41 }
 0x7a5   : > { %v6009_v51 = vpop.eup %6008 }
 0x7a6   : > { %v3090_v25 = vmul.f32 %v6009_v51, %v7606_v34 }
 0x7a9   : > { %v6011_v5 = vpop.eup %6010 }
 0x7aa   : > { %v3091_v6 = vmul.f32 %v6011_v5, %v7610_v56 }
 0x7ac   : > { %v3109_v2 = vpack.c.bf16 %v3091_v6, %v3090_v25 }
 0x7ae   : > { %5566 = vmatmul.mubr.msk.bf16.gmra.mxu1 %vm2195_vm5, %v3109_v2 }
 0x7af   : > { %5569 = vmatprep.mubr.msk.bf16.mxu1 %vm6201_vm2, %v8423_v39 }
 0x7bc   : > { %v3040_v10 = vpop.xlane.xlu0 %3039 }
 0x7c0   : > { %v3022_v9 = vpop.xlane.xlu1 %3021 }
 0x7c1   : > { %6012 = vrcp.f32 %v3022_v9 }
 0x7c4   : > { %v3025_v1 = vpop.xlane.xlu0 %3024  ;;  %v3043_v60 = vpop.xlane.xlu1 %3042 }
 0x7c5   : > { %6014 = vrcp.f32 %v3025_v1 }
 0x7c8   : > { %v3046_v62 = vpop.xlane.xlu0 %3045  ;;  %v3028_v54 = vpop.xlane.xlu1 %3027 }
 0x7c9   : > { %6016 = vrcp.f32 %v3028_v54 }
 0x7cc   : > { %v3031_v53 = vpop.xlane.xlu0 %3030  ;;  %v3049_v33 = vpop.xlane.xlu1 %3048 }
 0x7cd   : > { %6018 = vrcp.f32 %v3031_v53 }
 0x7ce   : > { %v6013_v34 = vpop.eup %6012  ;;  %6020 = vrcp.f32 %v3043_v60 }
 0x7cf   : > { %v3092_v30 = vmul.f32 %v6013_v34, %v7628_v47  ;;  %6022 = vrcp.f32 %v3040_v10 }
 0x7d0   : > { %v3052_v56 = vpop.xlane.xlu1 %3051  ;;  %v3234_v47 = vpop.permute.xlu0 %3233 }
 0x7d2   : > { %v6015_v61 = vpop.eup %6014 }
 0x7d3   : > { %v3093_v27 = vmul.f32 %v6015_v61, %v7635_v63 }
 0x7d4   : > { %v3034_v50 = vpop.xlane.xlu1 %3033 }
 0x7d5   : > { %v3110_v59 = vpack.c.bf16 %v3093_v27, %v3092_v30  ;;  %6024 = vrcp.f32 %v3034_v50 }
 0x7d6   : > { %v6017_v45 = vpop.eup %6016 }
 0x7d7   : > { %5570 = vmatmul.mubr.msk.bf16.gmra.mxu1 %vm2195_vm5, %v3110_v59  ;;  %v3094_v16 = vmul.f32 %v6017_v45, %v7644_v3 }
 0x7d8   : > { %5573 = vmatprep.mubr.msk.bf16.mxu1 %vm6201_vm2, %v8423_v39  ;;  %v3055_v35 = vpop.xlane.xlu1 %3054 }
 0x7da   : > { %v6019_v17 = vpop.eup %6018 }
 0x7db   : > { %v3095_v55 = vmul.f32 %v6019_v17, %v7652_v22  ;;  %v6021_v3 = vpop.eup %6020 }
 0x7dc   : > { %v3236_v29 = vpop.permute.xlu1 %3235  ;;  %v6023_v51 = vpop.eup %6022  ;;  %v3099_v5 = vmul.f32 %v6021_v3, %v7633_v12  ;;  %v5833_v3 = vld [vmem:[%s6370_s24] sm:$0xff]  }
 0x7dd   : > { %v3111_v41 = vpack.c.bf16 %v3095_v55, %v3094_v16  ;;  %5586 = vmatpush3.bf16.msra.mxu0 %v3236_v29  ;;  %v3098_v6 = vmul.f32 %v6023_v51, %v7623_v26 }
 0x7de   : > { %5587 = vmatprep.subr.bf16.mxu0 %v8423_v39 }
 0x7df   : > { %5574 = vmatmul.mubr.msk.bf16.gmra.mxu1 %vm2195_vm5, %v3111_v41  ;;  %v3113_v10 = vpack.c.bf16 %v3099_v5, %v3098_v6 }
 0x7e0   : > { %5577 = vmatprep.mubr.msk.bf16.mxu1 %vm6201_vm2, %v8423_v39 }
 0x7e1   : > { %5588 = vmatpush3.bf16.msra.mxu0 %v3234_v47 }
 0x7e2   : > { %5589 = vmatprep.subr.bf16.mxu0 %v8423_v39  ;;  %v6025_v25 = vpop.eup %6024 }
 0x7e3   : > { %v3096_v54 = vmul.f32 %v6025_v25, %v7663_v44 }
 0x801   : > { %v3037_v63 = vpop.xlane.xlu0 %3036 }
 0x802   : > { %6026 = vrcp.f32 %v3037_v63  ;;  %v5832_v63 = vld [vmem:[%s6370_s24 + $0x8] sm:$0xff]   ;;  %s8427_s24 = sld [smem:[#allocation18_spill]] (!%p5065_p6) }
 0x803   : > { %6028 = vrcp.f32 %v3049_v33  ;;  %5611 = vmatprep.subr.bf16.mxu1 %v5832_v63 }
 0x804   : > { %6030 = vrcp.f32 %v3046_v62  ;;  %5612 = vmatpush3.bf16.msra.mxu1 %v5832_v63 }
 0x805   : > { %6032 = vrcp.f32 %v3055_v35  ;;  %5613 = vmatprep.subr.bf16.mxu1 %v5833_v3 }
 0x806   : > { %6034 = vrcp.f32 %v3052_v56 }
 0x808   : > { %5614 = vmatpush3.bf16.msra.mxu1 %v5833_v3 }
 0x809   : > { %v3061_v22 = vpop.xlane.xlu0 %3060 }
 0x80d   : > { %v3232_v2 = vpop.permute.xlu0 %3231  ;;  %v3058_v9 = vpop.xlane.xlu1 %3057 }
 0x80e   : > { %5590 = vmatpush3.bf16.msra.mxu0 %v3232_v2  ;;  %6036 = vrcp.f32 %v3058_v9 }
 0x80f   : > { %v6027_v1 = vpop.eup %6026  ;;  %6038 = vrcp.f32 %v3061_v22 }
 0x810   : > { %v6029_v60 = vpop.eup %6028  ;;  %v3097_v62 = vmul.f32 %v6027_v1, %v7679_v38 }
 0x811   : > { %5592 = vmatmul.mubr.msk.bf16.vlgmr.msra.gmra.mxu0 %vm2195_vm5, %v3113_v10  ;;  %v6031_v53 = vpop.eup %6030  ;;  %v3064_v33 = vpop.xlane.xlu1 %3063  ;;  %v3101_v26 = vmul.f32 %v6029_v60, %v7650_v57 }
 0x812   : > { %v3112_v12 = vpack.c.bf16 %v3097_v62, %v3096_v54  ;;  %5595 = vmatprep.mubr.msk.bf16.mxu0 %vm6201_vm2, %v8423_v39  ;;  %v3100_v34 = vmul.f32 %v6031_v53, %v7639_v36  ;;  %v6033_v44 = vpop.eup %6032 }
 0x813   : > { %v6035_v38 = vpop.eup %6034  ;;  %v3103_v30 = vmul.f32 %v6033_v44, %v7667_v24 }
 0x814   : > { %5578 = vmatmul.mubr.msk.bf16.gmra.mxu1 %vm2195_vm5, %v3112_v12  ;;  %v3114_v56 = vpack.c.bf16 %v3101_v26, %v3100_v34  ;;  %v3102_v57 = vmul.f32 %v6035_v38, %v7659_v15 }
 0x815   : > { %v3067_v61 = vpop.xlane.xlu1 %3066 }
 0x816   : > { %6040 = vrcp.f32 %v3067_v61  ;;  %v3115_v27 = vpack.c.bf16 %v3103_v30, %v3102_v57 }
 0x817   : > { %6042 = vrcp.f32 %v3064_v33 }
 0x819   : > { %5596 = vmatmul.mubr.msk.bf16.gmra.mxu0 %vm2195_vm5, %v3114_v56 }
 0x81a   : > { %5599 = vmatprep.mubr.msk.bf16.mxu0 %vm6201_vm2, %v8423_v39 }
 0x81b   : > { %v6037_v50 = vpop.eup %6036 }
 0x81c   : > { %v6039_v36 = vpop.eup %6038  ;;  %v3104_v59 = vmul.f32 %v6037_v50, %v7688_v23 }
 0x81d   : > { %v3105_v45 = vmul.f32 %v6039_v36, %v7684_v18 }
 0x81f   : > { %v3116_v35 = vpack.c.bf16 %v3105_v45, %v3104_v59 }
 0x821   : > { %5600 = vmatmul.mubr.msk.bf16.gmra.mxu0 %vm2195_vm5, %v3115_v27 }
 0x822   : > { %5603 = vmatprep.mubr.msk.bf16.mxu0 %vm6201_vm2, %v8423_v39 }
 0x823   : > { %v6041_v17 = vpop.eup %6040 }
 0x824   : > { %v6043_v24 = vpop.eup %6042  ;;  %v3107_v15 = vmul.f32 %v6041_v17, %v7696_v8 }
 0x825   : > { %v3106_v16 = vmul.f32 %v6043_v24, %v7692_v19 }
 0x827   : > { %v3117_v55 = vpack.c.bf16 %v3107_v15, %v3106_v16 }
 0x829   : > { %5604 = vmatmul.mubr.msk.bf16.gmra.mxu0 %vm2195_vm5, %v3116_v35 }
 0x82a   : > { %5607 = vmatprep.mubr.msk.bf16.mxu0 %vm6201_vm2, %v8423_v39 }
 0x831   : > { %5608 = vmatmul.mubr.msk.bf16.gmra.mxu0 %vm2195_vm5, %v3117_v55 }
 0x856   : > { %v3187_v23 = vpop.f32.mrf.mxu1 }
 0x858   : > { %v5563_v29 = vpop.f32.mrf.mxu1 }
 0x85a   : > { %v3190_v18 = vpop.f32.mrf.mxu1 }
 0x85b   : > { %v5776_v41 = vpack.i.bf16 %v3190_v18, %v3187_v23 }
 0x85c   : > { %v5564_v47 = vpop.f32.mrf.mxu1 }
 0x85d   : > { %5777 = vrot.lane.b32.xlu1 %v5776_v41, %s6203_s3 }
 0x86e   : > { %v3195_v39 = vpop.f32.mrf.mxu1 }
 0x870   : > { %v5567_v8 = vpop.f32.mrf.mxu1 }
 0x872   : > { %v3198_v19 = vpop.f32.mrf.mxu1 }
 0x873   : > { %v5781_v22 = vpack.i.bf16 %v3198_v19, %v3195_v39 }
 0x874   : > { %v5568_v51 = vpop.f32.mrf.mxu1 }
 0x875   : > { %5782 = vrot.lane.b32.xlu0 %v5781_v22, %s6203_s3 }
 0x897   : > { %v3203_v5 = vpop.f32.mrf.mxu1 }
 0x899   : > { %v5571_v25 = vpop.f32.mrf.mxu1 }
 0x89b   : > { %v3206_v6 = vpop.f32.mrf.mxu1 }
 0x89c   : > { %v5786_v2 = vpack.i.bf16 %v3206_v6, %v3203_v5 }
 0x89d   : > { %v5572_v9 = vpop.f32.mrf.mxu1 }
 0x89e   : > { %5787 = vrot.lane.b32.xlu0 %v5786_v2, %s6203_s3 }
 0x89f   : > { %v3211_v1 = vpop.f32.mrf.mxu1 }
 0x8a1   : > { %v5575_v10 = vpop.f32.mrf.mxu1 }
 0x8a3   : > { %v3214_v60 = vpop.f32.mrf.mxu1 }
 0x8a4   : > { %v5791_v54 = vpack.i.bf16 %v3214_v60, %v3211_v1 }
 0x8a5   : > { %v5576_v62 = vpop.f32.mrf.mxu1 }
 0x8a6   : > { %5792 = vrot.lane.b32.xlu1 %v5791_v54, %s6203_s3 }
 0x8cf   : > { %v5778_v53 = vpop.permute.xlu1 %5777 }
 0x8d0   : > { %v5780_v33 = vunpack.i.h.bf16 %v5778_v53  ;;  %v5779_v12 = vunpack.i.l.bf16 %v5778_v53 }
 0x8d1   : > { %v3295_v26 = vpop.f32.mrf.mxu0 }
 0x8d2   : > { %v3415_v34 = vsel %vm1966_vm3, %v7432_v52, %v5780_v33  ;;  %v3414_v56 = vsel %vm1966_vm3, %v7430_v0, %v5779_v12 }
 0x8d3   : > { %v3434_v44 = vpack.c.bf16 %v3415_v34, %v3414_v56  ;;  %v5593_v61 = vpop.f32.mrf.mxu0 }
 0x8d4   : > { %v3219_v38 = vpop.f32.mrf.mxu1 }
 0x8d5   : > { %v3298_v30 = vpop.f32.mrf.mxu0  ;;  %5615 = vmatprep.mubr.msk.bf16.mxu1 %vm1192_vm1, %v3434_v44 }
 0x8d6   : > { %v5801_v57 = vpack.i.bf16 %v3298_v30, %v3295_v26  ;;  %v5579_v27 = vpop.f32.mrf.mxu1 }
 0x8d7   : > { %v5594_v50 = vpop.f32.mrf.mxu0 }
 0x8d8   : > { %v3222_v36 = vpop.f32.mrf.mxu1  ;;  %5802 = vrot.lane.b32.xlu1 %v5801_v57, %s6203_s3 }
 0x8d9   : > { %v5796_v59 = vpack.i.bf16 %v3222_v36, %v3219_v38  ;;  %v3303_v45 = vpop.f32.mrf.mxu0 }
 0x8da   : > { %v5580_v35 = vpop.f32.mrf.mxu1 }
 0x8db   : > { %5797 = vrot.lane.b32.xlu0 %v5796_v59, %s6203_s3  ;;  %v5597_v52 = vpop.f32.mrf.mxu0 }
 0x8dd   : > { %v3306_v17 = vpop.f32.mrf.mxu0 }
 0x8de   : > { %v5806_v0 = vpack.i.bf16 %v3306_v17, %v3303_v45 }
 0x8df   : > { %v5598_v24 = vpop.f32.mrf.mxu0 }
 0x8e0   : > { %5807 = vrot.lane.b32.xlu0 %v5806_v0, %s6203_s3 }
 0x8e1   : > { %v3311_v15 = vpop.f32.mrf.mxu0 }
 0x8e3   : > { %v5601_v16 = vpop.f32.mrf.mxu0 }
 0x8e5   : > { %v3314_v55 = vpop.f32.mrf.mxu0 }
 0x8e6   : > { %v5811_v23 = vpack.i.bf16 %v3314_v55, %v3311_v15 }
 0x8e7   : > { %v5783_v29 = vpop.permute.xlu0 %5782  ;;  %v5602_v18 = vpop.f32.mrf.mxu0 }
 0x8e8   : > { %v5785_v41 = vunpack.i.h.bf16 %v5783_v29  ;;  %v5784_v47 = vunpack.i.l.bf16 %v5783_v29  ;;  %5812 = vrot.lane.b32.xlu1 %v5811_v23, %s6203_s3 }
 0x8e9   : > { %v3319_v63 = vpop.f32.mrf.mxu0 }
 0x8ea   : > { %v3417_v3 = vsel %vm1966_vm3, %v7436_v11, %v5785_v41  ;;  %v3416_v39 = vsel %vm1966_vm3, %v7434_v49, %v5784_v47 }
 0x8eb   : > { %v3435_v8 = vpack.c.bf16 %v3417_v3, %v3416_v39  ;;  %v5605_v19 = vpop.f32.mrf.mxu0  ;;  %v6124_v39 = vld [vmem:[#allocation2 + $0x10] sm:$0xff] }
 0x8ed   : > { %5616 = vmatmul.mubr.msk.bf16.vlgmr.msra.gmra.mxu1 %vm1192_vm1, %v3435_v8  ;;  %v3322_v22 = vpop.f32.mrf.mxu0  ;;  %v6125_v8 = vld [vmem:[#allocation2] sm:$0xff] }
 0x8ee   : > { %v5816_v51 = vpack.i.bf16 %v3322_v22, %v3319_v63  ;;  %v7817_v22 = vld [vmem:[%s8424_s8] ss:$0 sm:$0xff] }
 0x8ef   : > { %v5606_v5 = vpop.f32.mrf.mxu0 }
 0x8f0   : > { %5817 = vrot.lane.b32.xlu0 %v5816_v51, %s6203_s3 }
 0x8f1   : > { %v3327_v25 = vpop.f32.mrf.mxu0 }
 0x8f3   : > { %v5609_v6 = vpop.f32.mrf.mxu0 }
 0x8f5   : > { %v3330_v2 = vpop.f32.mrf.mxu0 }
 0x8f6   : > { %v5821_v9 = vpack.i.bf16 %v3330_v2, %v3327_v25  ;;  %v6126_v25 = vld [vmem:[#allocation2 + $0x18] sm:$0xff]  ;;  %v6127_v2 = vld [vmem:[#allocation2 + $0x8] sm:$0xff] }
 0x8f7   : > { %v5610_v1 = vpop.f32.mrf.mxu0 }
 0x8f8   : > { %5822 = vrot.lane.b32.xlu1 %v5821_v9, %s6203_s3 }
 0x910   : > { %v5788_v11 = vpop.permute.xlu0 %5787 }
 0x911   : > { %v5790_v10 = vunpack.i.h.bf16 %v5788_v11  ;;  %v5789_v60 = vunpack.i.l.bf16 %v5788_v11 }
 0x913   : > { %v3419_v49 = vsel %vm1966_vm3, %v7444_v42, %v5790_v10  ;;  %v3418_v54 = vsel %vm1966_vm3, %v7440_v58, %v5789_v60 }
 0x914   : > { %v3436_v62 = vpack.c.bf16 %v3419_v49, %v3418_v54 }
 0x916   : > { %5619 = vmatprep.mubr.msk.bf16.mxu1 %vm1192_vm1, %v3436_v62 }
 0x918   : > { %v5793_v53 = vpop.permute.xlu1 %5792 }
 0x919   : > { %v5795_v33 = vunpack.i.h.bf16 %v5793_v53  ;;  %v5794_v12 = vunpack.i.l.bf16 %v5793_v53 }
 0x91b   : > { %v3421_v26 = vsel %vm1966_vm3, %v7452_v46, %v5795_v33  ;;  %v3420_v34 = vsel %vm1966_vm3, %v7448_v20, %v5794_v12  ;;  %v6128_v33 = vld [vmem:[#allocation2 + $0x30] sm:$0xff] }
 0x91c   : > { %v3437_v56 = vpack.c.bf16 %v3421_v26, %v3420_v34  ;;  %v6129_v26 = vld [vmem:[#allocation2 + $0x20] sm:$0xff] }
 0x91e   : > { %5620 = vmatmul.mubr.msk.bf16.gmra.mxu1 %vm1192_vm1, %v3437_v56 }
 0x94a   : > { %v5803_v44 = vpop.permute.xlu1 %5802 }
 0x94b   : > { %v5805_v42 = vunpack.i.h.bf16 %v5803_v44  ;;  %v5804_v61 = vunpack.i.l.bf16 %v5803_v44 }
 0x94d   : > { %v5798_v38 = vpop.permute.xlu0 %5797  ;;  %v3425_v57 = vsel %vm1966_vm3, %v7442_v7, %v5805_v42  ;;  %v3424_v27 = vsel %vm1966_vm3, %v7438_v48, %v5804_v61 }
 0x94e   : > { %v5800_v58 = vunpack.i.h.bf16 %v5798_v38  ;;  %v5799_v30 = vunpack.i.l.bf16 %v5798_v38  ;;  %v3439_v36 = vpack.c.bf16 %v3425_v57, %v3424_v27  ;;  %v6130_v38 = vld [vmem:[#allocation2 + $0x38] sm:$0xff] }
 0x950   : > { %v3423_v46 = vsel %vm1966_vm3, %v7460_v31, %v5800_v58  ;;  %v3422_v20 = vsel %vm1966_vm3, %v7456_v37, %v5799_v30  ;;  %v6131_v30 = vld [vmem:[#allocation2 + $0x28] sm:$0xff] }
 0x951   : > { %v3438_v50 = vpack.c.bf16 %v3423_v46, %v3422_v20 }
 0x952   : > { %v5808_v59 = vpop.permute.xlu0 %5807 }
 0x953   : > { %v5810_v45 = vunpack.i.h.bf16 %v5808_v59  ;;  %v5809_v35 = vunpack.i.l.bf16 %v5808_v59  ;;  %5623 = vmatprep.mubr.msk.bf16.mxu1 %vm1192_vm1, %v3438_v50 }
 0x954   : > { %5624 = vmatmul.mubr.msk.bf16.gmra.mxu1 %vm1192_vm1, %v3439_v36 }
 0x955   : > { %v3427_v7 = vsel %vm1966_vm3, %v7450_v28, %v5810_v45  ;;  %v3426_v48 = vsel %vm1966_vm3, %v7446_v13, %v5809_v35 }
 0x956   : > { %v3440_v52 = vpack.c.bf16 %v3427_v7, %v3426_v48  ;;  %v6132_v7 = vld [vmem:[#allocation2 + $0x50] sm:$0xff] }
 0x958   : > { %5627 = vmatprep.mubr.msk.bf16.mxu1 %vm1192_vm1, %v3440_v52  ;;  %v6133_v52 = vld [vmem:[#allocation2 + $0x40] sm:$0xff] }
 0x95a   : > { %v5813_v31 = vpop.permute.xlu1 %5812 }
 0x95b   : > { %v5815_v37 = vunpack.i.h.bf16 %v5813_v31  ;;  %v5814_v17 = vunpack.i.l.bf16 %v5813_v31 }
 0x95d   : > { %v3429_v0 = vsel %vm1966_vm3, %v7458_v32, %v5815_v37  ;;  %v3428_v24 = vsel %vm1966_vm3, %v7454_v21, %v5814_v17 }
 0x95e   : > { %v3441_v15 = vpack.c.bf16 %v3429_v0, %v3428_v24 }
 0x960   : > { %5628 = vmatmul.mubr.msk.bf16.gmra.mxu1 %vm1192_vm1, %v3441_v15  ;;  %v6134_v15 = vld [vmem:[#allocation2 + $0x58] sm:$0xff] }
 0x962   : > { %v5818_v16 = vpop.permute.xlu0 %5817 }
 0x963   : > { %v5820_v28 = vunpack.i.h.bf16 %v5818_v16  ;;  %v5819_v55 = vunpack.i.l.bf16 %v5818_v16 }
 0x965   : > { %v3431_v13 = vsel %vm1966_vm3, %v7488_v14, %v5820_v28  ;;  %v3430_v23 = vsel %vm1966_vm3, %v7486_v40, %v5819_v55  ;;  %v6135_v28 = vld [vmem:[#allocation2 + $0x48] sm:$0xff] }
 0x966   : > { %v3442_v29 = vpack.c.bf16 %v3431_v13, %v3430_v23 }
 0x968   : > { %5631 = vmatprep.mubr.msk.bf16.mxu1 %vm1192_vm1, %v3442_v29 }
 0x96a   : > { %v5823_v32 = vpop.permute.xlu1 %5822 }
 0x96b   : > { %v5825_v18 = vunpack.i.h.bf16 %v5823_v32  ;;  %v5824_v41 = vunpack.i.l.bf16 %v5823_v32 }
 0x96d   : > { %v3433_v21 = vsel %vm1966_vm3, %v7492_v4, %v5825_v18  ;;  %v3432_v47 = vsel %vm1966_vm3, %v7490_v43, %v5824_v41 }
 0x96e   : > { %v3443_v63 = vpack.c.bf16 %v3433_v21, %v3432_v47  ;;  %v6136_v47 = vld [vmem:[#allocation2 + $0x70] sm:$0xff] }
 0x970   : > { %5632 = vmatmul.mubr.msk.bf16.gmra.mxu1 %vm1192_vm1, %v3443_v63 }
 0x9ad   : > { %v5617_v14 = vpop.f32.mrf.mxu1 }
 0x9ae   : > { %v3605_v40 = vadd.f32 %v6124_v39, %v5617_v14  ;;  %v6137_v14 = vld [vmem:[#allocation2 + $0x60] sm:$0xff] }
 0x9af   : > { %v3524_v3 = vpop.f32.mrf.mxu1 }
 0x9b0   : > { %v3603_v19 = vadd.f32 %v6125_v8, %v3524_v3  ;;  %v7823_v5 = vadd.f32 %v7817_v22, %v3605_v40 }
 0x9b1   : > { %v5618_v51 = vpop.f32.mrf.mxu1 }
 0x9b2   : > { %v7820_v4 = vadd.f32 %v7817_v22, %v3603_v19  ;;  %v3606_v6 = vadd.f32 %v6126_v25, %v5618_v51  ;;  %v3658_v60 = vsel %vm1192_vm1, %v7823_v5, 0.0 }
 0x9b3   : > { %v3527_v43 = vpop.f32.mrf.mxu1 }
 0x9b4   : > { %v3604_v9 = vadd.f32 %v6127_v2, %v3527_v43  ;;  %v3652_v1 = vsel %vm1192_vm1, %v7820_v4, 0.0  ;;  %v7831_v10 = vadd.f32 %v7817_v22, %v3606_v6  ;;  %v6138_v43 = vld [vmem:[#allocation2 + $0x78] sm:$0xff]  ;;  %v6139_v6 = vld [vmem:[#allocation2 + $0x68] sm:$0xff] }
 0x9b5   : > { %3653 = vadd.xlane.f32.xlu0 %v3652_v1 }
 0x9b6   : > { %v7828_v11 = vadd.f32 %v7817_v22, %v3604_v9  ;;  %v3661_v54 = vsel %vm1192_vm1, %v7831_v10, 0.0 }
 0x9b8   : > { %v3655_v49 = vsel %vm1192_vm1, %v7828_v11, 0.0 }
 0x9b9   : > { %3659 = vadd.xlane.f32.xlu0 %v3658_v60  ;;  %3656 = vadd.xlane.f32.xlu1 %v3655_v49 }
 0x9bd   : > { %3662 = vadd.xlane.f32.xlu0 %v3661_v54 }
 0x9de   : > { %v5621_v62 = vpop.f32.mrf.mxu1 }
 0x9df   : > { %v3609_v12 = vadd.f32 %v6128_v33, %v5621_v62 }
 0x9e0   : > { %v3540_v53 = vpop.f32.mrf.mxu1 }
 0x9e1   : > { %v3607_v34 = vadd.f32 %v6129_v26, %v3540_v53  ;;  %v7843_v61 = vadd.f32 %v7817_v22, %v3609_v12  ;;  %v6140_v12 = vld [vmem:[#allocation2 + $0x90] sm:$0xff] }
 0x9e2   : > { %v5622_v56 = vpop.f32.mrf.mxu1 }
 0x9e3   : > { %v7840_v44 = vadd.f32 %v7817_v22, %v3607_v34  ;;  %v3610_v58 = vadd.f32 %v6130_v38, %v5622_v56  ;;  %v3670_v50 = vsel %vm1192_vm1, %v7843_v61, 0.0  ;;  %v6141_v34 = vld [vmem:[#allocation2 + $0x80] sm:$0xff] }
 0x9e4   : > { %v3543_v42 = vpop.f32.mrf.mxu1 }
 0x9e5   : > { %v3608_v57 = vadd.f32 %v6131_v30, %v3543_v42  ;;  %v3664_v27 = vsel %vm1192_vm1, %v7840_v44, 0.0  ;;  %v7851_v20 = vadd.f32 %v7817_v22, %v3610_v58 }
 0x9e6   : > { %3665 = vadd.xlane.f32.xlu0 %v3664_v27 }
 0x9e7   : > { %v7848_v46 = vadd.f32 %v7817_v22, %v3608_v57  ;;  %v3673_v59 = vsel %vm1192_vm1, %v7851_v20, 0.0  ;;  %v6142_v57 = vld [vmem:[#allocation2 + $0x98] sm:$0xff] }
 0x9e9   : > { %v3667_v36 = vsel %vm1192_vm1, %v7848_v46, 0.0 }
 0x9ea   : > { %3671 = vadd.xlane.f32.xlu0 %v3670_v50  ;;  %3668 = vadd.xlane.f32.xlu1 %v3667_v36  ;;  %v6143_v50 = vld [vmem:[#allocation2 + $0x88] sm:$0xff] }
 0x9ee   : > { %3674 = vadd.xlane.f32.xlu1 %v3673_v59 }
 0xa14   : > { %v5625_v45 = vpop.f32.mrf.mxu1 }
 0xa15   : > { %v3613_v48 = vadd.f32 %v6132_v7, %v5625_v45 }
 0xa16   : > { %v3556_v35 = vpop.f32.mrf.mxu1 }
 0xa17   : > { %v3611_v31 = vadd.f32 %v6133_v52, %v3556_v35  ;;  %v7863_v24 = vadd.f32 %v7817_v22, %v3613_v48 }
 0xa18   : > { %v5626_v37 = vpop.f32.mrf.mxu1 }
 0xa19   : > { %v7860_v17 = vadd.f32 %v7817_v22, %v3611_v31  ;;  %v3614_v16 = vadd.f32 %v6134_v15, %v5626_v37  ;;  %v3682_v32 = vsel %vm1192_vm1, %v7863_v24, 0.0 }
 0xa1a   : > { %v3559_v0 = vpop.f32.mrf.mxu1 }
 0xa1b   : > { %v3612_v55 = vadd.f32 %v6135_v28, %v3559_v0  ;;  %v3676_v13 = vsel %vm1192_vm1, %v7860_v17, 0.0  ;;  %v7871_v29 = vadd.f32 %v7817_v22, %v3614_v16 }
 0xa1c   : > { %3677 = vadd.xlane.f32.xlu0 %v3676_v13 }
 0xa1d   : > { %v7868_v23 = vadd.f32 %v7817_v22, %v3612_v55  ;;  %v3685_v39 = vsel %vm1192_vm1, %v7871_v29, 0.0 }
 0xa1f   : > { %v3679_v18 = vsel %vm1192_vm1, %v7868_v23, 0.0 }
 0xa20   : > { %3683 = vadd.xlane.f32.xlu0 %v3682_v32  ;;  %3680 = vadd.xlane.f32.xlu1 %v3679_v18  ;;  %v5629_v41 = vpop.f32.mrf.mxu1 }
 0xa21   : > { %v3617_v63 = vadd.f32 %v6136_v47, %v5629_v41 }
 0xa22   : > { %v3572_v21 = vpop.f32.mrf.mxu1 }
 0xa23   : > { %v3615_v3 = vadd.f32 %v6137_v14, %v3572_v21  ;;  %v7883_v51 = vadd.f32 %v7817_v22, %v3617_v63 }
 0xa24   : > { %3686 = vadd.xlane.f32.xlu1 %v3685_v39  ;;  %v5630_v40 = vpop.f32.mrf.mxu1 }
 0xa25   : > { %v7880_v8 = vadd.f32 %v7817_v22, %v3615_v3  ;;  %v3618_v25 = vadd.f32 %v6138_v43, %v5630_v40  ;;  %v3694_v49 = vsel %vm1192_vm1, %v7883_v51, 0.0  ;;  %v5834_v43 = vld [vmem:[%s6383_s6 + $0x8] sm:$0xff]  }
 0xa26   : > { %v3575_v19 = vpop.f32.mrf.mxu1  ;;  %5635 = vmatprep.subr.bf16.mxu0 %v5834_v43 }
 0xa27   : > { %v3616_v2 = vadd.f32 %v6139_v6, %v3575_v19  ;;  %v3688_v9 = vsel %vm1192_vm1, %v7880_v8, 0.0  ;;  %v7891_v60 = vadd.f32 %v7817_v22, %v3618_v25  ;;  %5636 = vmatpush3.bf16.msra.mxu0 %v5834_v43  ;;  %v5835_v25 = vld [vmem:[%s6383_s6] sm:$0xff]   ;;  %s8428_s6 = sld [smem:[#allocation19_spill]] (!%p5065_p6) }
 0xa28   : > { %3689 = vadd.xlane.f32.xlu0 %v3688_v9  ;;  %5637 = vmatprep.subr.bf16.mxu0 %v5835_v25 }
 0xa29   : > { %v7888_v1 = vadd.f32 %v7817_v22, %v3616_v2  ;;  %v3697_v62 = vsel %vm1192_vm1, %v7891_v60, 0.0 }
 0xa2b   : > { %v3691_v54 = vsel %vm1192_vm1, %v7888_v1, 0.0  ;;  %5638 = vmatpush3.bf16.msra.mxu0 %v5835_v25 }
 0xa2c   : > { %3695 = vadd.xlane.f32.xlu0 %v3694_v49  ;;  %3692 = vadd.xlane.f32.xlu1 %v3691_v54 }
 0xa30   : > { %3698 = vadd.xlane.f32.xlu1 %v3697_v62  ;;  %v5633_v53 = vpop.f32.mrf.mxu1 }
 0xa31   : > { %v3621_v26 = vadd.f32 %v6140_v12, %v5633_v53 }
 0xa32   : > { %v3588_v33 = vpop.f32.mrf.mxu1 }
 0xa33   : > { %v3619_v56 = vadd.f32 %v6141_v34, %v3588_v33  ;;  %v7903_v30 = vadd.f32 %v7817_v22, %v3621_v26 }
 0xa34   : > { %v5634_v42 = vpop.f32.mrf.mxu1 }
 0xa35   : > { %v7900_v38 = vadd.f32 %v7817_v22, %v3619_v56  ;;  %v3622_v27 = vadd.f32 %v6142_v57, %v5634_v42  ;;  %v3706_v7 = vsel %vm1192_vm1, %v7903_v30, 0.0 }
 0xa36   : > { %v3591_v58 = vpop.f32.mrf.mxu1 }
 0xa37   : > { %v3620_v36 = vadd.f32 %v6143_v50, %v3591_v58  ;;  %v3700_v59 = vsel %vm1192_vm1, %v7900_v38, 0.0  ;;  %v7911_v35 = vadd.f32 %v7817_v22, %v3622_v27 }
 0xa38   : > { %3701 = vadd.xlane.f32.xlu0 %v3700_v59 }
 0xa39   : > { %v7908_v45 = vadd.f32 %v7817_v22, %v3620_v36  ;;  %v3709_v37 = vsel %vm1192_vm1, %v7911_v35, 0.0 }
 0xa3b   : > { %v3703_v48 = vsel %vm1192_vm1, %v7908_v45, 0.0 }
 0xa3c   : > { %3707 = vadd.xlane.f32.xlu0 %v3706_v7  ;;  %3704 = vadd.xlane.f32.xlu1 %v3703_v48 }
 0xa3e   : > { %v3654_v52 = vpop.xlane.xlu0 %3653 }
 0xa3f   : > { %v3712_v31 = vmul.f32 0.03125, %v3654_v52 }
 0xa40   : > { %3710 = vadd.xlane.f32.xlu1 %v3709_v37 }
 0xa41   : > { %v7920_v0 = vsub.f32 %v7820_v4, %v3712_v31 }
 0xa42   : > { %v3660_v15 = vpop.xlane.xlu0 %3659  ;;  %v3657_v22 = vpop.xlane.xlu1 %3656 }
 0xa43   : > { %v3714_v16 = vmul.f32 0.03125, %v3660_v15  ;;  %v3713_v28 = vmul.f32 0.03125, %v3657_v22  ;;  %v3752_v55 = vmul.f32 %v7920_v0, %v7920_v0 }
 0xa45   : > { %v7925_v13 = vsub.f32 %v7823_v5, %v3714_v16  ;;  %v7928_v32 = vsub.f32 %v7828_v11, %v3713_v28  ;;  %v3772_v18 = vsel %vm1192_vm1, %v3752_v55, 0.0 }
 0xa46   : > { %v3663_v41 = vpop.xlane.xlu0 %3662  ;;  %3773 = vadd.xlane.f32.xlu0 %v3772_v18 }
 0xa47   : > { %v3715_v21 = vmul.f32 0.03125, %v3663_v41  ;;  %v3754_v47 = vmul.f32 %v7925_v13, %v7925_v13  ;;  %v3753_v63 = vmul.f32 %v7928_v32, %v7928_v32 }
 0xa49   : > { %v7936_v14 = vsub.f32 %v7831_v10, %v3715_v21  ;;  %v3778_v3 = vsel %vm1192_vm1, %v3754_v47, 0.0  ;;  %v3775_v39 = vsel %vm1192_vm1, %v3753_v63, 0.0 }
 0xa4a   : > { %3779 = vadd.xlane.f32.xlu0 %v3778_v3  ;;  %3776 = vadd.xlane.f32.xlu1 %v3775_v39 }
 0xa4b   : > { %v3755_v40 = vmul.f32 %v7936_v14, %v7936_v14 }
 0xa4d   : > { %v3781_v19 = vsel %vm1192_vm1, %v3755_v40, 0.0 }
 0xa4e   : > { %3782 = vadd.xlane.f32.xlu1 %v3781_v19 }
 0xa6f   : > { %v3666_v6 = vpop.xlane.xlu0 %3665 }
 0xa70   : > { %v3716_v2 = vmul.f32 0.03125, %v3666_v6 }
 0xa72   : > { %v7946_v9 = vsub.f32 %v7840_v44, %v3716_v2 }
 0xa73   : > { %v3672_v49 = vpop.xlane.xlu0 %3671  ;;  %v3669_v54 = vpop.xlane.xlu1 %3668 }
 0xa74   : > { %v3718_v62 = vmul.f32 0.03125, %v3672_v49  ;;  %v3717_v53 = vmul.f32 0.03125, %v3669_v54  ;;  %v3756_v33 = vmul.f32 %v7946_v9, %v7946_v9 }
 0xa76   : > { %v7951_v12 = vsub.f32 %v7843_v61, %v3718_v62  ;;  %v7954_v26 = vsub.f32 %v7848_v46, %v3717_v53  ;;  %v3784_v34 = vsel %vm1192_vm1, %v3756_v33, 0.0 }
 0xa77   : > { %v3675_v56 = vpop.xlane.xlu1 %3674  ;;  %3785 = vadd.xlane.f32.xlu0 %v3784_v34 }
 0xa78   : > { %v3719_v42 = vmul.f32 0.03125, %v3675_v56  ;;  %v3758_v58 = vmul.f32 %v7951_v12, %v7951_v12  ;;  %v3757_v57 = vmul.f32 %v7954_v26, %v7954_v26 }
 0xa7a   : > { %v7962_v27 = vsub.f32 %v7851_v20, %v3719_v42  ;;  %v3790_v50 = vsel %vm1192_vm1, %v3758_v58, 0.0  ;;  %v3787_v36 = vsel %vm1192_vm1, %v3757_v57, 0.0 }
 0xa7b   : > { %3791 = vadd.xlane.f32.xlu0 %v3790_v50  ;;  %3788 = vadd.xlane.f32.xlu1 %v3787_v36 }
 0xa7c   : > { %v3759_v59 = vmul.f32 %v7962_v27, %v7962_v27 }
 0xa7e   : > { %v3793_v7 = vsel %vm1192_vm1, %v3759_v59, 0.0 }
 0xa7f   : > { %3794 = vadd.xlane.f32.xlu1 %v3793_v7 }
 0xaa5   : > { %v3678_v48 = vpop.xlane.xlu0 %3677 }
 0xaa6   : > { %v3720_v52 = vmul.f32 0.03125, %v3678_v48 }
 0xaa8   : > { %v7970_v31 = vsub.f32 %v7860_v17, %v3720_v52 }
 0xaa9   : > { %v3684_v37 = vpop.xlane.xlu0 %3683  ;;  %v3681_v15 = vpop.xlane.xlu1 %3680 }
 0xaaa   : > { %v3722_v22 = vmul.f32 0.03125, %v3684_v37  ;;  %v3721_v16 = vmul.f32 0.03125, %v3681_v15  ;;  %v3760_v28 = vmul.f32 %v7970_v31, %v7970_v31 }
 0xaac   : > { %v7975_v55 = vsub.f32 %v7863_v24, %v3722_v22  ;;  %v7978_v18 = vsub.f32 %v7868_v23, %v3721_v16  ;;  %v3796_v41 = vsel %vm1192_vm1, %v3760_v28, 0.0 }
 0xaad   : > { %v3687_v21 = vpop.xlane.xlu1 %3686  ;;  %3797 = vadd.xlane.f32.xlu0 %v3796_v41 }
 0xaae   : > { %v3723_v47 = vmul.f32 0.03125, %v3687_v21  ;;  %v3762_v63 = vmul.f32 %v7975_v55, %v7975_v55  ;;  %v3761_v3 = vmul.f32 %v7978_v18, %v7978_v18 }
 0xab0   : > { %v7986_v39 = vsub.f32 %v7871_v29, %v3723_v47  ;;  %v3802_v40 = vsel %vm1192_vm1, %v3762_v63, 0.0  ;;  %v3799_v19 = vsel %vm1192_vm1, %v3761_v3, 0.0 }
 0xab1   : > { %v3690_v43 = vpop.xlane.xlu0 %3689  ;;  %3803 = vadd.xlane.f32.xlu0 %v3802_v40  ;;  %3800 = vadd.xlane.f32.xlu1 %v3799_v19 }
 0xab2   : > { %v3724_v25 = vmul.f32 0.03125, %v3690_v43  ;;  %v3763_v6 = vmul.f32 %v7986_v39, %v7986_v39 }
 0xab4   : > { %v7993_v2 = vsub.f32 %v7880_v8, %v3724_v25  ;;  %v3805_v49 = vsel %vm1192_vm1, %v3763_v6, 0.0 }
 0xab5   : > { %v3696_v54 = vpop.xlane.xlu0 %3695  ;;  %v3693_v62 = vpop.xlane.xlu1 %3692  ;;  %3806 = vadd.xlane.f32.xlu1 %v3805_v49 }
 0xab6   : > { %v3726_v53 = vmul.f32 0.03125, %v3696_v54  ;;  %v3725_v33 = vmul.f32 0.03125, %v3693_v62  ;;  %v3764_v34 = vmul.f32 %v7993_v2, %v7993_v2 }
 0xab8   : > { %v7999_v56 = vsub.f32 %v7883_v51, %v3726_v53  ;;  %v8002_v42 = vsub.f32 %v7888_v1, %v3725_v33  ;;  %v3808_v58 = vsel %vm1192_vm1, %v3764_v34, 0.0 }
 0xab9   : > { %v3699_v57 = vpop.xlane.xlu1 %3698  ;;  %3809 = vadd.xlane.f32.xlu0 %v3808_v58 }
 0xaba   : > { %v3727_v50 = vmul.f32 0.03125, %v3699_v57  ;;  %v3766_v36 = vmul.f32 %v7999_v56, %v7999_v56  ;;  %v3765_v59 = vmul.f32 %v8002_v42, %v8002_v42 }
 0xabc   : > { %v8010_v7 = vsub.f32 %v7891_v60, %v3727_v50  ;;  %v3814_v48 = vsel %vm1192_vm1, %v3766_v36, 0.0  ;;  %v3811_v52 = vsel %vm1192_vm1, %v3765_v59, 0.0 }
 0xabd   : > { %3815 = vadd.xlane.f32.xlu0 %v3814_v48  ;;  %3812 = vadd.xlane.f32.xlu1 %v3811_v52 }
 0xabe   : > { %v3767_v37 = vmul.f32 %v8010_v7, %v8010_v7 }
 0xac0   : > { %v3817_v15 = vsel %vm1192_vm1, %v3767_v37, 0.0 }
 0xac1   : > { %v3702_v22 = vpop.xlane.xlu0 %3701  ;;  %3818 = vadd.xlane.f32.xlu1 %v3817_v15 }
 0xac2   : > { %v3728_v16 = vmul.f32 0.03125, %v3702_v22 }
 0xac4   : > { %v8018_v28 = vsub.f32 %v7900_v38, %v3728_v16 }
 0xac5   : > { %v3708_v41 = vpop.xlane.xlu0 %3707  ;;  %v3705_v21 = vpop.xlane.xlu1 %3704 }
 0xac6   : > { %v3730_v47 = vmul.f32 0.03125, %v3708_v41  ;;  %v3729_v63 = vmul.f32 0.03125, %v3705_v21  ;;  %v3768_v3 = vmul.f32 %v8018_v28, %v8018_v28 }
 0xac8   : > { %v8023_v40 = vsub.f32 %v7903_v30, %v3730_v47  ;;  %v8026_v19 = vsub.f32 %v7908_v45, %v3729_v63  ;;  %v3820_v43 = vsel %vm1192_vm1, %v3768_v3, 0.0  ;;  %v8047_v3 = vld [vmem:[%s8425_s17] ss:$0 sm:$0xff] }
 0xac9   : > { %3821 = vadd.xlane.f32.xlu0 %v3820_v43  ;;  %v3711_v25 = vpop.xlane.xlu1 %3710 }
 0xaca   : > { %v3731_v6 = vmul.f32 0.03125, %v3711_v25  ;;  %v3770_v49 = vmul.f32 %v8023_v40, %v8023_v40  ;;  %v3769_v54 = vmul.f32 %v8026_v19, %v8026_v19 }
 0xacc   : > { %v8034_v62 = vsub.f32 %v7911_v35, %v3731_v6  ;;  %v3826_v53 = vsel %vm1192_vm1, %v3770_v49, 0.0  ;;  %v3823_v33 = vsel %vm1192_vm1, %v3769_v54, 0.0 }
 0xacd   : > { %3827 = vadd.xlane.f32.xlu0 %v3826_v53  ;;  %3824 = vadd.xlane.f32.xlu1 %v3823_v33  ;;  %v8057_v53 = vld [vmem:[%s839_s19] ss:$0 sm:$0xff] }
 0xace   : > { %v3771_v34 = vmul.f32 %v8034_v62, %v8034_v62 }
 0xacf   : > { %v3774_v58 = vpop.xlane.xlu0 %3773 }
 0xad0   : > { %v3832_v57 = vmul.f32 0.03125, %v3774_v58  ;;  %v3829_v50 = vsel %vm1192_vm1, %v3771_v34, 0.0 }
 0xad1   : > { %3830 = vadd.xlane.f32.xlu1 %v3829_v50 }
 0xad2   : > { %v3852_v36 = vadd.f32 1e-05, %v3832_v57 }
 0xad3   : > { %v3780_v59 = vpop.xlane.xlu0 %3779  ;;  %v3777_v48 = vpop.xlane.xlu1 %3776 }
 0xad4   : > { %6044 = vrsqrt.f32 %v3852_v36  ;;  %v3834_v52 = vmul.f32 0.03125, %v3780_v59  ;;  %v3833_v37 = vmul.f32 0.03125, %v3777_v48 }
 0xad6   : > { %v3854_v15 = vadd.f32 1e-05, %v3834_v52  ;;  %v3853_v22 = vadd.f32 1e-05, %v3833_v37 }
 0xad7   : > { %v3783_v16 = vpop.xlane.xlu1 %3782 }
 0xad8   : > { %6046 = vrsqrt.f32 %v3854_v15  ;;  %v3835_v41 = vmul.f32 0.03125, %v3783_v16 }
 0xad9   : > { %6048 = vrsqrt.f32 %v3853_v22 }
 0xada   : > { %v3855_v21 = vadd.f32 1e-05, %v3835_v41 }
 0xadc   : > { %6050 = vrsqrt.f32 %v3855_v21 }
 0xae1   : > { %v6045_v47 = vpop.eup %6044 }
 0xae2   : > { %v3892_v63 = vmul.f32 %v6045_v47, %v7920_v0 }
 0xae4   : > { %v3918_v54 = vmul.f32 %v8047_v3, %v3892_v63 }
 0xae5   : > { %v6047_v43 = vpop.eup %6046 }
 0xae6   : > { %v6049_v25 = vpop.eup %6048  ;;  %v3894_v6 = vmul.f32 %v6047_v43, %v7925_v13  ;;  %v3944_v57 = vadd.f32 %v8057_v53, %v3918_v54 }
 0xae7   : > { %v3893_v49 = vmul.f32 %v6049_v25, %v7928_v32 }
 0xae8   : > { %v3920_v34 = vmul.f32 %v8047_v3, %v3894_v6 }
 0xae9   : > { %v6051_v0 = vpop.eup %6050  ;;  %v3919_v33 = vmul.f32 %v8047_v3, %v3893_v49 }
 0xaea   : > { %v3895_v58 = vmul.f32 %v6051_v0, %v7936_v14  ;;  %v3946_v36 = vadd.f32 %v8057_v53, %v3920_v34 }
 0xaeb   : > { %v3945_v13 = vadd.f32 %v8057_v53, %v3919_v33 }
 0xaec   : > { %v3921_v32 = vmul.f32 %v8047_v3, %v3895_v58 }
 0xaed   : > { %v3964_v50 = vpack.c.bf16 %v3945_v13, %v3944_v57 }
 0xaee   : > { %v3947_v59 = vadd.f32 %v8057_v53, %v3921_v32 }
 0xaef   : > { %5639 = vmatprep.mubr.msk.bf16.mxu0 %vm1192_vm1, %v3964_v50 }
 0xaf0   : > { %v3965_v48 = vpack.c.bf16 %v3947_v59, %v3946_v36 }
 0xaf2   : > { %5640 = vmatmul.mubr.msk.bf16.vlgmr.msra.gmra.mxu0 %vm1192_vm1, %v3965_v48 }
 0xb00   : > { %v3786_v52 = vpop.xlane.xlu0 %3785 }
 0xb01   : > { %v3836_v37 = vmul.f32 0.03125, %v3786_v52 }
 0xb03   : > { %v3856_v15 = vadd.f32 1e-05, %v3836_v37 }
 0xb04   : > { %v3792_v14 = vpop.xlane.xlu0 %3791  ;;  %v3789_v22 = vpop.xlane.xlu1 %3788 }
 0xb05   : > { %6052 = vrsqrt.f32 %v3856_v15  ;;  %v3838_v16 = vmul.f32 0.03125, %v3792_v14  ;;  %v3837_v41 = vmul.f32 0.03125, %v3789_v22 }
 0xb07   : > { %v3858_v21 = vadd.f32 1e-05, %v3838_v16  ;;  %v3857_v47 = vadd.f32 1e-05, %v3837_v41 }
 0xb08   : > { %v3795_v63 = vpop.xlane.xlu1 %3794 }
 0xb09   : > { %6054 = vrsqrt.f32 %v3858_v21  ;;  %v3839_v43 = vmul.f32 0.03125, %v3795_v63  ;;  %v5836_v21 = vld [vmem:[%s6397_s20 + $0x38] sm:$0xff]  }
 0xb0a   : > { %6056 = vrsqrt.f32 %v3857_v47  ;;  %5659 = vmatprep.subr.bf16.mxu1 %v5836_v21 }
 0xb0b   : > { %v3859_v25 = vadd.f32 1e-05, %v3839_v43  ;;  %5660 = vmatpush3.bf16.msra.mxu1 %v5836_v21 }
 0xb0d   : > { %6058 = vrsqrt.f32 %v3859_v25 }
 0xb12   : > { %v6053_v6 = vpop.eup %6052 }
 0xb13   : > { %v3896_v49 = vmul.f32 %v6053_v6, %v7946_v9  ;;  %v5837_v6 = vld [vmem:[%s6397_s20 + $0x30] sm:$0xff]  }
 0xb14   : > { %5661 = vmatprep.subr.bf16.mxu1 %v5837_v6 }
 0xb15   : > { %v3922_v58 = vmul.f32 %v8047_v3, %v3896_v49  ;;  %5662 = vmatpush3.bf16.msra.mxu1 %v5837_v6 }
 0xb16   : > { %v6055_v54 = vpop.eup %6054 }
 0xb17   : > { %v6057_v0 = vpop.eup %6056  ;;  %v3898_v33 = vmul.f32 %v6055_v54, %v7951_v12  ;;  %v3948_v36 = vadd.f32 %v8057_v53, %v3922_v58 }
 0xb18   : > { %v3897_v34 = vmul.f32 %v6057_v0, %v7954_v26 }
 0xb19   : > { %v3924_v50 = vmul.f32 %v8047_v3, %v3898_v33  ;;  %v5838_v33 = vld [vmem:[%s6397_s20 + $0x28] sm:$0xff]  }
 0xb1a   : > { %v6059_v57 = vpop.eup %6058  ;;  %v3923_v13 = vmul.f32 %v8047_v3, %v3897_v34  ;;  %5663 = vmatprep.subr.bf16.mxu1 %v5838_v33 }
 0xb1b   : > { %v3899_v32 = vmul.f32 %v6059_v57, %v7962_v27  ;;  %v3950_v12 = vadd.f32 %v8057_v53, %v3924_v50  ;;  %5664 = vmatpush3.bf16.msra.mxu1 %v5838_v33  ;;  %v5839_v50 = vld [vmem:[%s6397_s20 + $0x20] sm:$0xff]  }
 0xb1c   : > { %v3949_v59 = vadd.f32 %v8057_v53, %v3923_v13  ;;  %5665 = vmatprep.subr.bf16.mxu1 %v5839_v50 }
 0xb1d   : > { %v3925_v9 = vmul.f32 %v8047_v3, %v3899_v32 }
 0xb1e   : > { %v3966_v48 = vpack.c.bf16 %v3949_v59, %v3948_v36 }
 0xb1f   : > { %v3951_v26 = vadd.f32 %v8057_v53, %v3925_v9  ;;  %5666 = vmatpush3.bf16.msra.mxu1 %v5839_v50 }
 0xb20   : > { %5643 = vmatprep.mubr.msk.bf16.mxu0 %vm1192_vm1, %v3966_v48 }
 0xb21   : > { %v3967_v52 = vpack.c.bf16 %v3951_v26, %v3950_v12 }
 0xb23   : > { %5644 = vmatmul.mubr.msk.bf16.gmra.mxu0 %vm1192_vm1, %v3967_v52  ;;  %v5840_v52 = vld [vmem:[%s6397_s20 + $0x18] sm:$0xff]  }
 0xb24   : > { %5667 = vmatprep.subr.bf16.mxu1 %v5840_v52 }
 0xb25   : > { %5668 = vmatpush3.bf16.msra.mxu1 %v5840_v52 }
 0xb36   : > { %v3798_v27 = vpop.xlane.xlu0 %3797 }
 0xb37   : > { %v3840_v37 = vmul.f32 0.03125, %v3798_v27 }
 0xb39   : > { %v3860_v15 = vadd.f32 1e-05, %v3840_v37 }
 0xb3a   : > { %v3804_v14 = vpop.xlane.xlu0 %3803  ;;  %v3801_v22 = vpop.xlane.xlu1 %3800 }
 0xb3b   : > { %6060 = vrsqrt.f32 %v3860_v15  ;;  %v3842_v16 = vmul.f32 0.03125, %v3804_v14  ;;  %v3841_v41 = vmul.f32 0.03125, %v3801_v22 }
 0xb3d   : > { %v3862_v47 = vadd.f32 1e-05, %v3842_v16  ;;  %v3861_v63 = vadd.f32 1e-05, %v3841_v41  ;;  %v5841_v41 = vld [vmem:[%s6397_s20 + $0x10] sm:$0xff]  }
 0xb3e   : > { %v3807_v43 = vpop.xlane.xlu1 %3806  ;;  %5669 = vmatprep.subr.bf16.mxu1 %v5841_v41 }
 0xb3f   : > { %6062 = vrsqrt.f32 %v3862_v47  ;;  %v3843_v25 = vmul.f32 0.03125, %v3807_v43  ;;  %5670 = vmatpush3.bf16.msra.mxu1 %v5841_v41 }
 0xb40   : > { %6064 = vrsqrt.f32 %v3861_v63 }
 0xb41   : > { %v3863_v49 = vadd.f32 1e-05, %v3843_v25 }
 0xb42   : > { %v3810_v54 = vpop.xlane.xlu0 %3809 }
 0xb43   : > { %6066 = vrsqrt.f32 %v3863_v49  ;;  %v3844_v0 = vmul.f32 0.03125, %v3810_v54  ;;  %v5842_v49 = vld [vmem:[%s6397_s20 + $0x8] sm:$0xff]  }
 0xb44   : > { %5671 = vmatprep.subr.bf16.mxu1 %v5842_v49 }
 0xb45   : > { %v3864_v34 = vadd.f32 1e-05, %v3844_v0  ;;  %5672 = vmatpush3.bf16.msra.mxu1 %v5842_v49 }
 0xb46   : > { %v3816_v58 = vpop.xlane.xlu0 %3815  ;;  %v3813_v57 = vpop.xlane.xlu1 %3812 }
 0xb47   : > { %6068 = vrsqrt.f32 %v3864_v34  ;;  %v3846_v13 = vmul.f32 0.03125, %v3816_v58  ;;  %v3845_v32 = vmul.f32 0.03125, %v3813_v57 }
 0xb48   : > { %v6061_v36 = vpop.eup %6060 }
 0xb49   : > { %v3866_v59 = vadd.f32 1e-05, %v3846_v13  ;;  %v3865_v9 = vadd.f32 1e-05, %v3845_v32  ;;  %v3900_v12 = vmul.f32 %v6061_v36, %v7970_v31 }
 0xb4a   : > { %v3819_v48 = vpop.xlane.xlu1 %3818 }
 0xb4b   : > { %6070 = vrsqrt.f32 %v3866_v59  ;;  %v3847_v26 = vmul.f32 0.03125, %v3819_v48  ;;  %v3926_v16 = vmul.f32 %v8047_v3, %v3900_v12  ;;  %v5843_v59 = vld [vmem:[%s6397_s20] sm:$0xff]  }
 0xb4c   : > { %v6063_v27 = vpop.eup %6062  ;;  %6072 = vrsqrt.f32 %v3865_v9  ;;  %5673 = vmatprep.subr.bf16.mxu1 %v5843_v59 }
 0xb4d   : > { %v6065_v37 = vpop.eup %6064  ;;  %v3902_v15 = vmul.f32 %v6063_v27, %v7975_v55  ;;  %v3867_v14 = vadd.f32 1e-05, %v3847_v26  ;;  %v3952_v55 = vadd.f32 %v8057_v53, %v3926_v16  ;;  %5674 = vmatpush3.bf16.msra.mxu1 %v5843_v59 }
 0xb4e   : > { %v3901_v22 = vmul.f32 %v6065_v37, %v7978_v18 }
 0xb4f   : > { %6074 = vrsqrt.f32 %v3867_v14  ;;  %v3928_v63 = vmul.f32 %v8047_v3, %v3902_v15 }
 0xb50   : > { %v6067_v31 = vpop.eup %6066  ;;  %v3927_v21 = vmul.f32 %v8047_v3, %v3901_v22 }
 0xb51   : > { %v3903_v47 = vmul.f32 %v6067_v31, %v7986_v39  ;;  %v3954_v34 = vadd.f32 %v8057_v53, %v3928_v63 }
 0xb52   : > { %v3822_v43 = vpop.xlane.xlu0 %3821  ;;  %v3953_v25 = vadd.f32 %v8057_v53, %v3927_v21 }
 0xb53   : > { %v3848_v18 = vmul.f32 0.03125, %v3822_v43  ;;  %v3929_v6 = vmul.f32 %v8047_v3, %v3903_v47 }
 0xb54   : > { %v6069_v54 = vpop.eup %6068  ;;  %v3968_v0 = vpack.c.bf16 %v3953_v25, %v3952_v55 }
 0xb55   : > { %v3868_v33 = vadd.f32 1e-05, %v3848_v18  ;;  %v3955_v39 = vadd.f32 %v8057_v53, %v3929_v6  ;;  %v3904_v13 = vmul.f32 %v6069_v54, %v7993_v2 }
 0xb56   : > { %5647 = vmatprep.mubr.msk.bf16.mxu0 %vm1192_vm1, %v3968_v0  ;;  %v3828_v58 = vpop.xlane.xlu0 %3827  ;;  %v3825_v57 = vpop.xlane.xlu1 %3824 }
 0xb57   : > { %6076 = vrsqrt.f32 %v3868_v33  ;;  %v3850_v32 = vmul.f32 0.03125, %v3828_v58  ;;  %v3849_v50 = vmul.f32 0.03125, %v3825_v57  ;;  %v3969_v36 = vpack.c.bf16 %v3955_v39, %v3954_v34 }
 0xb58   : > { %v6071_v9 = vpop.eup %6070  ;;  %v3930_v2 = vmul.f32 %v8047_v3, %v3904_v13 }
 0xb59   : > { %v6073_v48 = vpop.eup %6072  ;;  %v3906_v12 = vmul.f32 %v6071_v9, %v7999_v56  ;;  %v3870_v26 = vadd.f32 1e-05, %v3850_v32  ;;  %v3869_v52 = vadd.f32 1e-05, %v3849_v50  ;;  %5648 = vmatmul.mubr.msk.bf16.gmra.mxu0 %vm1192_vm1, %v3969_v36 }
 0xb5a   : > { %v3831_v27 = vpop.xlane.xlu1 %3830  ;;  %v3905_v37 = vmul.f32 %v6073_v48, %v8002_v42  ;;  %v3956_v31 = vadd.f32 %v8057_v53, %v3930_v2 }
 0xb5b   : > { %6078 = vrsqrt.f32 %v3870_v26  ;;  %v3851_v15 = vmul.f32 0.03125, %v3831_v27  ;;  %v3932_v41 = vmul.f32 %v8047_v3, %v3906_v12 }
 0xb5c   : > { %v6075_v14 = vpop.eup %6074  ;;  %6080 = vrsqrt.f32 %v3869_v52  ;;  %v3931_v22 = vmul.f32 %v8047_v3, %v3905_v37 }
 0xb5d   : > { %v3907_v16 = vmul.f32 %v6075_v14, %v8010_v7  ;;  %v3871_v56 = vadd.f32 1e-05, %v3851_v15  ;;  %v3958_v63 = vadd.f32 %v8057_v53, %v3932_v41 }
 0xb5e   : > { %v3957_v21 = vadd.f32 %v8057_v53, %v3931_v22 }
 0xb5f   : > { %6082 = vrsqrt.f32 %v3871_v56  ;;  %v3933_v42 = vmul.f32 %v8047_v3, %v3907_v16 }
 0xb60   : > { %v3970_v47 = vpack.c.bf16 %v3957_v21, %v3956_v31 }
 0xb61   : > { %v3959_v43 = vadd.f32 %v8057_v53, %v3933_v42 }
 0xb62   : > { %5651 = vmatprep.mubr.msk.bf16.mxu0 %vm1192_vm1, %v3970_v47 }
 0xb63   : > { %v3971_v55 = vpack.c.bf16 %v3959_v43, %v3958_v63 }
 0xb64   : > { %v6077_v25 = vpop.eup %6076 }
 0xb65   : > { %5652 = vmatmul.mubr.msk.bf16.gmra.mxu0 %vm1192_vm1, %v3971_v55  ;;  %v3908_v7 = vmul.f32 %v6077_v25, %v8018_v28 }
 0xb67   : > { %v3934_v0 = vmul.f32 %v8047_v3, %v3908_v7 }
 0xb68   : > { %v6079_v18 = vpop.eup %6078 }
 0xb69   : > { %v6081_v6 = vpop.eup %6080  ;;  %v3910_v49 = vmul.f32 %v6079_v18, %v8023_v40  ;;  %v3960_v57 = vadd.f32 %v8057_v53, %v3934_v0 }
 0xb6a   : > { %v3909_v54 = vmul.f32 %v6081_v6, %v8026_v19 }
 0xb6b   : > { %v3936_v58 = vmul.f32 %v8047_v3, %v3910_v49 }
 0xb6c   : > { %v6083_v33 = vpop.eup %6082  ;;  %v3935_v34 = vmul.f32 %v8047_v3, %v3909_v54 }
 0xb6d   : > { %v3911_v39 = vmul.f32 %v6083_v33, %v8034_v62  ;;  %v3962_v40 = vadd.f32 %v8057_v53, %v3936_v58  ;;  %v8138_v62 = vld [vmem:[%s847_s7] ss:$0 sm:$0xff] }
 0xb6e   : > { %v3961_v28 = vadd.f32 %v8057_v53, %v3935_v34 }
 0xb6f   : > { %v3937_v13 = vmul.f32 %v8047_v3, %v3911_v39 }
 0xb70   : > { %v3972_v32 = vpack.c.bf16 %v3961_v28, %v3960_v57 }
 0xb71   : > { %v3963_v19 = vadd.f32 %v8057_v53, %v3937_v13 }
 0xb72   : > { %5655 = vmatprep.mubr.msk.bf16.mxu0 %vm1192_vm1, %v3972_v32 }
 0xb73   : > { %v3973_v50 = vpack.c.bf16 %v3963_v19, %v3962_v40 }
 0xb75   : > { %5656 = vmatmul.mubr.msk.bf16.gmra.mxu0 %vm1192_vm1, %v3973_v50 }
 0xbb2   : > { %v5641_v36 = vpop.f32.mrf.mxu0 }
 0xbb3   : > { %v4070_v59 = vadd.f32 %v5641_v36, %v8138_v62 }
 0xbb4   : > { %v4061_v3 = vpop.f32.mrf.mxu0 }
 0xbb5   : > { %v4142_v9 = vmul.f32 %v4070_v59, %v4070_v59  ;;  %v4062_v48 = vadd.f32 %v8138_v62, %v4061_v3 }
 0xbb6   : > { %v5642_v12 = vpop.f32.mrf.mxu0 }
 0xbb7   : > { %v4162_v53 = vmul.f32 %v4142_v9, %v4070_v59  ;;  %v4140_v26 = vmul.f32 %v4062_v48, %v4062_v48  ;;  %v4073_v52 = vadd.f32 %v5642_v12, %v8138_v62 }
 0xbb8   : > { %v4064_v27 = vpop.f32.mrf.mxu0 }
 0xbb9   : > { %v4182_v37 = vmul.f32 0.044715, %v4162_v53  ;;  %v4160_v2 = vmul.f32 %v4140_v26, %v4062_v48  ;;  %v4143_v15 = vmul.f32 %v4073_v52, %v4073_v52  ;;  %v4065_v14 = vadd.f32 %v8138_v62, %v4064_v27 }
 0xbbb   : > { %v4202_v22 = vadd.f32 %v4182_v37, %v4070_v59  ;;  %v4180_v16 = vmul.f32 0.044715, %v4160_v2  ;;  %v4163_v56 = vmul.f32 %v4143_v15, %v4073_v52  ;;  %v4141_v41 = vmul.f32 %v4065_v14, %v4065_v14 }
 0xbbd   : > { %v4222_v31 = vmul.f32 0.7978846, %v4202_v22  ;;  %v4200_v21 = vadd.f32 %v4180_v16, %v4062_v48  ;;  %v4183_v42 = vmul.f32 0.044715, %v4163_v56  ;;  %v4161_v47 = vmul.f32 %v4141_v41, %v4065_v14 }
 0xbbf   : > { %v4220_v63 = vmul.f32 0.7978846, %v4200_v21  ;;  %v4203_v43 = vadd.f32 %v4183_v42, %v4073_v52  ;;  %v4181_v55 = vmul.f32 0.044715, %v4161_v47  ;;  %6084 = vtanh.f32 %v4222_v31 }
 0xbc1   : > { %6086 = vtanh.f32 %v4220_v63  ;;  %v4223_v25 = vmul.f32 0.7978846, %v4203_v43  ;;  %v4201_v7 = vadd.f32 %v4181_v55, %v4065_v14 }
 0xbc3   : > { %6088 = vtanh.f32 %v4223_v25  ;;  %v4221_v18 = vmul.f32 0.7978846, %v4201_v7 }
 0xbc5   : > { %6090 = vtanh.f32 %v4221_v18 }
 0xbcc   : > { %v6085_v6 = vpop.eup %6084 }
 0xbcd   : > { %v4262_v33 = vadd.f32 1.0, %v6085_v6 }
 0xbce   : > { %v6087_v49 = vpop.eup %6086 }
 0xbcf   : > { %v4260_v54 = vadd.f32 1.0, %v6087_v49  ;;  %v4282_v13 = vmul.f32 0.5, %v4262_v33 }
 0xbd0   : > { %v6089_v0 = vpop.eup %6088 }
 0xbd1   : > { %v4263_v34 = vadd.f32 1.0, %v6089_v0  ;;  %v4280_v28 = vmul.f32 0.5, %v4260_v54  ;;  %v4302_v36 = vmul.f32 %v4282_v13, %v4070_v59 }
 0xbd2   : > { %v6091_v39 = vpop.eup %6090 }
 0xbd3   : > { %v4283_v58 = vmul.f32 0.5, %v4263_v34  ;;  %v4261_v57 = vadd.f32 1.0, %v6091_v39  ;;  %v4300_v19 = vmul.f32 %v4280_v28, %v4062_v48 }
 0xbd5   : > { %v4281_v32 = vmul.f32 0.5, %v4261_v57  ;;  %v4303_v40 = vmul.f32 %v4283_v58, %v4073_v52 }
 0xbd7   : > { %v4301_v50 = vmul.f32 %v4281_v32, %v4065_v14  ;;  %v4321_v9 = vpack.c.bf16 %v4303_v40, %v4302_v36 }
 0xbd9   : > { %v4320_v3 = vpack.c.bf16 %v4301_v50, %v4300_v19 }
 0xbdb   : > { %5675 = vmatprep.mubr.bf16.mxu1 %v4320_v3 }
 0xbdc   : > { %5676 = vmatmul.mubr.bf16.vlgmr.msra.gmra.mxu1 %v4321_v9 }
 0xbe3   : > { %v5645_v12 = vpop.f32.mrf.mxu0 }
 0xbe4   : > { %v4086_v53 = vadd.f32 %v5645_v12, %v8138_v62 }
 0xbe5   : > { %v4077_v26 = vpop.f32.mrf.mxu0 }
 0xbe6   : > { %v4146_v27 = vmul.f32 %v4086_v53, %v4086_v53  ;;  %v4078_v37 = vadd.f32 %v8138_v62, %v4077_v26 }
 0xbe7   : > { %v5646_v2 = vpop.f32.mrf.mxu0 }
 0xbe8   : > { %v4166_v15 = vmul.f32 %v4146_v27, %v4086_v53  ;;  %v4144_v22 = vmul.f32 %v4078_v37, %v4078_v37  ;;  %v4089_v16 = vadd.f32 %v5646_v2, %v8138_v62 }
 0xbe9   : > { %v4080_v52 = vpop.f32.mrf.mxu0 }
 0xbea   : > { %v4186_v48 = vmul.f32 0.044715, %v4166_v15  ;;  %v4164_v14 = vmul.f32 %v4144_v22, %v4078_v37  ;;  %v4147_v59 = vmul.f32 %v4089_v16, %v4089_v16  ;;  %v4081_v56 = vadd.f32 %v8138_v62, %v4080_v52 }
 0xbec   : > { %v4206_v41 = vadd.f32 %v4186_v48, %v4086_v53  ;;  %v4184_v31 = vmul.f32 0.044715, %v4164_v14  ;;  %v4167_v21 = vmul.f32 %v4147_v59, %v4089_v16  ;;  %v4145_v42 = vmul.f32 %v4081_v56, %v4081_v56 }
 0xbee   : > { %v4226_v47 = vmul.f32 0.7978846, %v4206_v41  ;;  %v4204_v63 = vadd.f32 %v4184_v31, %v4078_v37  ;;  %v4187_v43 = vmul.f32 0.044715, %v4167_v21  ;;  %v4165_v55 = vmul.f32 %v4145_v42, %v4081_v56 }
 0xbf0   : > { %v4224_v25 = vmul.f32 0.7978846, %v4204_v63  ;;  %v4207_v7 = vadd.f32 %v4187_v43, %v4089_v16  ;;  %v4185_v18 = vmul.f32 0.044715, %v4165_v55  ;;  %6092 = vtanh.f32 %v4226_v47 }
 0xbf2   : > { %6094 = vtanh.f32 %v4224_v25  ;;  %v4227_v6 = vmul.f32 0.7978846, %v4207_v7  ;;  %v4205_v49 = vadd.f32 %v4185_v18, %v4081_v56 }
 0xbf4   : > { %6096 = vtanh.f32 %v4227_v6  ;;  %v4225_v54 = vmul.f32 0.7978846, %v4205_v49 }
 0xbf6   : > { %6098 = vtanh.f32 %v4225_v54 }
 0xbfd   : > { %v6093_v0 = vpop.eup %6092 }
 0xbfe   : > { %v4266_v58 = vadd.f32 1.0, %v6093_v0 }
 0xbff   : > { %v6095_v33 = vpop.eup %6094 }
 0xc00   : > { %v4264_v34 = vadd.f32 1.0, %v6095_v33  ;;  %v4286_v19 = vmul.f32 0.5, %v4266_v58 }
 0xc01   : > { %v6097_v39 = vpop.eup %6096 }
 0xc02   : > { %v4267_v57 = vadd.f32 1.0, %v6097_v39  ;;  %v4284_v40 = vmul.f32 0.5, %v4264_v34  ;;  %v4306_v12 = vmul.f32 %v4286_v19, %v4086_v53 }
 0xc03   : > { %v6099_v28 = vpop.eup %6098 }
 0xc04   : > { %v4287_v13 = vmul.f32 0.5, %v4267_v57  ;;  %v4265_v32 = vadd.f32 1.0, %v6099_v28  ;;  %v4304_v3 = vmul.f32 %v4284_v40, %v4078_v37 }
 0xc06   : > { %v4285_v50 = vmul.f32 0.5, %v4265_v32  ;;  %v4307_v36 = vmul.f32 %v4287_v13, %v4089_v16 }
 0xc08   : > { %v4305_v9 = vmul.f32 %v4285_v50, %v4081_v56  ;;  %v4323_v27 = vpack.c.bf16 %v4307_v36, %v4306_v12 }
 0xc0a   : > { %v4322_v26 = vpack.c.bf16 %v4305_v9, %v4304_v3 }
 0xc0c   : > { %5679 = vmatprep.mubr.bf16.mxu1 %v4322_v26 }
 0xc0d   : > { %5680 = vmatmul.mubr.bf16.gmra.mxu1 %v4323_v27 }
 0xc19   : > { %v5649_v2 = vpop.f32.mrf.mxu0 }
 0xc1a   : > { %v8149_v15 = vadd.f32 %v5649_v2, %v8138_v62 }
 0xc1b   : > { %v4093_v22 = vpop.f32.mrf.mxu0 }
 0xc1c   : > { %v4150_v52 = vmul.f32 %v8149_v15, %v8149_v15  ;;  %v8154_v48 = vadd.f32 %v8138_v62, %v4093_v22 }
 0xc1d   : > { %v5650_v14 = vpop.f32.mrf.mxu0 }
 0xc1e   : > { %v4170_v37 = vmul.f32 %v4150_v52, %v8149_v15  ;;  %v4148_v53 = vmul.f32 %v8154_v48, %v8154_v48  ;;  %v8160_v16 = vadd.f32 %v5650_v14, %v8138_v62 }
 0xc1f   : > { %v4096_v59 = vpop.f32.mrf.mxu0 }
 0xc20   : > { %v4190_v56 = vmul.f32 0.044715, %v4170_v37  ;;  %v4168_v41 = vmul.f32 %v4148_v53, %v8154_v48  ;;  %v4151_v31 = vmul.f32 %v8160_v16, %v8160_v16  ;;  %v8166_v21 = vadd.f32 %v8138_v62, %v4096_v59 }
 0xc22   : > { %v4210_v42 = vadd.f32 %v4190_v56, %v8149_v15  ;;  %v4188_v47 = vmul.f32 0.044715, %v4168_v41  ;;  %v4171_v63 = vmul.f32 %v4151_v31, %v8160_v16  ;;  %v4149_v43 = vmul.f32 %v8166_v21, %v8166_v21 }
 0xc24   : > { %v4230_v55 = vmul.f32 0.7978846, %v4210_v42  ;;  %v4208_v25 = vadd.f32 %v4188_v47, %v8154_v48  ;;  %v4191_v7 = vmul.f32 0.044715, %v4171_v63  ;;  %v4169_v18 = vmul.f32 %v4149_v43, %v8166_v21 }
 0xc25   : > { %v5653_v6 = vpop.f32.mrf.mxu0 }
 0xc26   : > { %v4228_v49 = vmul.f32 0.7978846, %v4208_v25  ;;  %v4211_v54 = vadd.f32 %v4191_v7, %v8160_v16  ;;  %v4189_v0 = vmul.f32 0.044715, %v4169_v18  ;;  %6100 = vtanh.f32 %v4230_v55 }
 0xc27   : > { %v8176_v33 = vadd.f32 %v5653_v6, %v8138_v62  ;;  %v4109_v34 = vpop.f32.mrf.mxu0 }
 0xc28   : > { %6102 = vtanh.f32 %v4228_v49  ;;  %v4231_v39 = vmul.f32 0.7978846, %v4211_v54  ;;  %v4209_v58 = vadd.f32 %v4189_v0, %v8166_v21  ;;  %v8180_v57 = vadd.f32 %v8138_v62, %v4109_v34 }
 0xc29   : > { %v4154_v28 = vmul.f32 %v8176_v33, %v8176_v33  ;;  %v5654_v13 = vpop.f32.mrf.mxu0 }
 0xc2a   : > { %6104 = vtanh.f32 %v4231_v39  ;;  %v4229_v32 = vmul.f32 0.7978846, %v4209_v58  ;;  %v4152_v40 = vmul.f32 %v8180_v57, %v8180_v57  ;;  %v8187_v19 = vadd.f32 %v5654_v13, %v8138_v62 }
 0xc2b   : > { %v4174_v50 = vmul.f32 %v4154_v28, %v8176_v33  ;;  %v4112_v36 = vpop.f32.mrf.mxu0 }
 0xc2c   : > { %6106 = vtanh.f32 %v4229_v32  ;;  %v4172_v3 = vmul.f32 %v4152_v40, %v8180_v57  ;;  %v4155_v9 = vmul.f32 %v8187_v19, %v8187_v19  ;;  %v8194_v12 = vadd.f32 %v8138_v62, %v4112_v36 }
 0xc2d   : > { %v4194_v26 = vmul.f32 0.044715, %v4174_v50 }
 0xc2e   : > { %v4192_v27 = vmul.f32 0.044715, %v4172_v3  ;;  %v4175_v2 = vmul.f32 %v4155_v9, %v8187_v19  ;;  %v4153_v22 = vmul.f32 %v8194_v12, %v8194_v12 }
 0xc2f   : > { %v4214_v52 = vadd.f32 %v4194_v26, %v8176_v33 }
 0xc30   : > { %v4212_v14 = vadd.f32 %v4192_v27, %v8180_v57  ;;  %v4195_v37 = vmul.f32 0.044715, %v4175_v2  ;;  %v4173_v53 = vmul.f32 %v4153_v22, %v8194_v12 }
 0xc31   : > { %v4234_v59 = vmul.f32 0.7978846, %v4214_v52 }
 0xc32   : > { %v4232_v56 = vmul.f32 0.7978846, %v4212_v14  ;;  %v4215_v41 = vadd.f32 %v4195_v37, %v8187_v19  ;;  %v4193_v31 = vmul.f32 0.044715, %v4173_v53 }
 0xc33   : > { %6108 = vtanh.f32 %v4234_v59  ;;  %v6101_v42 = vpop.eup %6100 }
 0xc34   : > { %6110 = vtanh.f32 %v4232_v56  ;;  %v4235_v47 = vmul.f32 0.7978846, %v4215_v41  ;;  %v4213_v63 = vadd.f32 %v4193_v31, %v8194_v12  ;;  %v4270_v54 = vadd.f32 1.0, %v6101_v42 }
 0xc35   : > { %v6103_v43 = vpop.eup %6102  ;;  %v5657_v55 = vpop.f32.mrf.mxu0 }
 0xc36   : > { %6112 = vtanh.f32 %v4235_v47  ;;  %v4233_v25 = vmul.f32 0.7978846, %v4213_v63  ;;  %v8205_v7 = vadd.f32 %v5657_v55, %v8138_v62  ;;  %v4268_v49 = vadd.f32 1.0, %v6103_v43 }
 0xc37   : > { %v6105_v18 = vpop.eup %6104  ;;  %v4125_v6 = vpop.f32.mrf.mxu0  ;;  %v4290_v26 = vmul.f32 0.5, %v4270_v54 }
 0xc38   : > { %v4271_v0 = vadd.f32 1.0, %v6105_v18  ;;  %6114 = vtanh.f32 %v4233_v25  ;;  %v4158_v34 = vmul.f32 %v8205_v7, %v8205_v7  ;;  %v8210_v58 = vadd.f32 %v8138_v62, %v4125_v6 }
 0xc39   : > { %v6107_v39 = vpop.eup %6106  ;;  %v5658_v28 = vpop.f32.mrf.mxu0  ;;  %v4288_v9 = vmul.f32 0.5, %v4268_v49 }
 0xc3a   : > { %v4291_v13 = vmul.f32 0.5, %v4271_v0  ;;  %v4178_v32 = vmul.f32 %v4158_v34, %v8205_v7  ;;  %v8214_v40 = vadd.f32 %v5658_v28, %v8138_v62  ;;  %v4269_v50 = vadd.f32 1.0, %v6107_v39 }
 0xc3b   : > { %v4156_v36 = vmul.f32 %v8210_v58, %v8210_v58  ;;  %v4128_v3 = vpop.f32.mrf.mxu0  ;;  %v4308_v31 = vmul.f32 %v4288_v9, %v8154_v48 }
 0xc3c   : > { %v4198_v27 = vmul.f32 0.044715, %v4178_v32  ;;  %v4159_v2 = vmul.f32 %v8214_v40, %v8214_v40  ;;  %v8221_v22 = vadd.f32 %v8138_v62, %v4128_v3  ;;  %v4289_v14 = vmul.f32 0.5, %v4269_v50 }
 0xc3d   : > { %v4176_v52 = vmul.f32 %v4156_v36, %v8210_v58  ;;  %v4311_v37 = vmul.f32 %v4291_v13, %v8160_v16  ;;  %v4310_v62 = vmul.f32 %v4290_v26, %v8149_v15 }
 0xc3e   : > { %v4218_v53 = vadd.f32 %v4198_v27, %v8205_v7  ;;  %v4179_v59 = vmul.f32 %v4159_v2, %v8214_v40  ;;  %v4157_v56 = vmul.f32 %v8221_v22, %v8221_v22  ;;  %v4309_v42 = vmul.f32 %v4289_v14, %v8166_v21 }
 0xc3f   : > { %v4196_v41 = vmul.f32 0.044715, %v4176_v52  ;;  %v4325_v54 = vpack.c.bf16 %v4311_v37, %v4310_v62 }
 0xc40   : > { %v6109_v47 = vpop.eup %6108  ;;  %v4238_v63 = vmul.f32 0.7978846, %v4218_v53  ;;  %v4199_v43 = vmul.f32 0.044715, %v4179_v59  ;;  %v4177_v55 = vmul.f32 %v4157_v56, %v8221_v22  ;;  %v4324_v18 = vpack.c.bf16 %v4309_v42, %v4308_v31 }
 0xc41   : > { %v6111_v16 = vpop.eup %6110  ;;  %v4216_v25 = vadd.f32 %v4196_v41, %v8210_v58  ;;  %v4274_v48 = vadd.f32 1.0, %v6109_v47 }
 0xc42   : > { %v4219_v6 = vadd.f32 %v4199_v43, %v8214_v40  ;;  %v4197_v49 = vmul.f32 0.044715, %v4177_v55  ;;  %v4272_v0 = vadd.f32 1.0, %v6111_v16  ;;  %6116 = vtanh.f32 %v4238_v63  ;;  %5683 = vmatprep.mubr.bf16.mxu1 %v4324_v18 }
 0xc43   : > { %v6113_v34 = vpop.eup %6112  ;;  %v4236_v21 = vmul.f32 0.7978846, %v4216_v25  ;;  %5684 = vmatmul.mubr.bf16.gmra.mxu1 %v4325_v54  ;;  %v4294_v9 = vmul.f32 0.5, %v4274_v48 }
 0xc44   : > { %v4275_v39 = vadd.f32 1.0, %v6113_v34  ;;  %v4239_v15 = vmul.f32 0.7978846, %v4219_v6  ;;  %v4217_v28 = vadd.f32 %v4197_v49, %v8221_v22  ;;  %v4292_v32 = vmul.f32 0.5, %v4272_v0  ;;  %v8249_v49 = vld [vmem:[%s8426_s29] ss:$0 sm:$0xff] }
 0xc45   : > { %v6115_v13 = vpop.eup %6114  ;;  %6118 = vtanh.f32 %v4236_v21  ;;  %v4314_v14 = vmul.f32 %v4294_v9, %v8176_v33 }
 0xc46   : > { %v4295_v50 = vmul.f32 0.5, %v4275_v39  ;;  %6120 = vtanh.f32 %v4239_v15  ;;  %v4237_v36 = vmul.f32 0.7978846, %v4217_v28  ;;  %v4273_v3 = vadd.f32 1.0, %v6115_v13 }
 0xc47   : > { %v4312_v2 = vmul.f32 %v4292_v32, %v8180_v57 }
 0xc48   : > { %6122 = vtanh.f32 %v4237_v36  ;;  %v4293_v26 = vmul.f32 0.5, %v4273_v3  ;;  %v4315_v27 = vmul.f32 %v4295_v50, %v8187_v19 }
 0xc4a   : > { %v4313_v52 = vmul.f32 %v4293_v26, %v8194_v12  ;;  %v4327_v53 = vpack.c.bf16 %v4315_v27, %v4314_v14 }
 0xc4c   : > { %v4326_v37 = vpack.c.bf16 %v4313_v52, %v4312_v2 }
 0xc4e   : > { %5687 = vmatprep.mubr.bf16.mxu1 %v4326_v37 }
 0xc4f   : > { %5688 = vmatmul.mubr.bf16.gmra.mxu1 %v4327_v53  ;;  %v6117_v59 = vpop.eup %6116 }
 0xc50   : > { %v4278_v31 = vadd.f32 1.0, %v6117_v59 }
 0xc52   : > { %v6119_v56 = vpop.eup %6118  ;;  %v4298_v57 = vmul.f32 0.5, %v4278_v31 }
 0xc53   : > { %v6121_v41 = vpop.eup %6120  ;;  %v4276_v42 = vadd.f32 1.0, %v6119_v56 }
 0xc54   : > { %v4279_v47 = vadd.f32 1.0, %v6121_v41  ;;  %v4318_v25 = vmul.f32 %v4298_v57, %v8205_v7 }
 0xc55   : > { %v6123_v62 = vpop.eup %6122  ;;  %v4296_v43 = vmul.f32 0.5, %v4276_v42 }
 0xc56   : > { %v4299_v63 = vmul.f32 0.5, %v4279_v47  ;;  %v4277_v19 = vadd.f32 1.0, %v6123_v62 }
 0xc57   : > { %v4316_v33 = vmul.f32 %v4296_v43, %v8210_v58 }
 0xc58   : > { %v4297_v55 = vmul.f32 0.5, %v4277_v19  ;;  %v4319_v12 = vmul.f32 %v4299_v63, %v8214_v40 }
 0xc5a   : > { %v4317_v16 = vmul.f32 %v4297_v55, %v8221_v22  ;;  %v4329_v6 = vpack.c.bf16 %v4319_v12, %v4318_v25 }
 0xc5c   : > { %v4328_v18 = vpack.c.bf16 %v4317_v16, %v4316_v33 }
 0xc5e   : > { %5691 = vmatprep.mubr.bf16.mxu1 %v4328_v18 }
 0xc5f   : > { %5692 = vmatmul.mubr.bf16.gmra.mxu1 %v4329_v6 }
 0xc9c   : > { %v5677_v54 = vpop.f32.mrf.mxu1 }
 0xc9d   : > { %v4444_v0 = vadd.f32 %v5677_v54, %v8249_v49 }
 0xc9e   : > { %v4435_v40 = vpop.f32.mrf.mxu1 }
 0xc9f   : > { %v4516_v58 = vadd.f32 %v4444_v0, %v7823_v5  ;;  %v4436_v22 = vadd.f32 %v8249_v49, %v4435_v40 }
 0xca0   : > { %v5678_v34 = vpop.f32.mrf.mxu1 }
 0xca1   : > { %4536 = vst.msk [vmem:[#allocation2 + $0x10] sm:$0xff] %vm1192_vm1, %v4516_v58  ;;  %v8256_v7 = vadd.f32 %v4436_v22, %v7820_v4  ;;  %v4447_v48 = vadd.f32 %v5678_v34, %v8249_v49 }
 0xca2   : > { %v4438_v21 = vpop.f32.mrf.mxu1 }
 0xca3   : > { %4534 = vst.msk [vmem:[#allocation2] sm:$0xff] %vm1192_vm1, %v8256_v7  ;;  %v4517_v39 = vadd.f32 %v4447_v48, %v7831_v10  ;;  %v4439_v15 = vadd.f32 %v8249_v49, %v4438_v21 }
 0xca5   : > { %4537 = vst.msk [vmem:[#allocation2 + $0x18] sm:$0xff] %vm1192_vm1, %v4517_v39  ;;  %v4515_v5 = vadd.f32 %v4439_v15, %v7828_v11 }
 0xca7   : > { %4535 = vst.msk [vmem:[#allocation2 + $0x8] sm:$0xff] %vm1192_vm1, %v4515_v5 }
 0xccd   : > { %v5681_v28 = vpop.f32.mrf.mxu1 }
 0xcce   : > { %v4460_v4 = vadd.f32 %v5681_v28, %v8249_v49 }
 0xccf   : > { %v4451_v13 = vpop.f32.mrf.mxu1 }
 0xcd0   : > { %v4520_v32 = vadd.f32 %v4460_v4, %v7843_v61  ;;  %v4452_v50 = vadd.f32 %v8249_v49, %v4451_v13 }
 0xcd1   : > { %v5682_v36 = vpop.f32.mrf.mxu1 }
 0xcd2   : > { %4540 = vst.msk [vmem:[#allocation2 + $0x30] sm:$0xff] %vm1192_vm1, %v4520_v32  ;;  %v4518_v10 = vadd.f32 %v4452_v50, %v7840_v44  ;;  %v4463_v3 = vadd.f32 %v5682_v36, %v8249_v49 }
 0xcd3   : > { %v4454_v9 = vpop.f32.mrf.mxu1 }
 0xcd4   : > { %4538 = vst.msk [vmem:[#allocation2 + $0x20] sm:$0xff] %vm1192_vm1, %v4518_v10  ;;  %v4521_v11 = vadd.f32 %v4463_v3, %v7851_v20  ;;  %v4455_v26 = vadd.f32 %v8249_v49, %v4454_v9 }
 0xcd6   : > { %4541 = vst.msk [vmem:[#allocation2 + $0x38] sm:$0xff] %vm1192_vm1, %v4521_v11  ;;  %v4519_v61 = vadd.f32 %v4455_v26, %v7848_v46 }
 0xcd8   : > { %4539 = vst.msk [vmem:[#allocation2 + $0x28] sm:$0xff] %vm1192_vm1, %v4519_v61 }
 0xd03   : > { %v5685_v27 = vpop.f32.mrf.mxu1 }
 0xd04   : > { %v4476_v2 = vadd.f32 %v5685_v27, %v8249_v49 }
 0xd05   : > { %v4467_v52 = vpop.f32.mrf.mxu1 }
 0xd06   : > { %v4524_v44 = vadd.f32 %v4476_v2, %v7863_v24  ;;  %v4468_v14 = vadd.f32 %v8249_v49, %v4467_v52 }
 0xd07   : > { %v5686_v37 = vpop.f32.mrf.mxu1 }
 0xd08   : > { %4544 = vst.msk [vmem:[#allocation2 + $0x50] sm:$0xff] %vm1192_vm1, %v4524_v44  ;;  %v4522_v20 = vadd.f32 %v4468_v14, %v7860_v17  ;;  %v4479_v53 = vadd.f32 %v5686_v37, %v8249_v49 }
 0xd09   : > { %v4470_v59 = vpop.f32.mrf.mxu1 }
 0xd0a   : > { %4542 = vst.msk [vmem:[#allocation2 + $0x40] sm:$0xff] %vm1192_vm1, %v4522_v20  ;;  %v4525_v46 = vadd.f32 %v4479_v53, %v7871_v29  ;;  %v4471_v56 = vadd.f32 %v8249_v49, %v4470_v59 }
 0xd0c   : > { %4545 = vst.msk [vmem:[#allocation2 + $0x58] sm:$0xff] %vm1192_vm1, %v4525_v46  ;;  %v4523_v24 = vadd.f32 %v4471_v56, %v7868_v23 }
 0xd0e   : > { %4543 = vst.msk [vmem:[#allocation2 + $0x48] sm:$0xff] %vm1192_vm1, %v4523_v24 }
 0xd0f   : > { %v5689_v41 = vpop.f32.mrf.mxu1 }
 0xd10   : > { %v4492_v31 = vadd.f32 %v5689_v41, %v8249_v49 }
 0xd11   : > { %v4483_v42 = vpop.f32.mrf.mxu1 }
 0xd12   : > { %v4528_v17 = vadd.f32 %v4492_v31, %v7883_v51  ;;  %v4484_v47 = vadd.f32 %v8249_v49, %v4483_v42 }
 0xd13   : > { %v5690_v62 = vpop.f32.mrf.mxu1 }
 0xd14   : > { %4548 = vst.msk [vmem:[#allocation2 + $0x70] sm:$0xff] %vm1192_vm1, %v4528_v17  ;;  %v4526_v29 = vadd.f32 %v4484_v47, %v7880_v8  ;;  %v4495_v63 = vadd.f32 %v5690_v62, %v8249_v49 }
 0xd15   : > { %v4486_v19 = vpop.f32.mrf.mxu1 }
 0xd16   : > { %4546 = vst.msk [vmem:[#allocation2 + $0x60] sm:$0xff] %vm1192_vm1, %v4526_v29  ;;  %v4529_v23 = vadd.f32 %v4495_v63, %v7891_v60  ;;  %v4487_v43 = vadd.f32 %v8249_v49, %v4486_v19 }
 0xd18   : > { %4549 = vst.msk [vmem:[#allocation2 + $0x78] sm:$0xff] %vm1192_vm1, %v4529_v23  ;;  %v4527_v51 = vadd.f32 %v4487_v43, %v7888_v1 }
 0xd1a   : > { %4547 = vst.msk [vmem:[#allocation2 + $0x68] sm:$0xff] %vm1192_vm1, %v4527_v51 }
 0xd1f   : > { %v5693_v57 = vpop.f32.mrf.mxu1 }
 0xd20   : > { %v4508_v55 = vadd.f32 %v5693_v57, %v8249_v49 }
 0xd21   : > { %v4499_v12 = vpop.f32.mrf.mxu1 }
 0xd22   : > { %v4532_v8 = vadd.f32 %v4508_v55, %v7903_v30  ;;  %v4500_v33 = vadd.f32 %v8249_v49, %v4499_v12 }
 0xd23   : > { %v5694_v16 = vpop.f32.mrf.mxu1 }
 0xd24   : > { %4552 = vst.msk [vmem:[#allocation2 + $0x90] sm:$0xff] %vm1192_vm1, %v4532_v8  ;;  %v4530_v60 = vadd.f32 %v4500_v33, %v7900_v38  ;;  %v4511_v25 = vadd.f32 %v5694_v16, %v8249_v49 }
 0xd25   : > { %v4502_v18 = vpop.f32.mrf.mxu1 }
 0xd26   : > { %4550 = vst.msk [vmem:[#allocation2 + $0x80] sm:$0xff] %vm1192_vm1, %v4530_v60  ;;  %v4533_v1 = vadd.f32 %v4511_v25, %v7911_v35  ;;  %v4503_v6 = vadd.f32 %v8249_v49, %v4502_v18  ;;  %4557 = sbr.rel (%p5065_p6) target bundleno = 3898 (0xf3a), region = 108 }
 0xd28   : > { %4553 = vst.msk [vmem:[#allocation2 + $0x98] sm:$0xff] %vm1192_vm1, %v4533_v1  ;;  %v4531_v30 = vadd.f32 %v4503_v6, %v7908_v45 }
 0xd2a   : > { %4551 = vst.msk [vmem:[#allocation2 + $0x88] sm:$0xff] %vm1192_vm1, %v4531_v30 }
 0xd2b   : > { %v4562_v54 = vrot.slane %v4524_v44, 7  ;;  %vm4563_vm6 = vcmask 1041409   ;;  %vm4566_vm7 = vcmask 254976   ;;  %v6144_v15 = vld [vmem:[%s8383_s18 + $0x8] sm:$0xff]   ;;  %v6204_v5 = vmov 0.0  }
 0xd2c   : > { %5695 = vmatprep.subr.bf16.mxu0 %v6204_v5  ;;  %vm6205_vm8 = vmmov 0   ;;  %v5066_v50 = vld [vmem:[%s8427_s24] ss:$0 sm:$0xff]  ;;  %v6206_v59 = vmov 1966171168   ;;  %v8429_v24 = vlaneseq }
 0xd2d   : > { %v4564_v38 = vsel %vm4563_vm6, %v4562_v54, %v8256_v7  ;;  %5699 = vmatprep.mubr.msk.bf16.mxu0 %vm6205_vm8, %v6204_v5  ;;  %5696 = vmatpush3.bf16.msra.mxu0 %v6144_v15  ;;  %v5067_v3 = vld [vmem:[%s8428_s6] ss:$0 sm:$0xff]  ;;  %v4689_v46 = vunpack.c.l.s4 %v6206_v59 }
 0xd2e   : > { %v4567_v0 = vsel %vm4566_vm7, %v4564_v38, 0.0  ;;  %5697 = vmatprep.subr.bf16.mxu0 %v6204_v5  ;;  %v4692_v41 = vshrl.u32 %v8429_v24, 7  ;;  %v5068_v31 = vld [vmem:[%s8430_s26] ss:$0 sm:$0xff] }
 0xd2f   : > { %4568 = vadd.xlane.f32.xlu0 %v4567_v0  ;;  %v4690_v56 = vunpack.c.0.s8 %v4689_v46 }
 0xd31   : > { %v4693_v42 = vsub.s32 %v4690_v56, %v4692_v41 }
 0xdb8   : > { %v4569_v35 = vpop.xlane.xlu0 %4568 }
 0xdb9   : > { %v4570_v40 = vmul.f32 0.03125, %v4569_v35 }
 0xdbb   : > { %v4572_v49 = vrot.slane %v4570_v40, 1  ;;  %v4575_v58 = vsub.f32 %v8256_v7, %v4570_v40  ;;  %v6145_v7 = vld [vmem:[%s8383_s18] sm:$0xff]  }
 0xdbc   : > { %5698 = vmatpush3.bf16.msra.mxu0 %v6145_v7 }
 0xdbd   : > { %v4576_v22 = vsub.f32 %v4524_v44, %v4572_v49  ;;  %v4577_v34 = vmul.f32 %v4575_v58, %v4575_v58 }
 0xdbf   : > { %v4578_v45 = vmul.f32 %v4576_v22, %v4576_v22 }
 0xdc1   : > { %v4581_v48 = vrot.slane %v4578_v45, 7 }
 0xdc3   : > { %v4582_v21 = vsel %vm4563_vm6, %v4581_v48, %v4577_v34 }
 0xdc4   : > { %v4584_v39 = vsel %vm4566_vm7, %v4582_v21, 0.0 }
 0xdc5   : > { %4585 = vadd.xlane.f32.xlu0 %v4584_v39 }
 0xe4e   : > { %v4586_v28 = vpop.xlane.xlu0 %4585 }
 0xe4f   : > { %v4587_v4 = vmul.f32 0.03125, %v4586_v28 }
 0xe51   : > { %v4588_v13 = vadd.f32 1e-05, %v4587_v4 }
 0xe53   : > { %6146 = vrsqrt.f32 %v4588_v13 }
 0xe60   : > { %v6147_v32 = vpop.eup %6146 }
 0xe61   : > { %v4591_v36 = vrot.slane %v6147_v32, 1  ;;  %v4594_v10 = vmul.f32 %v6147_v32, %v4575_v58 }
 0xe63   : > { %v4595_v9 = vmul.f32 %v4591_v36, %v4576_v22  ;;  %v4602_v11 = vmul.f32 %v5066_v50, %v4594_v10 }
 0xe65   : > { %v4603_v26 = vmul.f32 %v5066_v50, %v4595_v9  ;;  %v4610_v61 = vadd.f32 %v5067_v3, %v4602_v11 }
 0xe67   : > { %v4611_v27 = vadd.f32 %v5067_v3, %v4603_v26  ;;  %v4612_v2 = vpack.c.bf16 %v4610_v61, %v4610_v61 }
 0xe69   : > { %v4613_v52 = vpack.c.bf16 %v4611_v27, %v4611_v27  ;;  %v4627_v14 = vunpack.c.l.b16 %v4612_v2 }
 0xe6b   : > { %v4628_v44 = vunpack.c.l.b16 %v4613_v52 }
 0xe6d   : > { %v4629_v37 = vrot.slane %v4628_v44, 7 }
 0xe6f   : > { %v4630_v20 = vsel %vm4563_vm6, %v4629_v37, %v4627_v14 }
 0xe70   : > { %v4631_v53 = vpack.c.b16 %v4630_v20, %v4630_v20 }
 0xe72   : > { %5700 = vmatmul.mubr.msk.bf16.vlgmr.msra.gmra.mxu0 %vm1192_vm1, %v4631_v53 }
 0xf32   : > { %v4681_v17 = vpop.f32.mrf.mxu0 }
 0xf33   : > { %v4682_v47 = vadd.f32 %v5068_v31, %v4681_v17 }
 0xf34   : > { %v5701_v62 = vpop.f32.mrf.mxu0 }
 0xf35   : > { %v4694_v29 = vrot.slane %v4682_v47, %v4693_v42 }
 0xf36   : > { %v4684_v63 = vpop.f32.mrf.mxu0 }
 0xf37   : > { %v4695_v19 = vcombine.high %v4694_v29, %v4694_v29  ;;  %5072 = vst.sshfl [vmem:[#allocation3] sm:$0x1 pattern:$0x73625140] %v4694_v29 }
 0xf38   : > { %v5702_v23 = vpop.f32.mrf.mxu0 }
 0xf39   : > { %5073 = vst.sshfl [vmem:[#allocation3 + $0x1] sm:$0x1 pattern:$0x73625140] %v4695_v19 }
 0xf3a PF: > { %s8431_s16 = sld [smem:[#allocation7_spill]]  ;;  %s6207_s7 = smov [#allocation3]  }
 0xf3b   : > { %s4723_s27 = sshll.u32 %s6207_s7, 4  ;;  %s4724_s27 = int_to_ptr.vmem [resolvable:$true] %s4723_s27 }
 0xf3c   : > { %s6148_s29 = scalar_lea.vmem %s4724_s27, 32  ;;  %p6155_p11 = scmp.lt.s32.totalorder %s4724_s27, %s4724_s27 }
 0xf3d   : > { %p6149_p8 = scmp.ne.s32.totalorder %s4724_s27, %s6148_s29  ;;  %p6156_p12 = scmp.lt.s32.totalorder %s6148_s29, %s6148_s29 }
 0xf3f   : > { %p6157_p13 = por %p6156_p12, %p6155_p11 }
 0xf40   : > { %s8432_s20 = sadd.s32 4294967295, %s8431_s16  }
 0xf41   : > { %p8339_p7 = scmp.eq.s32.totalorder %s8432_s20, 1 }
 0xf43   : > { %p6150_p9 = pnand %p6149_p8, %p8339_p7 }
 0xf45   : > { %p6151_p10 = pneg %p6150_p9 }
 0xf47   : > { %p6158_p0 = pnand %p6157_p13, %p6151_p10 }
 0xf49   : > { %6161 = shalt.err (!%p6158_p0)
}
 0xf4a   : > { %s6208_s1 = smov 1   ;;  %s8434_s5 = sld [smem:[#allocation21_spill]] }
 0xf50   : > { %5720 = dma.vmem_to_hbm [thread:$0]  (%p8339_p7), %s4724_s27, 32, %s8434_s5, [#allocation4], %s6203_s3, %s6203_s3, %s6208_s1  }
 0xf51   : > { %6185 = dma.done.wait (%p8339_p7), [#allocation4], 32  }
 0xf52   : > { %6187 = vsyncadd (%p8339_p7), [#allocation4], 4294967264 }
 0xf53 PF: > { %s8435_s0 = sld [smem:[#allocation7_spill]] }
 0xf54   : > { %s8436_s1 = sld [smem:[#allocation6_spill]] }
 0xf55   : > { %s8437_s22 = sld [smem:[#allocation8_spill]] }
 0xf59   : > { %s31_s23 = sadd.s32 1, %s8435_s0  }
 0xf5a   : > { %p28_p1 = scmp.ge.s32.totalorder %s31_s23, 4  }
 0xf5c   :  { %30 = sbr.rel (!%p28_p1) target bundleno = 16 (0x10), region = 175 }
 0xf61   :  { %4739 = vsyncpa [#allocation4], 1 }
 0xf62   :  { %4741 = vsyncpa [#allocation4 + $0x1], 1 }

</bundles_post_ra>
